<compile_context>
chip_gen: v7x
topology: tpu7x:2x2x1
jax: 0.10.0
libtpu: 0.0.40
codegen_flags: <defaults>
</compile_context>

<pallas_src>
import functools

import numpy as np
import jax
import jax.numpy as jnp
from jax import lax
from jax.experimental import pallas as pl
from jax.experimental.pallas import tpu as pltpu


_UNION_MAX_COUT = 128          # use union-packed GEMM when c_out < this


def _round_up(x, m):
    return (x + m - 1) // m * m


@functools.lru_cache(maxsize=None)
def _vmem_capacity_bytes():
    try:
        return int(pltpu.get_tpu_info().vmem_capacity_bytes)
    except Exception:
        return 64 << 20        # conservative: v7x per-TensorCore VMEM


# ---------------------------------------------------------------------------
# Pallas kernels
# ---------------------------------------------------------------------------
def matmul_kernel(x_ref, w_ref, o_ref, *rest, activation, with_stats):
    """Tiled matmul with f32 VMEM accumulation, bf16/f32 store in the last-K
    epilogue.  Optionally emits per-sublane partial column sums / sums of
    squares of the pre-activation accumulator (fused BatchNorm stats pass)."""
    if with_stats:
        sum_ref, sq_ref, acc_ref = rest
    else:
        (acc_ref,) = rest

    k = pl.program_id(2)
    part = jnp.dot(x_ref[...], w_ref[...], preferred_element_type=jnp.float32)

    @pl.when(k == 0)
    def _():
        acc_ref[...] = part            # no zero-init + reload

    @pl.when(k > 0)
    def _():
        acc_ref[...] += part

    @pl.when(k == pl.num_programs(2) - 1)
    def _():
        acc = acc_ref[...]
        if with_stats:
            # Per-sublane partials: pure VPU adds (no cross-sublane XLU
            # reduction); the tiny (8, tn) partials are combined in JAX.
            a3 = acc.reshape(acc.shape[0] // 8, 8, acc.shape[1])
            sum_ref[...] = jnp.sum(a3, axis=0)
            sq_ref[...] = jnp.sum(a3 * a3, axis=0)
        if activation == "tanh":
            acc = jnp.tanh(acc)
        o_ref[...] = acc.astype(o_ref.dtype)


def bn_apply_relu_kernel(x_ref, scale_ref, shift_ref, o_ref):
    """Folded per-channel scale/shift + ReLU + downcast."""
    y = x_ref[...].astype(jnp.float32) * scale_ref[...] + shift_ref[...]
    o_ref[...] = jnp.maximum(y, 0.0).astype(o_ref.dtype)


# ---------------------------------------------------------------------------
# Pallas wrappers
# ---------------------------------------------------------------------------
def _gemm_tiles(M, N, K):
    big_vmem = _vmem_capacity_bytes() >= (96 << 20)   # v5e/v6e: 128 MiB
    tm = 512 if big_vmem else 256
    tn = 256
    tk_default = 512

    tm = min(tm, _round_up(M, 16))
    tn = min(tn, _round_up(N, 128))

    # Balanced K split (multiple of 128) to minimise zero padding.
    kp128 = _round_up(K, 128)
    ksteps = max(1, -(-kp128 // tk_default))
    tk = _round_up(-(-kp128 // ksteps), 128)

    # v7x megacore: keep a "parallel" grid axis of extent >= 2 when possible.
    if (_round_up(M, tm) // tm < 2 and _round_up(N, tn) // tn < 2 and M > 16):
        tm2 = _round_up(-(-M // 2), 16)
        if tm2 < tm:
            tm = tm2
    return tm, tn, tk


def pallas_matmul(x, w, *, activation=None, with_stats=False,
                  out_dtype=jnp.bfloat16):
    """(M, K) @ (K, N) with bf16 MXU inputs and f32 accumulation.

    Returns the padded (Mp, Np) output; if `with_stats`, also returns the
    per-row-tile per-sublane partial column sums / sums-of-squares of the f32
    pre-activation, each of shape (Mp // tm * 8, Np)."""
    M, K = x.shape
    K2, N = w.shape
    assert K == K2
    tm, tn, tk = _gemm_tiles(M, N, K)
    Mp, Np, Kp = _round_up(M, tm), _round_up(N, tn), _round_up(K, tk)

    xp = x.astype(jnp.bfloat16)
    wp = w.astype(jnp.bfloat16)
    if (Mp, Kp) != (M, K):
        xp = jnp.pad(xp, ((0, Mp - M), (0, Kp - K)))
    if (Kp, Np) != (K, N):
        wp = jnp.pad(wp, ((0, Kp - K), (0, Np - N)))

    n_m, n_n, n_k = Mp // tm, Np // tn, Kp // tk
    out_itemsize = jnp.dtype(out_dtype).itemsize

    if with_stats:
        out_shape = (jax.ShapeDtypeStruct((Mp, Np), out_dtype),
                     jax.ShapeDtypeStruct((n_m * 8, Np), jnp.float32),
                     jax.ShapeDtypeStruct((n_m * 8, Np), jnp.float32))
        out_specs = (pl.BlockSpec((tm, tn), lambda i, j, k: (i, j)),
                     pl.BlockSpec((8, tn), lambda i, j, k: (i, j)),
                     pl.BlockSpec((8, tn), lambda i, j, k: (i, j)))
    else:
        out_shape = jax.ShapeDtypeStruct((Mp, Np), out_dtype)
        out_specs = pl.BlockSpec((tm, tn), lambda i, j, k: (i, j))

    # Double-buffered bf16 inputs + output tile + f32 accumulator (+ stats).
    tile_bytes = (2 * 2 * (tm * tk + tk * tn)
                  + 2 * out_itemsize * tm * tn
                  + 4 * tm * tn
                  + (4 * 4 * 8 * tn if with_stats else 0))
    vmem_limit = int(min(max(2 * tile_bytes, 16 << 20),
                         max(_vmem_capacity_bytes() // 2, 16 << 20)))

    result = pl.pallas_call(
        functools.partial(matmul_kernel, activation=activation,
                          with_stats=with_stats),
        out_shape=out_shape,
        grid_spec=pltpu.PrefetchScalarGridSpec(
            num_scalar_prefetch=0,
            grid=(n_m, n_n, n_k),
            in_specs=[pl.BlockSpec((tm, tk), lambda i, j, k: (i, k)),
                      pl.BlockSpec((tk, tn), lambda i, j, k: (k, j))],
            out_specs=out_specs,
            scratch_shapes=[pltpu.VMEM((tm, tn), jnp.float32)]),
        compiler_params=pltpu.CompilerParams(
            dimension_semantics=("parallel", "parallel", "arbitrary"),
            vmem_limit_bytes=vmem_limit),
        cost_estimate=pl.CostEstimate(
            flops=2 * Mp * Np * Kp,
            transcendentals=Mp * Np if activation == "tanh" else 0,
            bytes_accessed=(2 * (Mp * Kp + Kp * Np) + out_itemsize * Mp * Np
                            + (8 * n_m * 8 * Np if with_stats else 0))),
    )(xp, wp)
    return result if with_stats else result


def bn_fold_stats(col_sum, col_sq, count, gamma, beta, eps=1e-5):
    """Fold batch statistics + affine params into per-channel scale/shift."""
    mean = col_sum / count
    var = jnp.maximum(col_sq / count - mean * mean, 0.0)     # clamp 1-pass var
    scale = gamma.astype(jnp.float32) * lax.rsqrt(var + eps)
    shift = beta.astype(jnp.float32) - mean * scale
    return scale, shift


def pallas_bn_apply_relu(x_pad, scale, shift, M, N, *, out_dtype=jnp.bfloat16):
    """BN apply: per-channel scale/shift + ReLU on the padded GEMM output."""
    Mp, Np = x_pad.shape
    sc = scale.reshape(1, -1).astype(jnp.float32)
    sh = shift.reshape(1, -1).astype(jnp.float32)
    if Np != N:
        sc = jnp.pad(sc, ((0, 0), (0, Np - N)))
        sh = jnp.pad(sh, ((0, 0), (0, Np - N)))

    tmb = min(512, Mp)
    while Mp % tmb:
        tmb -= 16
    tnb = min(1024, Np)
    while Np % tnb:
        tnb -= 128

    in_b = jnp.dtype(x_pad.dtype).itemsize
    out_b = jnp.dtype(out_dtype).itemsize
    vmem_limit = int(min(max(4 * (in_b + out_b) * tmb * tnb, 16 << 20),
                         max(_vmem_capacity_bytes() // 2, 16 << 20)))

    y = pl.pallas_call(
        bn_apply_relu_kernel,
        out_shape=jax.ShapeDtypeStruct((Mp, Np), out_dtype),
        grid_spec=pltpu.PrefetchScalarGridSpec(
            num_scalar_prefetch=0,
            grid=(Mp // tmb, Np // tnb),
            in_specs=[pl.BlockSpec((tmb, tnb), lambda i, j: (i, j)),
                      pl.BlockSpec((1, tnb), lambda i, j: (0, j)),
                      pl.BlockSpec((1, tnb), lambda i, j: (0, j))],
            out_specs=pl.BlockSpec((tmb, tnb), lambda i, j: (i, j))),
        compiler_params=pltpu.CompilerParams(
            dimension_semantics=("parallel", "parallel"),
            vmem_limit_bytes=vmem_limit),
        cost_estimate=pl.CostEstimate(
            flops=2 * Mp * Np, transcendentals=0,
            bytes_accessed=(in_b + out_b) * Mp * Np + 8 * Np),
    )(x_pad, sc, sh)
    return y[:M, :N]


# ---------------------------------------------------------------------------
# ConvTranspose2d(k=4, s=2, p=1) lowering: sub-pixel parity decomposition.
#   y[n, 2a+ph, 2b+pw, co] = sum_{i,j in {0,1}, ci}
#       xpad[n, a+ph+i, b+pw+j, ci] * W[ci, co, 3-ph-2i, 3-pw-2j]
# (xpad = x zero-padded by 1 on each spatial side.)
# ---------------------------------------------------------------------------
def deconv_weight_parity(W, ph, pw):
    """(4*Ci, Co) weight for parity (ph, pw); rows ordered (i, j, ci)."""
    return jnp.concatenate(
        [W[:, :, 3 - ph - 2 * i, 3 - pw - 2 * j]
         for i in range(2) for j in range(2)], axis=0)


def deconv_weight_union(W):
    """(9*Ci, 4*Co): all 4 parities packed into lane dim via 3x3 union patch.

    Rows ordered (i3, j3, ci); columns ordered (ph, pw, co)."""
    Ci, Co = W.shape[0], W.shape[1]
    zero = jnp.zeros((Ci, Co), W.dtype)
    rows = []
    for i3 in range(3):
        for j3 in range(3):
            cols = []
            for ph in range(2):
                for pw in range(2):
                    i, j = i3 - ph, j3 - pw
                    if 0 <= i <= 1 and 0 <= j <= 1:
                        cols.append(W[:, :, 3 - ph - 2 * i, 3 - pw - 2 * j])
                    else:
                        cols.append(zero)
            rows.append(jnp.concatenate(cols, axis=1))      # (Ci, 4*Co)
    return jnp.concatenate(rows, axis=0)                    # (9*Ci, 4*Co)


def parity_patches(hp, ph, pw):
    """hp: padded activation (N, H+2, W+2, Ci) -> (N*H*W, 4*Ci), (i, j, ci)."""
    n, hpad, wpad, ci = hp.shape
    h, w = hpad - 2, wpad - 2
    p = jnp.stack(
        [jnp.stack([hp[:, ph + i:ph + i + h, pw + j:pw + j + w, :]
                    for j in range(2)], axis=3)
         for i in range(2)], axis=3)                         # (N,H,W,2,2,Ci)
    return p.reshape(n * h * w, 4 * ci)


def union_patches(hp):
    """hp padded -> (N*H*W, 9*Ci), columns ordered (i3, j3, ci)."""
    n, hpad, wpad, ci = hp.shape
    h, w = hpad - 2, wpad - 2
    p = jnp.stack(
        [jnp.stack([hp[:, i:i + h, j:j + w, :] for j in range(3)], axis=3)
         for i in range(3)], axis=3)                         # (N,H,W,3,3,Ci)
    return p.reshape(n * h * w, 9 * ci)


def _interleave_parity(y6):
    """(N, H, W, 2[ph], 2[pw], Co) -> (N, 2H, 2W, Co)."""
    n, h, w = y6.shape[0], y6.shape[1], y6.shape[2]
    co = y6.shape[5]
    return jnp.transpose(y6, (0, 1, 3, 2, 4, 5)).reshape(n, 2 * h, 2 * w, co)


# ---------------------------------------------------------------------------
# Weight preparation (done once, outside the jitted forward).
# ---------------------------------------------------------------------------
def prepare_params(params, image_size, G_h_size, dtype=jnp.bfloat16):
    prep = {}
    mult = image_size // 8
    c = G_h_size * mult
    prep["w0"] = jnp.transpose(params["w0"], (0, 2, 3, 1)).reshape(
        -1, 16 * c).astype(dtype)
    prep["g0"], prep["b0"] = params["g0"], params["b0"]
    li = 1
    while mult > 1:
        c_out = G_h_size * (mult // 2)
        W = params[f"w{li}"]
        if c_out < _UNION_MAX_COUT:
            prep[f"w{li}"] = deconv_weight_union(W).astype(dtype)
        else:
            prep[f"w{li}"] = jnp.stack(
                [deconv_weight_parity(W, ph, pw)
                 for ph in range(2) for pw in range(2)], axis=0).astype(dtype)
        prep[f"g{li}"], prep[f"b{li}"] = params[f"g{li}"], params[f"b{li}"]
        mult //= 2
        li += 1
    prep[f"w{li}"] = deconv_weight_union(params[f"w{li}"]).astype(dtype)
    return prep


# ---------------------------------------------------------------------------
# DCGAN_G forward (Pallas path)
# ---------------------------------------------------------------------------
def dcgan_g_forward(z, prep, *, image_size, G_h_size, n_channels):
    Nb = z.shape[0]
    mult = image_size // 8

    # Layer 0: ConvTranspose2d(input_z, G_h*mult, 4, 1, 0) on a 1x1 input
    #          == matmul (Nb, Ci) @ (Ci, 16*Co), columns ordered (kh, kw, co).
    c = G_h_size * mult
    out, s, sq = pallas_matmul(z.astype(jnp.bfloat16), prep["w0"],
                               with_stats=True)
    N0 = 16 * c
    ch_sum = jnp.sum(s, axis=0)[:N0].reshape(16, c).sum(axis=0)
    ch_sq = jnp.sum(sq, axis=0)[:N0].reshape(16, c).sum(axis=0)
    scale, shift = bn_fold_stats(ch_sum, ch_sq, Nb * 16,
                                 prep["g0"], prep["b0"])
    h = pallas_bn_apply_relu(out, jnp.tile(scale, 16), jnp.tile(shift, 16),
                             Nb, N0)
    h = h.reshape(Nb, 4, 4, c)
    size, li = 4, 1

    # Upsampling blocks: ConvTranspose2d(k=4, s=2, p=1) + BN + ReLU.
    while mult > 1:
        c_out = G_h_size * (mult // 2)
        gamma, beta = prep[f"g{li}"], prep[f"b{li}"]
        hp = jnp.pad(h, ((0, 0), (1, 1), (1, 1), (0, 0)))
        M = Nb * size * size

        if c_out < _UNION_MAX_COUT:
            # Union pack: one GEMM, K = 9*Ci, N = 4*Co (lane-dense output).
            cols = union_patches(hp)
            out, s, sq = pallas_matmul(cols, prep[f"w{li}"], with_stats=True)
            Npk = 4 * c_out
            csum = jnp.sum(s, axis=0)[:Npk].reshape(4, c_out).sum(axis=0)
            csq = jnp.sum(sq, axis=0)[:Npk].reshape(4, c_out).sum(axis=0)
            scale, shift = bn_fold_stats(csum, csq, 4 * M, gamma, beta)
            y = pallas_bn_apply_relu(out, jnp.tile(scale, 4),
                                     jnp.tile(shift, 4), M, Npk)
            y6 = y.reshape(Nb, size, size, 2, 2, c_out)
        else:
            # Per-parity GEMMs: K = 4*Ci, lane-dense since Co >= 128.
            outs = []
            csum = jnp.zeros((c_out,), jnp.float32)
            csq = jnp.zeros((c_out,), jnp.float32)
            for ph in range(2):
                for pw in range(2):
                    cols = parity_patches(hp, ph, pw)
                    o_p, s, sq = pallas_matmul(
                        cols, prep[f"w{li}"][ph * 2 + pw], with_stats=True)
                    outs.append(o_p)
                    csum = csum + jnp.sum(s, axis=0)[:c_out]
                    csq = csq + jnp.sum(sq, axis=0)[:c_out]
            scale, shift = bn_fold_stats(csum, csq, 4 * M, gamma, beta)
            ys = [pallas_bn_apply_relu(o_p, scale, shift, M, c_out)
                  .reshape(Nb, size, size, c_out) for o_p in outs]
            y6 = jnp.stack([jnp.stack([ys[ph * 2 + pw] for pw in range(2)],
                                      axis=3) for ph in range(2)], axis=3)

        h = _interleave_parity(y6)               # bf16, post-BN interleave
        size *= 2
        mult //= 2
        li += 1

    # Final layer: ConvTranspose2d(G_h, n_channels, 4, 2, 1) + fused Tanh.
    hp = jnp.pad(h, ((0, 0), (1, 1), (1, 1), (0, 0)))
    cols = union_patches(hp)
    M = Nb * size * size
    out = pallas_matmul(cols, prep[f"w{li}"], activation="tanh",
                        with_stats=False, out_dtype=jnp.float32)
    out = out[:M, :4 * n_channels]
    y6 = out.reshape(Nb, size, size, 2, 2, n_channels)
    img = _interleave_parity(y6)                 # (Nb, 2H, 2W, Co)
    return jnp.transpose(img, (0, 3, 1, 2))      # NCHW like PyTorch


# ---------------------------------------------------------------------------
# Deterministic parameter init (same shapes as the PyTorch module).
# ---------------------------------------------------------------------------
def init_params(key, image_size, input_z, G_h_size, n_channels):
    params = {}
    mult = image_size // 8
    chans = [(input_z, G_h_size * mult)]
    m = mult
    while m > 1:
        chans.append((G_h_size * m, G_h_size * (m // 2)))
        m //= 2
    chans.append((G_h_size, n_channels))
    for i, (ci, co) in enumerate(chans):
        key, kw, kg, kb = jax.random.split(key, 4)
        params[f"w{i}"] = 0.05 * jax.random.normal(kw, (ci, co, 4, 4),
                                                   jnp.float32)
        if i < len(chans) - 1:   # last layer has no BatchNorm
            params[f"g{i}"] = 1.0 + 0.1 * jax.random.normal(kg, (co,),
                                                            jnp.float32)
            params[f"b{i}"] = 0.1 * jax.random.normal(kb, (co,), jnp.float32)
    return params


# ---------------------------------------------------------------------------
# Pure-JAX reference (independent math: lax.conv_general_dilated).
# ---------------------------------------------------------------------------
def reference_forward(z, params, image_size, G_h_size, n_channels, eps=1e-5):
    N, input_z = z.shape
    x = z.reshape(N, 1, 1, input_z)

    def deconv(x, W, stride, pad):
        Wf = jnp.transpose(W[:, :, ::-1, ::-1], (2, 3, 0, 1))   # HWIO
        return lax.conv_general_dilated(
            x, Wf, window_strides=(1, 1),
            padding=[(3 - pad, 3 - pad)] * 2,
            lhs_dilation=(stride, stride),
            dimension_numbers=("NHWC", "HWIO", "NHWC"),
            precision=lax.Precision.HIGHEST)

    def bn_relu(x, g, b):
        mean = jnp.mean(x, axis=(0, 1, 2), keepdims=True)
        var = jnp.mean((x - mean) ** 2, axis=(0, 1, 2), keepdims=True)
        return jnp.maximum((x - mean) * lax.rsqrt(var + eps) * g + b, 0.0)

    mult = image_size // 8
    x = bn_relu(deconv(x, params["w0"], 1, 0), params["g0"], params["b0"])
    li = 1
    while mult > 1:
        x = bn_relu(deconv(x, params[f"w{li}"], 2, 1),
                    params[f"g{li}"], params[f"b{li}"])
        mult //= 2
        li += 1
    x = jnp.tanh(deconv(x, params[f"w{li}"], 2, 1))
    return jnp.transpose(x, (0, 3, 1, 2))


# ---------------------------------------------------------------------------
if __name__ == "__main__":
    # Small config consistent with the module: image_size=32 -> mult=4.
    # Layers: z(64) -> 256@4x4 -> 128@8x8 (per-parity path)
    #              -> 64@16x16 (union path) -> 3@32x32 (union + tanh).
    image_size, input_z, G_h_size, n_channels, batch = 32, 64, 64, 3, 2

    key = jax.random.PRNGKey(0)
    kp, kz = jax.random.split(key)
    params = init_params(kp, image_size, input_z, G_h_size, n_channels)
    prep = prepare_params(params, image_size, G_h_size)
    z = jax.random.normal(kz, (batch, input_z), jnp.float32)

    fwd = jax.jit(functools.partial(dcgan_g_forward, image_size=image_size,
                                    G_h_size=G_h_size, n_channels=n_channels))
    out = jax.block_until_ready(fwd(z, prep))
    ref = jax.block_until_ready(
        reference_forward(z, params, image_size, G_h_size, n_channels))

    assert out.shape == (batch, n_channels, image_size, image_size)
    # bf16 MXU inputs (vs f32 HIGHEST reference) -> intentionally loose tol.
    np.testing.assert_allclose(np.asarray(out), np.asarray(ref),
                               atol=3e-2, rtol=3e-2)
    print("KERNEL_OK")
</pallas_src>

<mosaic_0001>
module attributes {stable_mosaic.version = 11 : i64} {
  func.func @matmul_kernel(%arg0: i32, %arg1: i32, %arg2: i32, %arg3: memref<16x128xbf16, #tpu.memory_space<vmem>>, %arg4: memref<128x256xbf16, #tpu.memory_space<vmem>>, %arg5: memref<16x256xbf16, #tpu.memory_space<vmem>>, %arg6: memref<8x256xf32, #tpu.memory_space<vmem>>, %arg7: memref<8x256xf32, #tpu.memory_space<vmem>>, %arg8: memref<16x256xf32, #tpu.memory_space<vmem>>) attributes {dimension_semantics = [#tpu.dimension_semantics<parallel>, #tpu.dimension_semantics<parallel>, #tpu.dimension_semantics<arbitrary>], iteration_bounds = array<i64: 1, 16, 1>, scalar_prefetch = 0 : i64, scratch_operands = 1 : i64, tpu.core_type = #tpu.core_type<tc>, window_params = [{transform_indices = @transform_0, window_bounds = array<i64: 16, 128>}, {transform_indices = @transform_1, window_bounds = array<i64: 128, 256>}, {transform_indices = @transform_2, window_bounds = array<i64: 16, 256>}, {transform_indices = @transform_3, window_bounds = array<i64: 8, 256>}, {transform_indices = @transform_4, window_bounds = array<i64: 8, 256>}]} {
    %c0 = arith.constant 0 : index
    %c0_0 = arith.constant 0 : index
    %0 = vector.load %arg3[%c0, %c0_0] : memref<16x128xbf16, #tpu.memory_space<vmem>>, vector<16x128xbf16>
    %c0_1 = arith.constant 0 : index
    %c0_2 = arith.constant 0 : index
    %1 = vector.load %arg4[%c0_1, %c0_2] : memref<128x256xbf16, #tpu.memory_space<vmem>>, vector<128x256xbf16>
    %cst = arith.constant dense<0.000000e+00> : vector<16x256xf32>
    %2 = tpu.matmul %0, %1, %cst {dimension_numbers = #tpu.dot_dimension_numbers<[1], [0], [0], [1], [0, 0, 1, 1], [], []>} : vector<16x128xbf16>, vector<128x256xbf16>, vector<16x256xf32> -> vector<16x256xf32>
    %c0_i32 = arith.constant 0 : i32
    %3 = arith.cmpi eq, %arg2, %c0_i32 : i32
    %4 = arith.extui %3 : i1 to i32
    %c0_i32_3 = arith.constant 0 : i32
    %5 = arith.cmpi ne, %4, %c0_i32_3 : i32
    scf.if %5 {
      %c0_8 = arith.constant 0 : index
      %c0_9 = arith.constant 0 : index
      %12 = vector.load %arg8[%c0_8, %c0_9] : memref<16x256xf32, #tpu.memory_space<vmem>>, vector<16x256xf32>
      tpu.vector_store %arg8[%c0_8, %c0_9], %2 {strides = array<i32>} : memref<16x256xf32, #tpu.memory_space<vmem>>, vector<16x256xf32>,
    } else {
    }
    %c0_i32_4 = arith.constant 0 : i32
    %6 = arith.cmpi sgt, %arg2, %c0_i32_4 : i32
    %7 = arith.extui %6 : i1 to i32
    %c0_i32_5 = arith.constant 0 : i32
    %8 = arith.cmpi ne, %7, %c0_i32_5 : i32
    scf.if %8 {
      %c0_8 = arith.constant 0 : index
      %c0_9 = arith.constant 0 : index
      %12 = vector.load %arg8[%c0_8, %c0_9] : memref<16x256xf32, #tpu.memory_space<vmem>>, vector<16x256xf32>
      %13 = arith.addf %12, %2 : vector<16x256xf32>
      %c0_10 = arith.constant 0 : index
      %c0_11 = arith.constant 0 : index
      %14 = vector.load %arg8[%c0_10, %c0_11] : memref<16x256xf32, #tpu.memory_space<vmem>>, vector<16x256xf32>
      tpu.vector_store %arg8[%c0_10, %c0_11], %13 {strides = array<i32>} : memref<16x256xf32, #tpu.memory_space<vmem>>, vector<16x256xf32>,
    } else {
    }
    %c0_i32_6 = arith.constant 0 : i32
    %9 = arith.cmpi eq, %arg2, %c0_i32_6 : i32
    %10 = arith.extui %9 : i1 to i32
    %c0_i32_7 = arith.constant 0 : i32
    %11 = arith.cmpi ne, %10, %c0_i32_7 : i32
    scf.if %11 {
      %c0_8 = arith.constant 0 : index
      %c0_9 = arith.constant 0 : index
      %12 = vector.load %arg8[%c0_8, %c0_9] : memref<16x256xf32, #tpu.memory_space<vmem>>, vector<16x256xf32>
      %13 = vector.shape_cast %12 : vector<16x256xf32> to vector<2x8x256xf32>
      %cst_10 = arith.constant dense<0.000000e+00> : vector<8x256xf32>
      %14 = vector.multi_reduction <add>, %13, %cst_10 [0] : vector<2x8x256xf32> to vector<8x256xf32>
      %c0_11 = arith.constant 0 : index
      %c0_12 = arith.constant 0 : index
      %15 = vector.load %arg6[%c0_11, %c0_12] : memref<8x256xf32, #tpu.memory_space<vmem>>, vector<8x256xf32>
      tpu.vector_store %arg6[%c0_11, %c0_12], %14 {strides = array<i32>} : memref<8x256xf32, #tpu.memory_space<vmem>>, vector<8x256xf32>,
      %16 = arith.mulf %13, %13 : vector<2x8x256xf32>
      %cst_13 = arith.constant dense<0.000000e+00> : vector<8x256xf32>
      %17 = vector.multi_reduction <add>, %16, %cst_13 [0] : vector<2x8x256xf32> to vector<8x256xf32>
      %c0_14 = arith.constant 0 : index
      %c0_15 = arith.constant 0 : index
      %18 = vector.load %arg7[%c0_14, %c0_15] : memref<8x256xf32, #tpu.memory_space<vmem>>, vector<8x256xf32>
      tpu.vector_store %arg7[%c0_14, %c0_15], %17 {strides = array<i32>} : memref<8x256xf32, #tpu.memory_space<vmem>>, vector<8x256xf32>,
      %19 = arith.truncf %12 : vector<16x256xf32> to vector<16x256xbf16>
      %c0_16 = arith.constant 0 : index
      %c0_17 = arith.constant 0 : index
      %20 = vector.load %arg5[%c0_16, %c0_17] : memref<16x256xbf16, #tpu.memory_space<vmem>>, vector<16x256xbf16>
      tpu.vector_store %arg5[%c0_16, %c0_17], %19 {strides = array<i32>} : memref<16x256xbf16, #tpu.memory_space<vmem>>, vector<16x256xbf16>,
    } else {
    }
    return
  }
  func.func @transform_0(%arg0: i32, %arg1: i32, %arg2: i32) -> (i32, i32) {
    %c0_i32 = arith.constant 0 : i32
    return %arg0, %arg2 : i32, i32
  }
  func.func @transform_1(%arg0: i32, %arg1: i32, %arg2: i32) -> (i32, i32) {
    %c0_i32 = arith.constant 0 : i32
    return %arg2, %arg1 : i32, i32
  }
  func.func @transform_2(%arg0: i32, %arg1: i32, %arg2: i32) -> (i32, i32) {
    %c0_i32 = arith.constant 0 : i32
    return %arg0, %arg1 : i32, i32
  }
  func.func @transform_3(%arg0: i32, %arg1: i32, %arg2: i32) -> (i32, i32) {
    %c0_i32 = arith.constant 0 : i32
    return %arg0, %arg1 : i32, i32
  }
  func.func @transform_4(%arg0: i32, %arg1: i32, %arg2: i32) -> (i32, i32) {
    %c0_i32 = arith.constant 0 : i32
    return %arg0, %arg1 : i32, i32
  }
}

module attributes {stable_mosaic.version = 11 : i64} {
  func.func @bn_apply_relu_kernel(%arg0: i32, %arg1: i32, %arg2: memref<16x1024xbf16, #tpu.memory_space<vmem>>, %arg3: memref<1x1024xf32, #tpu.memory_space<vmem>>, %arg4: memref<1x1024xf32, #tpu.memory_space<vmem>>, %arg5: memref<16x1024xbf16, #tpu.memory_space<vmem>>) attributes {dimension_semantics = [#tpu.dimension_semantics<parallel>, #tpu.dimension_semantics<parallel>], iteration_bounds = array<i64: 1, 4>, scalar_prefetch = 0 : i64, scratch_operands = 0 : i64, tpu.core_type = #tpu.core_type<tc>, window_params = [{transform_indices = @transform_0, window_bounds = array<i64: 16, 1024>}, {transform_indices = @transform_1, window_bounds = array<i64: 1, 1024>}, {transform_indices = @transform_2, window_bounds = array<i64: 1, 1024>}, {transform_indices = @transform_3, window_bounds = array<i64: 16, 1024>}]} {
    %c0 = arith.constant 0 : index
    %c0_0 = arith.constant 0 : index
    %0 = vector.load %arg2[%c0, %c0_0] : memref<16x1024xbf16, #tpu.memory_space<vmem>>, vector<16x1024xbf16>
    %1 = arith.extf %0 : vector<16x1024xbf16> to vector<16x1024xf32>
    %c0_1 = arith.constant 0 : index
    %c0_2 = arith.constant 0 : index
    %2 = vector.load %arg3[%c0_1, %c0_2] : memref<1x1024xf32, #tpu.memory_space<vmem>>, vector<1x1024xf32>
    %3 = vector.broadcast %2 : vector<1x1024xf32> to vector<16x1024xf32>
    %4 = arith.mulf %1, %3 : vector<16x1024xf32>
    %c0_3 = arith.constant 0 : index
    %c0_4 = arith.constant 0 : index
    %5 = vector.load %arg4[%c0_3, %c0_4] : memref<1x1024xf32, #tpu.memory_space<vmem>>, vector<1x1024xf32>
    %6 = vector.broadcast %5 : vector<1x1024xf32> to vector<16x1024xf32>
    %7 = arith.addf %4, %6 : vector<16x1024xf32>
    %cst = arith.constant 0.000000e+00 : f32
    %8 = vector.broadcast %cst : f32 to vector<16x1024xf32>
    %9 = arith.maximumf %7, %8 : vector<16x1024xf32>
    %10 = arith.truncf %9 : vector<16x1024xf32> to vector<16x1024xbf16>
    %c0_5 = arith.constant 0 : index
    %c0_6 = arith.constant 0 : index
    %11 = vector.load %arg5[%c0_5, %c0_6] : memref<16x1024xbf16, #tpu.memory_space<vmem>>, vector<16x1024xbf16>
    tpu.vector_store %arg5[%c0_5, %c0_6], %10 {strides = array<i32>} : memref<16x1024xbf16, #tpu.memory_space<vmem>>, vector<16x1024xbf16>,
    return
  }
  func.func @transform_0(%arg0: i32, %arg1: i32) -> (i32, i32) {
    %c0_i32 = arith.constant 0 : i32
    return %arg0, %arg1 : i32, i32
  }
  func.func @transform_1(%arg0: i32, %arg1: i32) -> (i32, i32) {
    %c0_i32 = arith.constant 0 : i32
    %c0_i32_0 = arith.constant 0 : i32
    return %c0_i32, %arg1 : i32, i32
  }
  func.func @transform_2(%arg0: i32, %arg1: i32) -> (i32, i32) {
    %c0_i32 = arith.constant 0 : i32
    %c0_i32_0 = arith.constant 0 : i32
    return %c0_i32, %arg1 : i32, i32
  }
  func.func @transform_3(%arg0: i32, %arg1: i32) -> (i32, i32) {
    %c0_i32 = arith.constant 0 : i32
    return %arg0, %arg1 : i32, i32
  }
}

module attributes {stable_mosaic.version = 11 : i64} {
  func.func @bn_apply_relu_kernel(%arg0: i32, %arg1: i32, %arg2: memref<32x128xbf16, #tpu.memory_space<vmem>>, %arg3: memref<1x128xf32, #tpu.memory_space<vmem>>, %arg4: memref<1x128xf32, #tpu.memory_space<vmem>>, %arg5: memref<32x128xbf16, #tpu.memory_space<vmem>>) attributes {dimension_semantics = [#tpu.dimension_semantics<parallel>, #tpu.dimension_semantics<parallel>], iteration_bounds = array<i64: 1, 1>, scalar_prefetch = 0 : i64, scratch_operands = 0 : i64, tpu.core_type = #tpu.core_type<tc>, window_params = [{transform_indices = @transform_0, window_bounds = array<i64: 32, 128>}, {transform_indices = @transform_1, window_bounds = array<i64: 1, 128>}, {transform_indices = @transform_2, window_bounds = array<i64: 1, 128>}, {transform_indices = @transform_3, window_bounds = array<i64: 32, 128>}]} {
    %c0 = arith.constant 0 : index
    %c0_0 = arith.constant 0 : index
    %0 = vector.load %arg2[%c0, %c0_0] : memref<32x128xbf16, #tpu.memory_space<vmem>>, vector<32x128xbf16>
    %1 = arith.extf %0 : vector<32x128xbf16> to vector<32x128xf32>
    %c0_1 = arith.constant 0 : index
    %c0_2 = arith.constant 0 : index
    %2 = vector.load %arg3[%c0_1, %c0_2] : memref<1x128xf32, #tpu.memory_space<vmem>>, vector<1x128xf32>
    %3 = vector.broadcast %2 : vector<1x128xf32> to vector<32x128xf32>
    %4 = arith.mulf %1, %3 : vector<32x128xf32>
    %c0_3 = arith.constant 0 : index
    %c0_4 = arith.constant 0 : index
    %5 = vector.load %arg4[%c0_3, %c0_4] : memref<1x128xf32, #tpu.memory_space<vmem>>, vector<1x128xf32>
    %6 = vector.broadcast %5 : vector<1x128xf32> to vector<32x128xf32>
    %7 = arith.addf %4, %6 : vector<32x128xf32>
    %cst = arith.constant 0.000000e+00 : f32
    %8 = vector.broadcast %cst : f32 to vector<32x128xf32>
    %9 = arith.maximumf %7, %8 : vector<32x128xf32>
    %10 = arith.truncf %9 : vector<32x128xf32> to vector<32x128xbf16>
    %c0_5 = arith.constant 0 : index
    %c0_6 = arith.constant 0 : index
    %11 = vector.load %arg5[%c0_5, %c0_6] : memref<32x128xbf16, #tpu.memory_space<vmem>>, vector<32x128xbf16>
    tpu.vector_store %arg5[%c0_5, %c0_6], %10 {strides = array<i32>} : memref<32x128xbf16, #tpu.memory_space<vmem>>, vector<32x128xbf16>,
    return
  }
  func.func @transform_0(%arg0: i32, %arg1: i32) -> (i32, i32) {
    %c0_i32 = arith.constant 0 : i32
    return %arg0, %arg1 : i32, i32
  }
  func.func @transform_1(%arg0: i32, %arg1: i32) -> (i32, i32) {
    %c0_i32 = arith.constant 0 : i32
    %c0_i32_0 = arith.constant 0 : i32
    return %c0_i32, %arg1 : i32, i32
  }
  func.func @transform_2(%arg0: i32, %arg1: i32) -> (i32, i32) {
    %c0_i32 = arith.constant 0 : i32
    %c0_i32_0 = arith.constant 0 : i32
    return %c0_i32, %arg1 : i32, i32
  }
  func.func @transform_3(%arg0: i32, %arg1: i32) -> (i32, i32) {
    %c0_i32 = arith.constant 0 : i32
    return %arg0, %arg1 : i32, i32
  }
}

module attributes {stable_mosaic.version = 11 : i64} {
  func.func @matmul_kernel(%arg0: i32, %arg1: i32, %arg2: i32, %arg3: memref<16x512xbf16, #tpu.memory_space<vmem>>, %arg4: memref<512x128xbf16, #tpu.memory_space<vmem>>, %arg5: memref<16x128xbf16, #tpu.memory_space<vmem>>, %arg6: memref<8x128xf32, #tpu.memory_space<vmem>>, %arg7: memref<8x128xf32, #tpu.memory_space<vmem>>, %arg8: memref<16x128xf32, #tpu.memory_space<vmem>>) attributes {dimension_semantics = [#tpu.dimension_semantics<parallel>, #tpu.dimension_semantics<parallel>, #tpu.dimension_semantics<arbitrary>], iteration_bounds = array<i64: 2, 1, 2>, scalar_prefetch = 0 : i64, scratch_operands = 1 : i64, tpu.core_type = #tpu.core_type<tc>, window_params = [{transform_indices = @transform_0, window_bounds = array<i64: 16, 512>}, {transform_indices = @transform_1, window_bounds = array<i64: 512, 128>}, {transform_indices = @transform_2, window_bounds = array<i64: 16, 128>}, {transform_indices = @transform_3, window_bounds = array<i64: 8, 128>}, {transform_indices = @transform_4, window_bounds = array<i64: 8, 128>}]} {
    %c0 = arith.constant 0 : index
    %c0_0 = arith.constant 0 : index
    %0 = vector.load %arg3[%c0, %c0_0] : memref<16x512xbf16, #tpu.memory_space<vmem>>, vector<16x512xbf16>
    %c0_1 = arith.constant 0 : index
    %c0_2 = arith.constant 0 : index
    %1 = vector.load %arg4[%c0_1, %c0_2] : memref<512x128xbf16, #tpu.memory_space<vmem>>, vector<512x128xbf16>
    %cst = arith.constant dense<0.000000e+00> : vector<16x128xf32>
    %2 = tpu.matmul %0, %1, %cst {dimension_numbers = #tpu.dot_dimension_numbers<[1], [0], [0], [1], [0, 0, 1, 1], [], []>} : vector<16x512xbf16>, vector<512x128xbf16>, vector<16x128xf32> -> vector<16x128xf32>
    %c0_i32 = arith.constant 0 : i32
    %3 = arith.cmpi eq, %arg2, %c0_i32 : i32
    %4 = arith.extui %3 : i1 to i32
    %c0_i32_3 = arith.constant 0 : i32
    %5 = arith.cmpi ne, %4, %c0_i32_3 : i32
    scf.if %5 {
      %c0_7 = arith.constant 0 : index
      %c0_8 = arith.constant 0 : index
      %12 = vector.load %arg8[%c0_7, %c0_8] : memref<16x128xf32, #tpu.memory_space<vmem>>, vector<16x128xf32>
      tpu.vector_store %arg8[%c0_7, %c0_8], %2 {strides = array<i32>} : memref<16x128xf32, #tpu.memory_space<vmem>>, vector<16x128xf32>,
    } else {
    }
    %c0_i32_4 = arith.constant 0 : i32
    %6 = arith.cmpi sgt, %arg2, %c0_i32_4 : i32
    %7 = arith.extui %6 : i1 to i32
    %c0_i32_5 = arith.constant 0 : i32
    %8 = arith.cmpi ne, %7, %c0_i32_5 : i32
    scf.if %8 {
      %c0_7 = arith.constant 0 : index
      %c0_8 = arith.constant 0 : index
      %12 = vector.load %arg8[%c0_7, %c0_8] : memref<16x128xf32, #tpu.memory_space<vmem>>, vector<16x128xf32>
      %13 = arith.addf %12, %2 : vector<16x128xf32>
      %c0_9 = arith.constant 0 : index
      %c0_10 = arith.constant 0 : index
      %14 = vector.load %arg8[%c0_9, %c0_10] : memref<16x128xf32, #tpu.memory_space<vmem>>, vector<16x128xf32>
      tpu.vector_store %arg8[%c0_9, %c0_10], %13 {strides = array<i32>} : memref<16x128xf32, #tpu.memory_space<vmem>>, vector<16x128xf32>,
    } else {
    }
    %c1_i32 = arith.constant 1 : i32
    %9 = arith.cmpi eq, %arg2, %c1_i32 : i32
    %10 = arith.extui %9 : i1 to i32
    %c0_i32_6 = arith.constant 0 : i32
    %11 = arith.cmpi ne, %10, %c0_i32_6 : i32
    scf.if %11 {
      %c0_7 = arith.constant 0 : index
      %c0_8 = arith.constant 0 : index
      %12 = vector.load %arg8[%c0_7, %c0_8] : memref<16x128xf32, #tpu.memory_space<vmem>>, vector<16x128xf32>
      %13 = vector.shape_cast %12 : vector<16x128xf32> to vector<2x8x128xf32>
      %cst_9 = arith.constant dense<0.000000e+00> : vector<8x128xf32>
      %14 = vector.multi_reduction <add>, %13, %cst_9 [0] : vector<2x8x128xf32> to vector<8x128xf32>
      %c0_10 = arith.constant 0 : index
      %c0_11 = arith.constant 0 : index
      %15 = vector.load %arg6[%c0_10, %c0_11] : memref<8x128xf32, #tpu.memory_space<vmem>>, vector<8x128xf32>
      tpu.vector_store %arg6[%c0_10, %c0_11], %14 {strides = array<i32>} : memref<8x128xf32, #tpu.memory_space<vmem>>, vector<8x128xf32>,
      %16 = arith.mulf %13, %13 : vector<2x8x128xf32>
      %cst_12 = arith.constant dense<0.000000e+00> : vector<8x128xf32>
      %17 = vector.multi_reduction <add>, %16, %cst_12 [0] : vector<2x8x128xf32> to vector<8x128xf32>
      %c0_13 = arith.constant 0 : index
      %c0_14 = arith.constant 0 : index
      %18 = vector.load %arg7[%c0_13, %c0_14] : memref<8x128xf32, #tpu.memory_space<vmem>>, vector<8x128xf32>
      tpu.vector_store %arg7[%c0_13, %c0_14], %17 {strides = array<i32>} : memref<8x128xf32, #tpu.memory_space<vmem>>, vector<8x128xf32>,
      %19 = arith.truncf %12 : vector<16x128xf32> to vector<16x128xbf16>
      %c0_15 = arith.constant 0 : index
      %c0_16 = arith.constant 0 : index
      %20 = vector.load %arg5[%c0_15, %c0_16] : memref<16x128xbf16, #tpu.memory_space<vmem>>, vector<16x128xbf16>
      tpu.vector_store %arg5[%c0_15, %c0_16], %19 {strides = array<i32>} : memref<16x128xbf16, #tpu.memory_space<vmem>>, vector<16x128xbf16>,
    } else {
    }
    return
  }
  func.func @transform_0(%arg0: i32, %arg1: i32, %arg2: i32) -> (i32, i32) {
    %c0_i32 = arith.constant 0 : i32
    return %arg0, %arg2 : i32, i32
  }
  func.func @transform_1(%arg0: i32, %arg1: i32, %arg2: i32) -> (i32, i32) {
    %c0_i32 = arith.constant 0 : i32
    return %arg2, %arg1 : i32, i32
  }
  func.func @transform_2(%arg0: i32, %arg1: i32, %arg2: i32) -> (i32, i32) {
    %c0_i32 = arith.constant 0 : i32
    return %arg0, %arg1 : i32, i32
  }
  func.func @transform_3(%arg0: i32, %arg1: i32, %arg2: i32) -> (i32, i32) {
    %c0_i32 = arith.constant 0 : i32
    return %arg0, %arg1 : i32, i32
  }
  func.func @transform_4(%arg0: i32, %arg1: i32, %arg2: i32) -> (i32, i32) {
    %c0_i32 = arith.constant 0 : i32
    return %arg0, %arg1 : i32, i32
  }
}

module attributes {stable_mosaic.version = 11 : i64} {
  func.func @matmul_kernel(%arg0: i32, %arg1: i32, %arg2: i32, %arg3: memref<64x384xbf16, #tpu.memory_space<vmem>>, %arg4: memref<384x256xbf16, #tpu.memory_space<vmem>>, %arg5: memref<64x256xbf16, #tpu.memory_space<vmem>>, %arg6: memref<8x256xf32, #tpu.memory_space<vmem>>, %arg7: memref<8x256xf32, #tpu.memory_space<vmem>>, %arg8: memref<64x256xf32, #tpu.memory_space<vmem>>) attributes {dimension_semantics = [#tpu.dimension_semantics<parallel>, #tpu.dimension_semantics<parallel>, #tpu.dimension_semantics<arbitrary>], iteration_bounds = array<i64: 2, 1, 3>, scalar_prefetch = 0 : i64, scratch_operands = 1 : i64, tpu.core_type = #tpu.core_type<tc>, window_params = [{transform_indices = @transform_0, window_bounds = array<i64: 64, 384>}, {transform_indices = @transform_1, window_bounds = array<i64: 384, 256>}, {transform_indices = @transform_2, window_bounds = array<i64: 64, 256>}, {transform_indices = @transform_3, window_bounds = array<i64: 8, 256>}, {transform_indices = @transform_4, window_bounds = array<i64: 8, 256>}]} {
    %c0 = arith.constant 0 : index
    %c0_0 = arith.constant 0 : index
    %0 = vector.load %arg3[%c0, %c0_0] : memref<64x384xbf16, #tpu.memory_space<vmem>>, vector<64x384xbf16>
    %c0_1 = arith.constant 0 : index
    %c0_2 = arith.constant 0 : index
    %1 = vector.load %arg4[%c0_1, %c0_2] : memref<384x256xbf16, #tpu.memory_space<vmem>>, vector<384x256xbf16>
    %cst = arith.constant dense<0.000000e+00> : vector<64x256xf32>
    %2 = tpu.matmul %0, %1, %cst {dimension_numbers = #tpu.dot_dimension_numbers<[1], [0], [0], [1], [0, 0, 1, 1], [], []>} : vector<64x384xbf16>, vector<384x256xbf16>, vector<64x256xf32> -> vector<64x256xf32>
    %c0_i32 = arith.constant 0 : i32
    %3 = arith.cmpi eq, %arg2, %c0_i32 : i32
    %4 = arith.extui %3 : i1 to i32
    %c0_i32_3 = arith.constant 0 : i32
    %5 = arith.cmpi ne, %4, %c0_i32_3 : i32
    scf.if %5 {
      %c0_7 = arith.constant 0 : index
      %c0_8 = arith.constant 0 : index
      %12 = vector.load %arg8[%c0_7, %c0_8] : memref<64x256xf32, #tpu.memory_space<vmem>>, vector<64x256xf32>
      tpu.vector_store %arg8[%c0_7, %c0_8], %2 {strides = array<i32>} : memref<64x256xf32, #tpu.memory_space<vmem>>, vector<64x256xf32>,
    } else {
    }
    %c0_i32_4 = arith.constant 0 : i32
    %6 = arith.cmpi sgt, %arg2, %c0_i32_4 : i32
    %7 = arith.extui %6 : i1 to i32
    %c0_i32_5 = arith.constant 0 : i32
    %8 = arith.cmpi ne, %7, %c0_i32_5 : i32
    scf.if %8 {
      %c0_7 = arith.constant 0 : index
      %c0_8 = arith.constant 0 : index
      %12 = vector.load %arg8[%c0_7, %c0_8] : memref<64x256xf32, #tpu.memory_space<vmem>>, vector<64x256xf32>
      %13 = arith.addf %12, %2 : vector<64x256xf32>
      %c0_9 = arith.constant 0 : index
      %c0_10 = arith.constant 0 : index
      %14 = vector.load %arg8[%c0_9, %c0_10] : memref<64x256xf32, #tpu.memory_space<vmem>>, vector<64x256xf32>
      tpu.vector_store %arg8[%c0_9, %c0_10], %13 {strides = array<i32>} : memref<64x256xf32, #tpu.memory_space<vmem>>, vector<64x256xf32>,
    } else {
    }
    %c2_i32 = arith.constant 2 : i32
    %9 = arith.cmpi eq, %arg2, %c2_i32 : i32
    %10 = arith.extui %9 : i1 to i32
    %c0_i32_6 = arith.constant 0 : i32
    %11 = arith.cmpi ne, %10, %c0_i32_6 : i32
    scf.if %11 {
      %c0_7 = arith.constant 0 : index
      %c0_8 = arith.constant 0 : index
      %12 = vector.load %arg8[%c0_7, %c0_8] : memref<64x256xf32, #tpu.memory_space<vmem>>, vector<64x256xf32>
      %13 = vector.shape_cast %12 : vector<64x256xf32> to vector<8x8x256xf32>
      %cst_9 = arith.constant dense<0.000000e+00> : vector<8x256xf32>
      %14 = vector.multi_reduction <add>, %13, %cst_9 [0] : vector<8x8x256xf32> to vector<8x256xf32>
      %c0_10 = arith.constant 0 : index
      %c0_11 = arith.constant 0 : index
      %15 = vector.load %arg6[%c0_10, %c0_11] : memref<8x256xf32, #tpu.memory_space<vmem>>, vector<8x256xf32>
      tpu.vector_store %arg6[%c0_10, %c0_11], %14 {strides = array<i32>} : memref<8x256xf32, #tpu.memory_space<vmem>>, vector<8x256xf32>,
      %16 = arith.mulf %13, %13 : vector<8x8x256xf32>
      %cst_12 = arith.constant dense<0.000000e+00> : vector<8x256xf32>
      %17 = vector.multi_reduction <add>, %16, %cst_12 [0] : vector<8x8x256xf32> to vector<8x256xf32>
      %c0_13 = arith.constant 0 : index
      %c0_14 = arith.constant 0 : index
      %18 = vector.load %arg7[%c0_13, %c0_14] : memref<8x256xf32, #tpu.memory_space<vmem>>, vector<8x256xf32>
      tpu.vector_store %arg7[%c0_13, %c0_14], %17 {strides = array<i32>} : memref<8x256xf32, #tpu.memory_space<vmem>>, vector<8x256xf32>,
      %19 = arith.truncf %12 : vector<64x256xf32> to vector<64x256xbf16>
      %c0_15 = arith.constant 0 : index
      %c0_16 = arith.constant 0 : index
      %20 = vector.load %arg5[%c0_15, %c0_16] : memref<64x256xbf16, #tpu.memory_space<vmem>>, vector<64x256xbf16>
      tpu.vector_store %arg5[%c0_15, %c0_16], %19 {strides = array<i32>} : memref<64x256xbf16, #tpu.memory_space<vmem>>, vector<64x256xbf16>,
    } else {
    }
    return
  }
  func.func @transform_0(%arg0: i32, %arg1: i32, %arg2: i32) -> (i32, i32) {
    %c0_i32 = arith.constant 0 : i32
    return %arg0, %arg2 : i32, i32
  }
  func.func @transform_1(%arg0: i32, %arg1: i32, %arg2: i32) -> (i32, i32) {
    %c0_i32 = arith.constant 0 : i32
    return %arg2, %arg1 : i32, i32
  }
  func.func @transform_2(%arg0: i32, %arg1: i32, %arg2: i32) -> (i32, i32) {
    %c0_i32 = arith.constant 0 : i32
    return %arg0, %arg1 : i32, i32
  }
  func.func @transform_3(%arg0: i32, %arg1: i32, %arg2: i32) -> (i32, i32) {
    %c0_i32 = arith.constant 0 : i32
    return %arg0, %arg1 : i32, i32
  }
  func.func @transform_4(%arg0: i32, %arg1: i32, %arg2: i32) -> (i32, i32) {
    %c0_i32 = arith.constant 0 : i32
    return %arg0, %arg1 : i32, i32
  }
}

module attributes {stable_mosaic.version = 11 : i64} {
  func.func @bn_apply_relu_kernel(%arg0: i32, %arg1: i32, %arg2: memref<128x256xbf16, #tpu.memory_space<vmem>>, %arg3: memref<1x256xf32, #tpu.memory_space<vmem>>, %arg4: memref<1x256xf32, #tpu.memory_space<vmem>>, %arg5: memref<128x256xbf16, #tpu.memory_space<vmem>>) attributes {dimension_semantics = [#tpu.dimension_semantics<parallel>, #tpu.dimension_semantics<parallel>], iteration_bounds = array<i64: 1, 1>, scalar_prefetch = 0 : i64, scratch_operands = 0 : i64, tpu.core_type = #tpu.core_type<tc>, window_params = [{transform_indices = @transform_0, window_bounds = array<i64: 128, 256>}, {transform_indices = @transform_1, window_bounds = array<i64: 1, 256>}, {transform_indices = @transform_2, window_bounds = array<i64: 1, 256>}, {transform_indices = @transform_3, window_bounds = array<i64: 128, 256>}]} {
    %c0 = arith.constant 0 : index
    %c0_0 = arith.constant 0 : index
    %0 = vector.load %arg2[%c0, %c0_0] : memref<128x256xbf16, #tpu.memory_space<vmem>>, vector<128x256xbf16>
    %1 = arith.extf %0 : vector<128x256xbf16> to vector<128x256xf32>
    %c0_1 = arith.constant 0 : index
    %c0_2 = arith.constant 0 : index
    %2 = vector.load %arg3[%c0_1, %c0_2] : memref<1x256xf32, #tpu.memory_space<vmem>>, vector<1x256xf32>
    %3 = vector.broadcast %2 : vector<1x256xf32> to vector<128x256xf32>
    %4 = arith.mulf %1, %3 : vector<128x256xf32>
    %c0_3 = arith.constant 0 : index
    %c0_4 = arith.constant 0 : index
    %5 = vector.load %arg4[%c0_3, %c0_4] : memref<1x256xf32, #tpu.memory_space<vmem>>, vector<1x256xf32>
    %6 = vector.broadcast %5 : vector<1x256xf32> to vector<128x256xf32>
    %7 = arith.addf %4, %6 : vector<128x256xf32>
    %cst = arith.constant 0.000000e+00 : f32
    %8 = vector.broadcast %cst : f32 to vector<128x256xf32>
    %9 = arith.maximumf %7, %8 : vector<128x256xf32>
    %10 = arith.truncf %9 : vector<128x256xf32> to vector<128x256xbf16>
    %c0_5 = arith.constant 0 : index
    %c0_6 = arith.constant 0 : index
    %11 = vector.load %arg5[%c0_5, %c0_6] : memref<128x256xbf16, #tpu.memory_space<vmem>>, vector<128x256xbf16>
    tpu.vector_store %arg5[%c0_5, %c0_6], %10 {strides = array<i32>} : memref<128x256xbf16, #tpu.memory_space<vmem>>, vector<128x256xbf16>,
    return
  }
  func.func @transform_0(%arg0: i32, %arg1: i32) -> (i32, i32) {
    %c0_i32 = arith.constant 0 : i32
    return %arg0, %arg1 : i32, i32
  }
  func.func @transform_1(%arg0: i32, %arg1: i32) -> (i32, i32) {
    %c0_i32 = arith.constant 0 : i32
    %c0_i32_0 = arith.constant 0 : i32
    return %c0_i32, %arg1 : i32, i32
  }
  func.func @transform_2(%arg0: i32, %arg1: i32) -> (i32, i32) {
    %c0_i32 = arith.constant 0 : i32
    %c0_i32_0 = arith.constant 0 : i32
    return %c0_i32, %arg1 : i32, i32
  }
  func.func @transform_3(%arg0: i32, %arg1: i32) -> (i32, i32) {
    %c0_i32 = arith.constant 0 : i32
    return %arg0, %arg1 : i32, i32
  }
}

module attributes {stable_mosaic.version = 11 : i64} {
  func.func @matmul_kernel(%arg0: i32, %arg1: i32, %arg2: i32, %arg3: memref<256x384xbf16, #tpu.memory_space<vmem>>, %arg4: memref<384x128xbf16, #tpu.memory_space<vmem>>, %arg5: memref<256x128xf32, #tpu.memory_space<vmem>>, %arg6: memref<256x128xf32, #tpu.memory_space<vmem>>) attributes {dimension_semantics = [#tpu.dimension_semantics<parallel>, #tpu.dimension_semantics<parallel>, #tpu.dimension_semantics<arbitrary>], iteration_bounds = array<i64: 2, 1, 2>, scalar_prefetch = 0 : i64, scratch_operands = 1 : i64, tpu.core_type = #tpu.core_type<tc>, window_params = [{transform_indices = @transform_0, window_bounds = array<i64: 256, 384>}, {transform_indices = @transform_1, window_bounds = array<i64: 384, 128>}, {transform_indices = @transform_2, window_bounds = array<i64: 256, 128>}]} {
    %c0 = arith.constant 0 : index
    %c0_0 = arith.constant 0 : index
    %0 = vector.load %arg3[%c0, %c0_0] : memref<256x384xbf16, #tpu.memory_space<vmem>>, vector<256x384xbf16>
    %c0_1 = arith.constant 0 : index
    %c0_2 = arith.constant 0 : index
    %1 = vector.load %arg4[%c0_1, %c0_2] : memref<384x128xbf16, #tpu.memory_space<vmem>>, vector<384x128xbf16>
    %cst = arith.constant dense<0.000000e+00> : vector<256x128xf32>
    %2 = tpu.matmul %0, %1, %cst {dimension_numbers = #tpu.dot_dimension_numbers<[1], [0], [0], [1], [0, 0, 1, 1], [], []>} : vector<256x384xbf16>, vector<384x128xbf16>, vector<256x128xf32> -> vector<256x128xf32>
    %c0_i32 = arith.constant 0 : i32
    %3 = arith.cmpi eq, %arg2, %c0_i32 : i32
    %4 = arith.extui %3 : i1 to i32
    %c0_i32_3 = arith.constant 0 : i32
    %5 = arith.cmpi ne, %4, %c0_i32_3 : i32
    scf.if %5 {
      %c0_7 = arith.constant 0 : index
      %c0_8 = arith.constant 0 : index
      %12 = vector.load %arg6[%c0_7, %c0_8] : memref<256x128xf32, #tpu.memory_space<vmem>>, vector<256x128xf32>
      tpu.vector_store %arg6[%c0_7, %c0_8], %2 {strides = array<i32>} : memref<256x128xf32, #tpu.memory_space<vmem>>, vector<256x128xf32>,
    } else {
    }
    %c0_i32_4 = arith.constant 0 : i32
    %6 = arith.cmpi sgt, %arg2, %c0_i32_4 : i32
    %7 = arith.extui %6 : i1 to i32
    %c0_i32_5 = arith.constant 0 : i32
    %8 = arith.cmpi ne, %7, %c0_i32_5 : i32
    scf.if %8 {
      %c0_7 = arith.constant 0 : index
      %c0_8 = arith.constant 0 : index
      %12 = vector.load %arg6[%c0_7, %c0_8] : memref<256x128xf32, #tpu.memory_space<vmem>>, vector<256x128xf32>
      %13 = arith.addf %12, %2 : vector<256x128xf32>
      %c0_9 = arith.constant 0 : index
      %c0_10 = arith.constant 0 : index
      %14 = vector.load %arg6[%c0_9, %c0_10] : memref<256x128xf32, #tpu.memory_space<vmem>>, vector<256x128xf32>
      tpu.vector_store %arg6[%c0_9, %c0_10], %13 {strides = array<i32>} : memref<256x128xf32, #tpu.memory_space<vmem>>, vector<256x128xf32>,
    } else {
    }
    %c1_i32 = arith.constant 1 : i32
    %9 = arith.cmpi eq, %arg2, %c1_i32 : i32
    %10 = arith.extui %9 : i1 to i32
    %c0_i32_6 = arith.constant 0 : i32
    %11 = arith.cmpi ne, %10, %c0_i32_6 : i32
    scf.if %11 {
      %c0_7 = arith.constant 0 : index
      %c0_8 = arith.constant 0 : index
      %12 = vector.load %arg6[%c0_7, %c0_8] : memref<256x128xf32, #tpu.memory_space<vmem>>, vector<256x128xf32>
      %13 = math.tanh %12 : vector<256x128xf32>
      %c0_9 = arith.constant 0 : index
      %c0_10 = arith.constant 0 : index
      %14 = vector.load %arg5[%c0_9, %c0_10] : memref<256x128xf32, #tpu.memory_space<vmem>>, vector<256x128xf32>
      tpu.vector_store %arg5[%c0_9, %c0_10], %13 {strides = array<i32>} : memref<256x128xf32, #tpu.memory_space<vmem>>, vector<256x128xf32>,
    } else {
    }
    return
  }
  func.func @transform_0(%arg0: i32, %arg1: i32, %arg2: i32) -> (i32, i32) {
    %c0_i32 = arith.constant 0 : i32
    return %arg0, %arg2 : i32, i32
  }
  func.func @transform_1(%arg0: i32, %arg1: i32, %arg2: i32) -> (i32, i32) {
    %c0_i32 = arith.constant 0 : i32
    return %arg2, %arg1 : i32, i32
  }
  func.func @transform_2(%arg0: i32, %arg1: i32, %arg2: i32) -> (i32, i32) {
    %c0_i32 = arith.constant 0 : i32
    return %arg0, %arg1 : i32, i32
  }
}

</mosaic_0001>

<bundles_post_ra>
// kernel: dcgan_g_forward.13
= control target key start
LH: loop header
LB: loop body
LE: loop exit
PB: predicated region body
PF: predicated region fallthrough
CT: control target
= control target key end

     0   :  { %s1018_s15 = smov 0   ;;  %s1020_s16 = smov 0   ;;  %s1122_s0 = inlined_call_operand.vmem [shape: bf16[16,128], index: 0, kind: input, shape index: {}]   ;;  %s1123_s1 = inlined_call_operand.vmem [shape: bf16[128,4096], index: 1, kind: input, shape index: {}]   ;;  %s1124_s2 = inlined_call_operand.vmem [shape: bf16[16,4096], index: 2, kind: output, shape index: {0}]   ;;  %s1125_s3 = inlined_call_operand.vmem [shape: f32[8,4096], index: 3, kind: output, shape index: {1}]   ;;  %s1126_s4 = inlined_call_operand.vmem [shape: f32[8,4096], index: 4, kind: output, shape index: {2}]  }
   0x1   :  { %s1022_s17 = smov 0   ;;  %s1024_s18 = smov 0  }
   0x2   :  { %s1026_s19 = smov 0  }
   0x3 LB: > { %s30_s20 = sadd.s32 1, %s986_s18  ;;  %s843_s21 = sadd.s32 4294967295, %s990_s19   ;;  %s990_s19 = sphi %s1026_s19, %s15_s19   ;;  %s986_s18 = sphi %s1024_s18, %s1131_s18   ;;  %s982_s17 = sphi %s1022_s17, %s1130_s17   ;;  %s978_s16 = sphi %s1020_s16, %s1129_s16   ;;  %s974_s15 = sphi %s1018_s15, %s1128_s15  }
   0x4   : > { %p32_p0 = scmp.ge.s32.totalorder %s30_s20, 16  ;;  %p78_p1 = scmp.ne.s32.totalorder %s978_s16, %s974_s15 }
   0x5   : > { %p79_p2 = scmp.eq.s32.totalorder %s990_s19, 0  ;;  %p110_p4 = scmp.eq.s32.totalorder %s843_s21, 15 }
   0x6   : > { %s1133_s20 = smov (%p32_p0, %s30_s20), 0  ;;  %s71_s23 = sadd.s32 1, %s978_s16 }
   0x7   : > { %p80_p3 = por %p79_p2, %p78_p1  ;;  %s67_s22 = ssub.s32 %s986_s18, %s1133_s20 }
   0x8   : > { %p69_p5 = scmp.eq.s32.totalorder %s67_s22, 0  ;;  %p1053_p6 = por %p110_p4, %p78_p1 }
   0x9   : > { %p847_p7 = scmp.ge.s32.totalorder %s990_s19, 16 }
   0xa   : > { %s1058_s25 = scalar_select %p69_p5, %s978_s16, %s71_s23  }
   0xb   : > { %200 = sbr.rel (%p847_p7) target bundleno = 38 (0x26), region = 20 }
  0x12   : > { %203 = sbr.rel (!%p80_p3) target bundleno = 38 (0x26), region = 24  ;;  %s205_s26 = sand.u32 (%p80_p3), 1, %s978_s16  }
  0x13   : > { %s882_s27 = sshll.u32 (%p80_p3), %s986_s18, 3  ;;  %s848_s28 = sshll.u32 (%p80_p3), %s205_s26, 7 }
  0x14   : > { %s1066_s5 = scalar_lea.vmem (%p80_p3), %s1123_s1, %s882_s27  ;;  %s207_s6 = scalar_lea.vmem (%p80_p3), [#allocation3], %s848_s28 }
  0x15   : > { %v271_v0 = vld [vmem:[%s1066_s5] sm:$0xff] (%p80_p3) }
  0x16   : > { %v273_v1 = vld [vmem:[%s1066_s5 + $0x80] sm:$0xff] (%p80_p3)  ;;  %272 = vst [vmem:[%s207_s6] sm:$0xff] (%p80_p3), %v271_v0 }
  0x17   : > { %v275_v2 = vld [vmem:[%s1066_s5 + $0x100] sm:$0xff] (%p80_p3)  ;;  %274 = vst [vmem:[%s207_s6 + $0x8] sm:$0xff] (%p80_p3), %v273_v1 }
  0x18   : > { %276 = vst [vmem:[%s207_s6 + $0x10] sm:$0xff] (%p80_p3), %v275_v2  ;;  %v277_v3 = vld [vmem:[%s1066_s5 + $0x180] sm:$0xff] (%p80_p3) }
  0x19   : > { %v279_v4 = vld [vmem:[%s1066_s5 + $0x200] sm:$0xff]  ;;  %278 = vst [vmem:[%s207_s6 + $0x18] sm:$0xff] %v277_v3 }
  0x1a   : > { %v281_v5 = vld [vmem:[%s1066_s5 + $0x280] sm:$0xff]  ;;  %280 = vst [vmem:[%s207_s6 + $0x20] sm:$0xff] %v279_v4 }
  0x1b   : > { %282 = vst [vmem:[%s207_s6 + $0x28] sm:$0xff] %v281_v5  ;;  %v283_v6 = vld [vmem:[%s1066_s5 + $0x300] sm:$0xff] }
  0x1c   : > { %v285_v7 = vld [vmem:[%s1066_s5 + $0x380] sm:$0xff]  ;;  %284 = vst [vmem:[%s207_s6 + $0x30] sm:$0xff] %v283_v6 }
  0x1d   : > { %v287_v8 = vld [vmem:[%s1066_s5 + $0x400] sm:$0xff]  ;;  %286 = vst [vmem:[%s207_s6 + $0x38] sm:$0xff] %v285_v7 }
  0x1e   : > { %288 = vst [vmem:[%s207_s6 + $0x40] sm:$0xff] %v287_v8  ;;  %v289_v9 = vld [vmem:[%s1066_s5 + $0x480] sm:$0xff] }
  0x1f   : > { %v291_v10 = vld [vmem:[%s1066_s5 + $0x500] sm:$0xff]  ;;  %290 = vst [vmem:[%s207_s6 + $0x48] sm:$0xff] %v289_v9 }
  0x20   : > { %v293_v11 = vld [vmem:[%s1066_s5 + $0x580] sm:$0xff]  ;;  %292 = vst [vmem:[%s207_s6 + $0x50] sm:$0xff] %v291_v10 }
  0x21   : > { %294 = vst [vmem:[%s207_s6 + $0x58] sm:$0xff] %v293_v11  ;;  %v295_v12 = vld [vmem:[%s1066_s5 + $0x600] sm:$0xff] }
  0x22   : > { %v297_v13 = vld [vmem:[%s1066_s5 + $0x680] sm:$0xff]  ;;  %296 = vst [vmem:[%s207_s6 + $0x60] sm:$0xff] %v295_v12 }
  0x23   : > { %v299_v14 = vld [vmem:[%s1066_s5 + $0x700] sm:$0xff]  ;;  %298 = vst [vmem:[%s207_s6 + $0x68] sm:$0xff] %v297_v13 }
  0x24   : > { %300 = vst [vmem:[%s207_s6 + $0x70] sm:$0xff] %v299_v14  ;;  %v301_v15 = vld [vmem:[%s1066_s5 + $0x780] sm:$0xff] }
  0x25   : > { %302 = vst [vmem:[%s207_s6 + $0x78] sm:$0xff] %v301_v15 }
  0x26 PF: > { %p851_p8 = scmp.ge.s32.totalorder %s990_s19, 1  ;;  %p307_p9 = scmp.lt.s32.totalorder %s990_s19, 17 }
  0x28   : > { %p308_p10 = pnand %p851_p8, %p307_p9 }
  0x29   : > { %s314_s7 = sand.u32 (!%p308_p10), 1, %s974_s15   ;;  %v992_v16 = vmov (!%p308_p10), 0   ;;  %v951_v33 = vld [vmem:[%s1122_s0] sm:$0xff] (!%p308_p10)   ;;  %s854_s12 = sshll.u32 (!%p308_p10), %s982_s17, 1 }
  0x2a   : > { %311 = sbr.rel (%p308_p10) target bundleno = 303 (0x12f), region = 62  ;;  %s852_s8 = sshll.u32 (!%p308_p10), %s314_s7, 7  ;;  %534 = vmatprep.mubr.bf16.mxu0 (!%p308_p10), %v992_v16 }
  0x2b   : > { %s316_s9 = scalar_lea.vmem (!%p308_p10), [#allocation3], %s852_s8  ;;  %p380_p11 = scmp.lt.s32.totalorder (!%p308_p10), %s854_s12, 31 }
  0x2c   : > { %v927_v17 = vld [vmem:[%s316_s9 + $0x4] ss:$8 sps:$4 sm:$0xff] (!%p308_p10)   ;;  %v929_v18 = vld [vmem:[%s316_s9] ss:$8 sps:$4 sm:$0xff] (!%p308_p10)   ;;  %v930_v19 = vld [vmem:[%s316_s9 + $0x14] ss:$8 sps:$4 sm:$0xff] (!%p308_p10)  }
  0x2d   : > { %502 = vmatprep.subr.bf16.mxu0 (!%p308_p10), %v927_v17  ;;  %v932_v20 = vld [vmem:[%s316_s9 + $0x10] ss:$8 sps:$4 sm:$0xff] (!%p308_p10)   ;;  %v933_v21 = vld [vmem:[%s316_s9 + $0x24] ss:$8 sps:$4 sm:$0xff] (!%p308_p10)   ;;  %v935_v22 = vld [vmem:[%s316_s9 + $0x20] ss:$8 sps:$4 sm:$0xff] (!%p308_p10)  }
  0x2e   : > { %503 = vmatpush1.bf16.msra.mxu0 (!%p308_p10), %v929_v18  ;;  %v936_v23 = vld [vmem:[%s316_s9 + $0x34] ss:$8 sps:$4 sm:$0xff] (!%p308_p10)   ;;  %v938_v24 = vld [vmem:[%s316_s9 + $0x30] ss:$8 sps:$4 sm:$0xff] (!%p308_p10)   ;;  %v939_v25 = vld [vmem:[%s316_s9 + $0x44] ss:$8 sps:$4 sm:$0xff] (!%p308_p10)  }
  0x2f   : > { %504 = vmatprep.subr.bf16.mxu0 (!%p308_p10), %v930_v19  ;;  %v941_v26 = vld [vmem:[%s316_s9 + $0x40] ss:$8 sps:$4 sm:$0xff] (!%p308_p10)   ;;  %v942_v27 = vld [vmem:[%s316_s9 + $0x54] ss:$8 sps:$4 sm:$0xff] (!%p308_p10)   ;;  %v944_v28 = vld [vmem:[%s316_s9 + $0x50] ss:$8 sps:$4 sm:$0xff] (!%p308_p10)  }
  0x30   : > { %v945_v29 = vld [vmem:[%s316_s9 + $0x64] ss:$8 sps:$4 sm:$0xff] (!%p308_p10)   ;;  %v947_v30 = vld [vmem:[%s316_s9 + $0x60] ss:$8 sps:$4 sm:$0xff] (!%p308_p10)   ;;  %v948_v31 = vld [vmem:[%s316_s9 + $0x74] ss:$8 sps:$4 sm:$0xff] (!%p308_p10)  }
  0x31   : > { %v950_v32 = vld [vmem:[%s316_s9 + $0x70] ss:$8 sps:$4 sm:$0xff]   ;;  %s1135_s12 = smov (!%p380_p11, %s854_s12), 31  ;;  %s853_s13 = sshll.u32 %s314_s7, 4 }
  0x32   : > { %505 = vmatpush1.bf16.msra.mxu0 %v932_v20  ;;  %s855_s14 = sshll.u32 %s1135_s12, 3  ;;  %s341_s15 = scalar_lea.vmem [#allocation4], %s853_s13 }
  0x33   : > { %506 = vmatprep.subr.bf16.mxu0 %v933_v21  ;;  %s385_s23 = scalar_lea.vmem %s1125_s3, %s855_s14  ;;  %s395_s28 = scalar_lea.vmem %s1126_s4, %s855_s14 }
  0x34   : > { %s885_s29 = sshll.u32 (%p1053_p6), %s982_s17, 3 }
  0x35   : > { %s632_s6 = scalar_lea.vmem (%p1053_p6), %s1124_s2, %s885_s29 }
  0x36   : > { %507 = vmatpush1.bf16.msra.mxu0 %v935_v22 }
  0x37   : > { %508 = vmatprep.subr.bf16.mxu0 %v936_v23 }
  0x3a   : > { %509 = vmatpush1.bf16.msra.mxu0 %v938_v24 }
  0x3b   : > { %510 = vmatprep.subr.bf16.mxu0 %v939_v25 }
  0x3e   : > { %511 = vmatpush1.bf16.msra.mxu0 %v941_v26 }
  0x3f   : > { %512 = vmatprep.subr.bf16.mxu0 %v942_v27 }
  0x42   : > { %513 = vmatpush1.bf16.msra.mxu0 %v944_v28 }
  0x43   : > { %514 = vmatprep.subr.bf16.mxu0 %v945_v29 }
  0x46   : > { %515 = vmatpush1.bf16.msra.mxu0 %v947_v30 }
  0x47   : > { %516 = vmatprep.subr.bf16.mxu0 %v948_v31 }
  0x4a   : > { %517 = vmatpush1.bf16.msra.mxu0 %v950_v32 }
  0x4d   : > { %535 = vmatmul.mubr.bf16.vlgmr.msra.gmra.mrb[0].mxu0 %v951_v33 }
 0x120   : > { %v536_v34 = vpop.f32.mrb[0].mxu0 }
 0x121   : > { %v538_v35 = vpop.f32.mrb[1].mxu0  ;;  %v580_v38 = vmul.f32 %v536_v34, %v536_v34 }
 0x122   : > { %v883_v36 = vpack.c.bf16 %v538_v35, %v536_v34  ;;  %v540_v37 = vpop.f32.mrb[2].mxu0  ;;  %v581_v42 = vmul.f32 %v538_v35, %v538_v35  ;;  %626 = sbr.rel (!%p1053_p6) target bundleno = 303 (0x12f), region = 82 }
 0x123   : > { %v576_v39 = vadd.f32 %v540_v37, %v536_v34  ;;  %v582_v40 = vmul.f32 %v540_v37, %v540_v37  ;;  %v542_v41 = vpop.f32.mrb[3].mxu0 }
 0x124   : > { %v577_v43 = vadd.f32 %v542_v41, %v538_v35  ;;  %v583_v44 = vmul.f32 %v542_v41, %v542_v41  ;;  %v884_v45 = vpack.c.bf16 %v542_v41, %v540_v37  ;;  %600 = vst [vmem:[%s341_s15] sm:$0xff] %v883_v36 }
 0x125   : > { %v584_v46 = vadd.f32 %v582_v40, %v580_v38  ;;  %578 = vst [vmem:[%s385_s23] sm:$0xff] %v576_v39 }
 0x126   : > { %579 = vst [vmem:[%s385_s23 + $0x8] sm:$0xff] %v577_v43  ;;  %v585_v47 = vadd.f32 %v583_v44, %v581_v42  ;;  %601 = vst [vmem:[%s341_s15 + $0x8] sm:$0xff] %v884_v45 }
 0x127   : > { %586 = vst [vmem:[%s395_s28] sm:$0xff] %v584_v46 }
 0x128   : > { %587 = vst [vmem:[%s395_s28 + $0x8] sm:$0xff] %v585_v47 }
 0x12b   : > { %v662_v48 = vld [vmem:[%s341_s15] sm:$0xff] }
 0x12c   : > { %663 = vst [vmem:[%s632_s6] sm:$0xff] %v662_v48 }
 0x12d   : > { %v664_v49 = vld [vmem:[%s341_s15 + $0x8] sm:$0xff] }
 0x12e   : > { %665 = vst [vmem:[%s632_s6 + $0x80] sm:$0xff] %v664_v49 }
 0x12f PF: > { %s15_s19 = sadd.s32 1, %s990_s19   ;;  %s1128_s15 = smov %s978_s16 }
 0x130   : > { %p12_p12 = scmp.ge.s32.totalorder %s15_s19, 18   ;;  %s1129_s16 = smov %s1058_s25 }
 0x131   : > { %s1130_s17 = smov %s986_s18  ;;  %s1131_s18 = smov %s1133_s20 }
 0x132   :  { %14 = sbr.rel (!%p12_p12) target bundleno = 3 (0x3), region = 178 }

// kernel: dcgan_g_forward.14
= control target key start
LH: loop header
LB: loop body
LE: loop exit
PB: predicated region body
PF: predicated region fallthrough
CT: control target
= control target key end

     0   :  { %s740_s12 = smov 0   ;;  %s742_s13 = smov 0   ;;  %s869_s0 = inlined_call_operand.vmem [shape: bf16[16,4096], index: 0, kind: input, shape index: {}]   ;;  %s870_s1 = inlined_call_operand.vmem [shape: f32[1,4096], index: 1, kind: input, shape index: {}]   ;;  %s871_s2 = inlined_call_operand.vmem [shape: f32[1,4096], index: 2, kind: input, shape index: {}]   ;;  %s872_s3 = inlined_call_operand.vmem [shape: bf16[16,4096], index: 3, kind: output, shape index: {}]  }
   0x1   :  { %s744_s14 = smov 0   ;;  %s746_s15 = smov 0  }
   0x2   :  { %s748_s16 = smov 0  }
   0x3 LB: > { %s22_s17 = sadd.s32 1, %s714_s15  ;;  %s605_s18 = sadd.s32 4294967295, %s718_s16   ;;  %s718_s16 = sphi %s748_s16, %s13_s16   ;;  %s714_s15 = sphi %s746_s15, %s877_s15   ;;  %s710_s14 = sphi %s744_s14, %s876_s14   ;;  %s706_s13 = sphi %s742_s13, %s875_s13   ;;  %s702_s12 = sphi %s740_s12, %s874_s12  }
   0x4   : > { %p23_p0 = scmp.ge.s32.totalorder %s22_s17, 4  ;;  %p41_p1 = scmp.ne.s32.totalorder %s706_s13, %s702_s12 }
   0x5   : > { %p42_p2 = scmp.eq.s32.totalorder %s718_s16, 0  ;;  %p125_p4 = scmp.eq.s32.totalorder %s605_s18, 3 }
   0x6   : > { %s879_s17 = smov (%p23_p0, %s22_s17), 0  ;;  %s34_s20 = sadd.s32 1, %s706_s13 }
   0x7   : > { %p43_p3 = por %p42_p2, %p41_p1  ;;  %s30_s19 = ssub.s32 %s714_s15, %s879_s17 }
   0x8   : > { %p32_p5 = scmp.eq.s32.totalorder %s30_s19, 0  ;;  %p775_p6 = por %p125_p4, %p41_p1 }
   0x9   : > { %p608_p7 = scmp.ge.s32.totalorder %s718_s16, 4 }
   0xa   : > { %s780_s22 = scalar_select %p32_p5, %s706_s13, %s34_s20  }
   0xb   : > { %147 = sbr.rel (%p608_p7) target bundleno = 26 (0x1a), region = 16 }
  0x12   : > { %150 = sbr.rel (!%p43_p3) target bundleno = 26 (0x1a), region = 20  ;;  %s152_s23 = sand.u32 (%p43_p3), 1, %s706_s13  }
  0x13   : > { %s630_s24 = sshll.u32 (%p43_p3), %s714_s15, 5  ;;  %s609_s25 = sshll.u32 (%p43_p3), %s152_s23, 6 }
  0x14   : > { %s160_s28 = scalar_lea.vmem (%p43_p3), %s869_s0, %s630_s24  ;;  %s154_s29 = scalar_lea.vmem (%p43_p3), [#allocation2], %s609_s25 }
  0x15   : > { %v173_v0 = vld [vmem:[%s160_s28] sm:$0xff] (%p43_p3)  ;;  %v175_v1 = vld [vmem:[%s160_s28 + $0x8] sm:$0xff] (%p43_p3)  ;;  %v177_v2 = vld [vmem:[%s160_s28 + $0x10] sm:$0xff] (%p43_p3) }
  0x16   : > { %174 = vst [vmem:[%s154_s29] sm:$0xff] (%p43_p3), %v173_v0  ;;  %176 = vst [vmem:[%s154_s29 + $0x8] sm:$0xff] (%p43_p3), %v175_v1  ;;  %v179_v3 = vld [vmem:[%s160_s28 + $0x18] sm:$0xff] (%p43_p3)  ;;  %v181_v4 = vld [vmem:[%s160_s28 + $0x80] sm:$0xff] (%p43_p3) }
  0x17   : > { %178 = vst [vmem:[%s154_s29 + $0x10] sm:$0xff] (%p43_p3), %v177_v2  ;;  %v183_v5 = vld [vmem:[%s160_s28 + $0x88] sm:$0xff] (%p43_p3)  ;;  %180 = vst [vmem:[%s154_s29 + $0x18] sm:$0xff] (%p43_p3), %v179_v3  ;;  %v185_v6 = vld [vmem:[%s160_s28 + $0x90] sm:$0xff] (%p43_p3) }
  0x18   : > { %182 = vst [vmem:[%s154_s29 + $0x20] sm:$0xff] (%p43_p3), %v181_v4  ;;  %184 = vst [vmem:[%s154_s29 + $0x28] sm:$0xff] (%p43_p3), %v183_v5  ;;  %v187_v7 = vld [vmem:[%s160_s28 + $0x98] sm:$0xff] (%p43_p3) }
  0x19   : > { %186 = vst [vmem:[%s154_s29 + $0x30] sm:$0xff] %v185_v6  ;;  %188 = vst [vmem:[%s154_s29 + $0x38] sm:$0xff] %v187_v7 }
  0x1a PF: > { %p612_p8 = scmp.ge.s32.totalorder %s718_s16, 1  ;;  %p209_p9 = scmp.lt.s32.totalorder %s718_s16, 5 }
  0x1c   : > { %p210_p10 = pnand %p612_p8, %p209_p9 }
  0x1d   : > { %s216_s30 = sand.u32 (!%p210_p10), 1, %s702_s12   ;;  %s615_s4 = sshll.u32 (!%p210_p10), %s710_s14, 3  ;;  %v286_v8 = vlaneseq (!%p210_p10) }
  0x1e   : > { %213 = sbr.rel (%p210_p10) target bundleno = 74 (0x4a), region = 51  ;;  %s792_s5 = sshll.u32 (!%p210_p10), %s216_s30, 6 }
  0x1f   : > { %p249_p11 = scmp.lt.s32.totalorder (!%p210_p10), %s615_s4, 31  ;;  %v794_v9 = vshrl.u32 (!%p210_p10), %v286_v8, 7  ;;  %s797_s6 = scalar_lea.vmem (!%p210_p10), [#allocation2], %s792_s5 }
  0x20   : > { %v260_v10 = vld [vmem:[%s797_s6] sm:$0xff] (!%p210_p10)  ;;  %v261_v11 = vld [vmem:[%s797_s6 + $0x8] sm:$0xff] (!%p210_p10)  ;;  %v262_v12 = vld [vmem:[%s797_s6 + $0x10] sm:$0xff] (!%p210_p10)  ;;  %s827_s18 = scalar_lea.vmem (!%p210_p10), [#allocation3], %s792_s5 }
  0x21   : > { %v268_v13 = vunpack.c.l.bf16 (!%p210_p10), %v260_v10  ;;  %v269_v14 = vunpack.c.h.bf16 (!%p210_p10), %v260_v10  ;;  %v288_v15 = vsub.s32 (!%p210_p10), 0, %v794_v9  ;;  %v292_v16 = vsub.s32 (!%p210_p10), 1, %v794_v9  ;;  %v263_v39 = vld [vmem:[%s797_s6 + $0x18] sm:$0xff] (!%p210_p10)  ;;  %v264_v52 = vld [vmem:[%s797_s6 + $0x20] sm:$0xff] (!%p210_p10)  ;;  %v265_v1 = vld [vmem:[%s797_s6 + $0x28] sm:$0xff] (!%p210_p10) }
  0x22   : > { %v270_v17 = vunpack.c.l.bf16 (!%p210_p10), %v261_v11  ;;  %v271_v18 = vunpack.c.h.bf16 (!%p210_p10), %v261_v11  ;;  %v296_v19 = vsub.s32 (!%p210_p10), 2, %v794_v9  ;;  %v300_v20 = vsub.s32 (!%p210_p10), 3, %v794_v9  ;;  %v266_v6 = vld [vmem:[%s797_s6 + $0x30] sm:$0xff] (!%p210_p10) }
  0x23   : > { %v272_v23 = vunpack.c.l.bf16 (!%p210_p10), %v262_v12  ;;  %v273_v24 = vunpack.c.h.bf16 (!%p210_p10), %v262_v12  ;;  %v304_v25 = vsub.s32 (!%p210_p10), 4, %v794_v9  ;;  %v308_v26 = vsub.s32 (!%p210_p10), 5, %v794_v9 }
  0x24   : > { %v274_v50 = vunpack.c.l.bf16 (!%p210_p10), %v263_v39  ;;  %v275_v51 = vunpack.c.h.bf16 (!%p210_p10), %v263_v39  ;;  %v312_v59 = vsub.s32 (!%p210_p10), 6, %v794_v9  ;;  %v316_v60 = vsub.s32 (!%p210_p10), 7, %v794_v9 }
  0x25   : > { %s881_s4 = smov (!%p249_p11, %s615_s4), 31  ;;  %v276_v0 = vunpack.c.l.bf16 %v264_v52  ;;  %v277_v10 = vunpack.c.h.bf16 %v264_v52  ;;  %s639_s19 = sshll.u32 (%p775_p6), %s710_s14, 5 }
  0x26   : > { %s251_s9 = scalar_lea.vmem %s870_s1, %s881_s4  ;;  %s256_s12 = scalar_lea.vmem %s871_s2, %s881_s4 }
  0x27   : > { %v284_v21 = vld [vmem:[%s251_s9] sm:$0xff]  ;;  %s484_s24 = scalar_lea.vmem (%p775_p6), %s872_s3, %s639_s19 }
  0x28   : > { %v342_v22 = vld [vmem:[%s256_s12] sm:$0xff]  ;;  %v289_v27 = vrot.slane %v284_v21, %v288_v15  ;;  %v293_v28 = vrot.slane %v284_v21, %v292_v16  ;;  %v297_v31 = vrot.slane %v284_v21, %v296_v19  ;;  %v301_v32 = vrot.slane %v284_v21, %v300_v20 }
  0x29   : > { %v347_v29 = vrot.slane %v342_v22, %v288_v15  ;;  %v351_v30 = vrot.slane %v342_v22, %v292_v16  ;;  %v814_v33 = vrot.slane %v342_v22, %v296_v19  ;;  %v816_v34 = vrot.slane %v342_v22, %v300_v20 }
  0x2a   : > { %v326_v35 = vmul.f32 %v289_v27, %v268_v13  ;;  %v327_v36 = vmul.f32 %v293_v28, %v269_v14  ;;  %v305_v37 = vrot.slane %v284_v21, %v304_v25  ;;  %v309_v38 = vrot.slane %v284_v21, %v308_v26 }
  0x2b   : > { %v328_v40 = vmul.f32 %v297_v31, %v270_v17  ;;  %v329_v41 = vmul.f32 %v301_v32, %v271_v18  ;;  %v363_v42 = vrot.slane %v342_v22, %v304_v25  ;;  %v367_v43 = vrot.slane %v342_v22, %v308_v26 }
  0x2c   : > { %v384_v44 = vadd.f32 %v347_v29, %v326_v35  ;;  %v385_v45 = vadd.f32 %v351_v30, %v327_v36  ;;  %v330_v46 = vmul.f32 %v305_v37, %v272_v23  ;;  %v331_v47 = vmul.f32 %v309_v38, %v273_v24  ;;  %v267_v24 = vld [vmem:[%s797_s6 + $0x38] sm:$0xff] }
  0x2d   : > { %v386_v48 = vadd.f32 %v814_v33, %v328_v40  ;;  %v387_v49 = vadd.f32 %v816_v34, %v329_v41  ;;  %v313_v3 = vrot.slane %v284_v21, %v312_v59  ;;  %v317_v4 = vrot.slane %v284_v21, %v316_v60 }
  0x2e   : > { %v400_v53 = vmax.f32 %v384_v44, 0.0  ;;  %v401_v54 = vmax.f32 %v385_v45, 0.0  ;;  %v388_v55 = vadd.f32 %v363_v42, %v330_v46  ;;  %v389_v56 = vadd.f32 %v367_v43, %v331_v47 }
  0x2f   : > { %v402_v57 = vmax.f32 %v386_v48, 0.0  ;;  %v403_v58 = vmax.f32 %v387_v49, 0.0  ;;  %v371_v5 = vrot.slane %v342_v22, %v312_v59  ;;  %v375_v8 = vrot.slane %v342_v22, %v316_v60 }
  0x30   : > { %v631_v61 = vpack.c.bf16 %v401_v54, %v400_v53  ;;  %v404_v62 = vmax.f32 %v388_v55, 0.0  ;;  %v405_v63 = vmax.f32 %v389_v56, 0.0  ;;  %v334_v9 = vmul.f32 %v289_v27, %v276_v0 }
  0x31   : > { %v632_v2 = vpack.c.bf16 %v403_v58, %v402_v57  ;;  %v332_v11 = vmul.f32 %v313_v3, %v274_v50  ;;  %v333_v12 = vmul.f32 %v317_v4, %v275_v51  ;;  %v278_v13 = vunpack.c.l.bf16 %v265_v1 }
  0x32   : > { %464 = vst [vmem:[%s827_s18] sm:$0xff] %v631_v61  ;;  %v633_v7 = vpack.c.bf16 %v405_v63, %v404_v62  ;;  %v279_v14 = vunpack.c.h.bf16 %v265_v1  ;;  %v335_v15 = vmul.f32 %v293_v28, %v277_v10  ;;  %v392_v16 = vadd.f32 %v347_v29, %v334_v9 }
  0x33   : > { %465 = vst [vmem:[%s827_s18 + $0x8] sm:$0xff] %v632_v2  ;;  %v280_v17 = vunpack.c.l.bf16 %v266_v6  ;;  %v281_v18 = vunpack.c.h.bf16 %v266_v6  ;;  %v390_v19 = vadd.f32 %v371_v5, %v332_v11  ;;  %v391_v20 = vadd.f32 %v375_v8, %v333_v12 }
  0x34   : > { %466 = vst [vmem:[%s827_s18 + $0x10] sm:$0xff] %v633_v7  ;;  %v336_v21 = vmul.f32 %v297_v31, %v278_v13  ;;  %v337_v23 = vmul.f32 %v301_v32, %v279_v14  ;;  %v393_v25 = vadd.f32 %v351_v30, %v335_v15  ;;  %v408_v22 = vmax.f32 %v392_v16, 0.0 }
  0x35   : > { %v338_v26 = vmul.f32 %v305_v37, %v280_v17  ;;  %v339_v35 = vmul.f32 %v309_v38, %v281_v18  ;;  %v406_v27 = vmax.f32 %v390_v19, 0.0  ;;  %v407_v36 = vmax.f32 %v391_v20, 0.0 }
  0x36   : > { %v394_v39 = vadd.f32 %v814_v33, %v336_v21  ;;  %v395_v40 = vadd.f32 %v816_v34, %v337_v23  ;;  %v409_v28 = vmax.f32 %v393_v25, 0.0  ;;  %v282_v44 = vunpack.c.l.bf16 %v267_v24 }
  0x37   : > { %v396_v29 = vadd.f32 %v363_v42, %v338_v26  ;;  %v397_v41 = vadd.f32 %v367_v43, %v339_v35  ;;  %v634_v31 = vpack.c.bf16 %v407_v36, %v406_v27  ;;  %v283_v45 = vunpack.c.h.bf16 %v267_v24 }
  0x38   : > { %v410_v32 = vmax.f32 %v394_v39, 0.0  ;;  %v411_v30 = vmax.f32 %v395_v40, 0.0  ;;  %v635_v37 = vpack.c.bf16 %v409_v28, %v408_v22  ;;  %v340_v47 = vmul.f32 %v313_v3, %v282_v44 }
  0x39   : > { %v412_v38 = vmax.f32 %v396_v29, 0.0  ;;  %v413_v46 = vmax.f32 %v397_v41, 0.0  ;;  %467 = vst [vmem:[%s827_s18 + $0x18] sm:$0xff] %v634_v31  ;;  %v341_v48 = vmul.f32 %v317_v4, %v283_v45  ;;  %v497_v52 = vld [vmem:[%s827_s18] sm:$0xff] (%p775_p6) }
  0x3a   : > { %v636_v33 = vpack.c.bf16 %v411_v30, %v410_v32  ;;  %468 = vst [vmem:[%s827_s18 + $0x20] sm:$0xff] %v635_v37  ;;  %v398_v49 = vadd.f32 %v371_v5, %v340_v47  ;;  %v499_v53 = vld [vmem:[%s827_s18 + $0x8] sm:$0xff] (%p775_p6)  ;;  %498 = vst [vmem:[%s484_s24] sm:$0xff] (%p775_p6), %v497_v52 }
  0x3b   : > { %v637_v34 = vpack.c.bf16 %v413_v46, %v412_v38  ;;  %v399_v42 = vadd.f32 %v375_v8, %v341_v48  ;;  %478 = sbr.rel (!%p775_p6) target bundleno = 74 (0x4a), region = 59  ;;  %v501_v54 = vld [vmem:[%s827_s18 + $0x10] sm:$0xff] (%p775_p6)  ;;  %500 = vst [vmem:[%s484_s24 + $0x8] sm:$0xff] (%p775_p6), %v499_v53 }
  0x3c   : > { %469 = vst [vmem:[%s827_s18 + $0x28] sm:$0xff] %v636_v33  ;;  %v414_v43 = vmax.f32 %v398_v49, 0.0  ;;  %502 = vst [vmem:[%s484_s24 + $0x10] sm:$0xff] (%p775_p6), %v501_v54 }
  0x3d   : > { %470 = vst [vmem:[%s827_s18 + $0x30] sm:$0xff] %v637_v34  ;;  %v415_v50 = vmax.f32 %v399_v42, 0.0 }
  0x3f   : > { %v638_v51 = vpack.c.bf16 %v415_v50, %v414_v43 }
  0x40   : > { %v503_v55 = vld [vmem:[%s827_s18 + $0x18] sm:$0xff] (%p775_p6) }
  0x41   : > { %471 = vst [vmem:[%s827_s18 + $0x38] sm:$0xff] %v638_v51  ;;  %v505_v56 = vld [vmem:[%s827_s18 + $0x20] sm:$0xff] (%p775_p6)  ;;  %504 = vst [vmem:[%s484_s24 + $0x18] sm:$0xff] (%p775_p6), %v503_v55 }
  0x42   : > { %506 = vst [vmem:[%s484_s24 + $0x80] sm:$0xff] %v505_v56 }
  0x43   : > { %v507_v57 = vld [vmem:[%s827_s18 + $0x28] sm:$0xff] }
  0x44   : > { %508 = vst [vmem:[%s484_s24 + $0x88] sm:$0xff] %v507_v57  ;;  %v509_v58 = vld [vmem:[%s827_s18 + $0x30] sm:$0xff] }
  0x45   : > { %510 = vst [vmem:[%s484_s24 + $0x90] sm:$0xff] %v509_v58 }
  0x48   : > { %v511_v59 = vld [vmem:[%s827_s18 + $0x38] sm:$0xff] }
  0x49   : > { %512 = vst [vmem:[%s484_s24 + $0x98] sm:$0xff] %v511_v59 }
  0x4a PF: > { %s13_s16 = sadd.s32 1, %s718_s16   ;;  %s874_s12 = smov %s706_s13 }
  0x4b   : > { %p10_p12 = scmp.ge.s32.totalorder %s13_s16, 6   ;;  %s875_s13 = smov %s780_s22 }
  0x4c   : > { %s876_s14 = smov %s714_s15  ;;  %s877_s15 = smov %s879_s17 }
  0x4d   :  { %12 = sbr.rel (!%p10_p12) target bundleno = 3 (0x3), region = 119 }

// kernel: dcgan_g_forward.19
= control target key start
LH: loop header
LB: loop body
LE: loop exit
PB: predicated region body
PF: predicated region fallthrough
CT: control target
= control target key end

     0   :  { %s140_s0 = inlined_call_operand.vmem [shape: bf16[32,128], index: 0, kind: input, shape index: {}]   ;;  %s141_s1 = inlined_call_operand.vmem [shape: f32[1,128], index: 1, kind: input, shape index: {}]   ;;  %s142_s2 = inlined_call_operand.vmem [shape: f32[1,128], index: 2, kind: input, shape index: {}]   ;;  %s143_s3 = inlined_call_operand.vmem [shape: bf16[32,128], index: 3, kind: output, shape index: {}]  }
   0x1   :  { %v83_v0 = vld [vmem:[%s140_s0] sm:$0xff]   ;;  %v100_v4 = vld [vmem:[%s140_s0 + $0x8] sm:$0xff]  }
   0x2   :  { %v72_v1 = vld [vmem:[%s141_s1] ss:$0 sm:$0xff]  ;;  %v84_v2 = vunpack.c.l.bf16 %v83_v0  ;;  %v85_v3 = vunpack.c.h.bf16 %v83_v0  ;;  %v88_v6 = vunpack.c.l.bf16 %v100_v4  ;;  %v89_v7 = vunpack.c.h.bf16 %v100_v4 }
   0x3   :  { %v73_v5 = vld [vmem:[%s142_s2] ss:$0 sm:$0xff] }
   0x4   :  { %v29_v8 = vmul.f32 %v84_v2, %v72_v1  ;;  %v30_v9 = vmul.f32 %v85_v3, %v72_v1  ;;  %v31_v10 = vmul.f32 %v88_v6, %v72_v1  ;;  %v32_v11 = vmul.f32 %v89_v7, %v72_v1 }
   0x6   :  { %v40_v12 = vadd.f32 %v73_v5, %v29_v8  ;;  %v41_v13 = vadd.f32 %v73_v5, %v30_v9  ;;  %v42_v14 = vadd.f32 %v73_v5, %v31_v10  ;;  %v43_v15 = vadd.f32 %v73_v5, %v32_v11 }
   0x8   :  { %v44_v16 = vmax.f32 %v40_v12, 0.0  ;;  %v45_v17 = vmax.f32 %v41_v13, 0.0  ;;  %v46_v18 = vmax.f32 %v42_v14, 0.0  ;;  %v47_v19 = vmax.f32 %v43_v15, 0.0 }
   0xa   :  { %v93_v20 = vpack.c.bf16 %v45_v17, %v44_v16  ;;  %v98_v21 = vpack.c.bf16 %v47_v19, %v46_v18 }
   0xc   :  { %94 = vst [vmem:[%s143_s3] sm:$0xff] %v93_v20   ;;  %101 = vst [vmem:[%s143_s3 + $0x8] sm:$0xff] %v98_v21  }

// kernel: dcgan_g_forward.15
= control target key start
LH: loop header
LB: loop body
LE: loop exit
PB: predicated region body
PF: predicated region fallthrough
CT: control target
= control target key end

     0   :  { %s1204_s15 = smov 0   ;;  %s1206_s16 = smov 0   ;;  %s1350_s0 = inlined_call_operand.vmem [shape: bf16[32,1024], index: 0, kind: input, shape index: {}]   ;;  %s1351_s1 = inlined_call_operand.vmem [shape: bf16[1024,128], index: 1, kind: input, shape index: {}]   ;;  %s1352_s2 = inlined_call_operand.vmem [shape: bf16[32,128], index: 2, kind: output, shape index: {0}]   ;;  %s1353_s3 = inlined_call_operand.vmem [shape: f32[16,128], index: 3, kind: output, shape index: {1}]   ;;  %s1354_s4 = inlined_call_operand.vmem [shape: f32[16,128], index: 4, kind: output, shape index: {2}]  }
   0x1   :  { %s1208_s17 = smov 0   ;;  %s1210_s18 = smov 0  }
   0x2   :  { %s1212_s19 = smov 0   ;;  %s1214_s20 = smov 0  }
   0x3   :  { %s1216_s21 = smov 0  }
   0x4 LB: > { %s27_s22 = sadd.s32 1, %s1169_s19  ;;  %s34_s23 = sadd.s32 1, %s1173_s20  ;;  %s1177_s21 = sphi %s1216_s21, %s15_s21   ;;  %s1173_s20 = sphi %s1214_s20, %s1360_s20   ;;  %s1169_s19 = sphi %s1212_s19, %s1359_s19   ;;  %s1165_s18 = sphi %s1210_s18, %s1358_s18   ;;  %s1161_s17 = sphi %s1208_s17, %s1357_s17   ;;  %s1157_s16 = sphi %s1206_s16, %s1356_s16   ;;  %s1153_s15 = sphi %s1204_s15, %s1355_s15  }
   0x5   : > { %p28_p0 = scmp.ge.s32.totalorder %s27_s22, 2  ;;  %p50_p1 = scmp.ne.s32.totalorder %s1157_s16, %s1153_s15 }
   0x6   : > { %p51_p2 = scmp.eq.s32.totalorder %s1177_s21, 0  ;;  %s43_s27 = sadd.s32 1, %s1157_s16 }
   0x7   : > { %s1362_s22 = smov (%p28_p0, %s27_s22), 0  ;;  %s1364_s23 = smov (!%p28_p0, %s34_s23), %s1173_s20 }
   0x8   : > { %p52_p3 = por %p51_p2, %p50_p1  ;;  %p36_p4 = scmp.ge.s32.totalorder %s1364_s23, 2 }
   0x9   : > { %s39_s24 = ssub.s32 %s1169_s19, %s1362_s22  ;;  %p920_p6 = scmp.ge.s32.totalorder %s1177_s21, 4 }
   0xa   : > { %s1366_s23 = smov (%p36_p4, %s1364_s23), 0 }
   0xb   : > { %s38_s25 = ssub.s32 %s1173_s20, %s1366_s23  ;;  %188 = sbr.rel (%p920_p6) target bundleno = 27 (0x1b), region = 16 }
   0xc   : > { %s40_s26 = sor.u32 %s39_s24, %s38_s25 }
   0xd   : > { %p41_p5 = scmp.eq.s32.totalorder %s40_s26, 0 }
   0xf   : > { %s1255_s28 = scalar_select %p41_p5, %s1157_s16, %s43_s27  }
  0x12   : > { %191 = sbr.rel (!%p52_p3) target bundleno = 27 (0x1b), region = 20  ;;  %s193_s29 = sand.u32 (%p52_p3), 1, %s1157_s16  }
  0x13   : > { %s923_s30 = sshll.u32 (%p52_p3), %s1169_s19, 2  ;;  %s921_s5 = sshll.u32 (%p52_p3), %s193_s29, 5 }
  0x14   : > { %s977_s6 = sshll.u32 (%p52_p3), %s1173_s20, 4  ;;  %s195_s12 = scalar_lea.vmem (%p52_p3), [#allocation3], %s921_s5 }
  0x15   : > { %s199_s7 = sadd.s32 (%p52_p3), %s977_s6, %s923_s30 }
  0x16   : > { %s925_s8 = sshll.u32 (%p52_p3), %s199_s7, 2 }
  0x17   : > { %s201_s11 = scalar_lea.vmem (%p52_p3), %s1350_s0, %s925_s8 }
  0x18   : > { %v214_v0 = vld [vmem:[%s201_s11] sm:$0xff] (%p52_p3)  ;;  %v216_v1 = vld [vmem:[%s201_s11 + $0x8] sm:$0xff] (%p52_p3) }
  0x19   : > { %v218_v2 = vld [vmem:[%s201_s11 + $0x20] sm:$0xff]  ;;  %215 = vst [vmem:[%s195_s12] sm:$0xff] %v214_v0  ;;  %217 = vst [vmem:[%s195_s12 + $0x8] sm:$0xff] %v216_v1  ;;  %v220_v3 = vld [vmem:[%s201_s11 + $0x28] sm:$0xff] }
  0x1a   : > { %219 = vst [vmem:[%s195_s12 + $0x10] sm:$0xff] %v218_v2  ;;  %221 = vst [vmem:[%s195_s12 + $0x18] sm:$0xff] %v220_v3 }
  0x1b PF: > { %p926_p7 = scmp.ge.s32.totalorder %s1177_s21, 1  ;;  %p238_p8 = scmp.lt.s32.totalorder %s1177_s21, 5 }
  0x1d   : > { %p239_p9 = pnand %p926_p7, %p238_p8 }
  0x1e   : > { %s928_s13 = sshll.u32 (!%p239_p9), %s1161_s17, 6  ;;  %s930_s14 = sshll.u32 (!%p239_p9), %s1165_s18, 1 }
  0x1f   : > { %242 = sbr.rel (%p239_p9) target bundleno = 318 (0x13e), region = 47  ;;  %p298_p10 = scmp.lt.s32.totalorder (!%p239_p9), %s928_s13, 127 }
  0x20   : > { %p307_p11 = scmp.lt.s32.totalorder (!%p239_p9), %s930_s14, 3  ;;  %p315_p12 = scmp.lt.s32.totalorder (!%p239_p9), %s1165_s18, 1 }
  0x21   : > { %p970_p13 = scmp.ne.s32.totalorder (!%p239_p9), %s1161_s17, 0 }
  0x26   : > { %s1368_s13 = smov (!%p298_p10, %s928_s13), 127  ;;  %s1370_s14 = smov (!%p307_p11, %s930_s14), 3 }
  0x27   : > { %s929_s24 = sshll.u32 %s1368_s13, 2  ;;  %s931_s29 = sshll.u32 %s1370_s14, 2 }
  0x28   : > { %s1272_s27 = scalar_lea.vmem %s1351_s1, %s929_s24  ;;  %s1277_s6 = scalar_lea.vmem %s1352_s2, %s931_s29 }
  0x29   : > { %v1085_v4 = vld [vmem:[%s1272_s27 + $0x40] sm:$0xff]   ;;  %s1372_s18 = smov (!%p315_p12, %s1165_s18), 1  ;;  %v1089_v8 = vld [vmem:[%s1272_s27 + $0x48] sm:$0xff]   ;;  %v1093_v12 = vld [vmem:[%s1272_s27 + $0x50] sm:$0xff]  }
  0x2a   : > { %v1086_v5 = vld [vmem:[%s1272_s27 + $0xc0] sm:$0xff]   ;;  %985 = vmatprep.subr.bf16.mxu0 %v1085_v4  ;;  %s932_s7 = sshll.u32 %s1372_s18, 3  ;;  %v1090_v9 = vld [vmem:[%s1272_s27 + $0xc8] sm:$0xff]   ;;  %v1094_v13 = vld [vmem:[%s1272_s27 + $0xd0] sm:$0xff]   ;;  %s245_s18 = sand.u32 1, %s1153_s15  }
  0x2b   : > { %v1087_v6 = vld [vmem:[%s1272_s27] sm:$0xff]   ;;  %1007 = vmatprep.subr.bf16.mxu1 %v1086_v5  ;;  %s1287_s10 = scalar_lea.vmem %s1353_s3, %s932_s7  ;;  %s1292_s13 = scalar_lea.vmem %s1354_s4, %s932_s7  ;;  %v1091_v10 = vld [vmem:[%s1272_s27 + $0x8] sm:$0xff]   ;;  %v1095_v14 = vld [vmem:[%s1272_s27 + $0x10] sm:$0xff]  }
  0x2c   : > { %v1088_v7 = vld [vmem:[%s1272_s27 + $0x80] sm:$0xff]   ;;  %986 = vmatpush3.bf16.msra.mxu0 %v1087_v6  ;;  %v1092_v11 = vld [vmem:[%s1272_s27 + $0x88] sm:$0xff]   ;;  %v1096_v15 = vld [vmem:[%s1272_s27 + $0x90] sm:$0xff]   ;;  %s927_s14 = sshll.u32 %s245_s18, 5 }
  0x2d   : > { %1008 = vmatpush3.bf16.msra.mxu1 %v1088_v7  ;;  %987 = vmatprep.subr.bf16.mxu0 %v1089_v8  ;;  %v1097_v16 = vld [vmem:[%s1272_s27 + $0x58] sm:$0xff]   ;;  %v1101_v20 = vld [vmem:[%s1272_s27 + $0x60] sm:$0xff]   ;;  %v1105_v24 = vld [vmem:[%s1272_s27 + $0x68] sm:$0xff]   ;;  %s247_s15 = scalar_lea.vmem [#allocation3], %s927_s14 }
  0x2e   : > { %1009 = vmatprep.subr.bf16.mxu1 %v1090_v9  ;;  %v1098_v17 = vld [vmem:[%s1272_s27 + $0xd8] sm:$0xff]   ;;  %v1102_v21 = vld [vmem:[%s1272_s27 + $0xe0] sm:$0xff]   ;;  %v1106_v25 = vld [vmem:[%s1272_s27 + $0xe8] sm:$0xff]  }
  0x2f   : > { %v1099_v18 = vld [vmem:[%s1272_s27 + $0x18] sm:$0xff]   ;;  %v1103_v22 = vld [vmem:[%s1272_s27 + $0x20] sm:$0xff]   ;;  %v1107_v26 = vld [vmem:[%s1272_s27 + $0x28] sm:$0xff]  }
  0x30   : > { %988 = vmatpush3.bf16.msra.mxu0 %v1091_v10  ;;  %v1100_v19 = vld [vmem:[%s1272_s27 + $0x98] sm:$0xff]   ;;  %v1104_v23 = vld [vmem:[%s1272_s27 + $0xa0] sm:$0xff]   ;;  %v1108_v27 = vld [vmem:[%s1272_s27 + $0xa8] sm:$0xff]  }
  0x31   : > { %1010 = vmatpush3.bf16.msra.mxu1 %v1092_v11  ;;  %989 = vmatprep.subr.bf16.mxu0 %v1093_v12  ;;  %v1109_v28 = vld [vmem:[%s1272_s27 + $0x70] sm:$0xff]   ;;  %v1113_v32 = vld [vmem:[%s1272_s27 + $0x78] sm:$0xff]  }
  0x32   : > { %1011 = vmatprep.subr.bf16.mxu1 %v1094_v13  ;;  %v1110_v29 = vld [vmem:[%s1272_s27 + $0xf0] sm:$0xff]   ;;  %v1114_v33 = vld [vmem:[%s1272_s27 + $0xf8] sm:$0xff]  }
  0x33   : > { %v1111_v30 = vld [vmem:[%s1272_s27 + $0x30] sm:$0xff]   ;;  %v1115_v34 = vld [vmem:[%s1272_s27 + $0x38] sm:$0xff]  }
  0x34   : > { %990 = vmatpush3.bf16.msra.mxu0 %v1095_v14  ;;  %v1112_v31 = vld [vmem:[%s1272_s27 + $0xb0] sm:$0xff]   ;;  %v1116_v35 = vld [vmem:[%s1272_s27 + $0xb8] sm:$0xff]  }
  0x35   : > { %1012 = vmatpush3.bf16.msra.mxu1 %v1096_v15  ;;  %991 = vmatprep.subr.bf16.mxu0 %v1097_v16  ;;  %v1117_v36 = vld [vmem:[%s247_s15] ss:$16 sps:$4 sm:$0xff]   ;;  %v1119_v37 = vld [vmem:[%s247_s15 + $0x4] ss:$16 sps:$4 sm:$0xff]   ;;  %v1120_v38 = vld [vmem:[%s247_s15 + $0x8] ss:$16 sps:$4 sm:$0xff]  }
  0x36   : > { %1013 = vmatprep.subr.bf16.mxu1 %v1098_v17  ;;  %v1122_v39 = vld [vmem:[%s247_s15 + $0xc] ss:$16 sps:$4 sm:$0xff]   ;;  %642 = vmatprep.mubr.bf16.mxu0 %v1119_v37 }
  0x37   : > { %683 = vmatprep.mubr.bf16.mxu1 %v1122_v39 }
  0x38   : > { %992 = vmatpush3.bf16.msra.mxu0 %v1099_v18 }
  0x39   : > { %1014 = vmatpush3.bf16.msra.mxu1 %v1100_v19  ;;  %993 = vmatprep.subr.bf16.mxu0 %v1101_v20 }
  0x3a   : > { %1015 = vmatprep.subr.bf16.mxu1 %v1102_v21 }
  0x3c   : > { %994 = vmatpush3.bf16.msra.mxu0 %v1103_v22 }
  0x3d   : > { %1016 = vmatpush3.bf16.msra.mxu1 %v1104_v23  ;;  %995 = vmatprep.subr.bf16.mxu0 %v1105_v24 }
  0x3e   : > { %1017 = vmatprep.subr.bf16.mxu1 %v1106_v25 }
  0x40   : > { %996 = vmatpush3.bf16.msra.mxu0 %v1107_v26 }
  0x41   : > { %1018 = vmatpush3.bf16.msra.mxu1 %v1108_v27  ;;  %997 = vmatprep.subr.bf16.mxu0 %v1109_v28 }
  0x42   : > { %1019 = vmatprep.subr.bf16.mxu1 %v1110_v29 }
  0x44   : > { %998 = vmatpush3.bf16.msra.mxu0 %v1111_v30 }
  0x45   : > { %1020 = vmatpush3.bf16.msra.mxu1 %v1112_v31  ;;  %999 = vmatprep.subr.bf16.mxu0 %v1113_v32 }
  0x46   : > { %1021 = vmatprep.subr.bf16.mxu1 %v1114_v33 }
  0x48   : > { %1000 = vmatpush3.bf16.msra.mxu0 %v1115_v34 }
  0x49   : > { %1022 = vmatpush3.bf16.msra.mxu1 %v1116_v35 }
  0x4b   : > { %643 = vmatmul.mubr.bf16.vlgmr.msra.gmra.mrb[0].mxu0 %v1117_v36 }
  0x4c   : > { %684 = vmatmul.mubr.bf16.vlgmr.msra.gmra.mrb[0].mxu1 %v1120_v38 }
 0x11e   : > { %v1001_v40 = vpop.f32.mrb[0].mxu0 }
 0x11f   : > { %v1023_v41 = vpop.f32.mrb[0].mxu1  ;;  %v1002_v42 = vpop.f32.mrb[1].mxu0  ;;  %695 = sbr.rel (%p970_p13) target bundleno = 296 (0x128), region = 55 }
 0x120   : > { %v1003_v43 = vadd.f32 %v1002_v42, %v1001_v40  ;;  %v1024_v44 = vpop.f32.mrb[1].mxu1  ;;  %v1004_v45 = vpop.f32.mrb[2].mxu0 }
 0x121   : > { %v1025_v46 = vadd.f32 %v1024_v44, %v1023_v41  ;;  %v1026_v47 = vpop.f32.mrb[2].mxu1  ;;  %v1005_v48 = vpop.f32.mrb[3].mxu0 }
 0x122   : > { %v1006_v49 = vadd.f32 %v1005_v48, %v1004_v45  ;;  %v1027_v50 = vpop.f32.mrb[3].mxu1 }
 0x123   : > { %v686_v51 = vadd.f32 %v1025_v46, %v1003_v43  ;;  %v1028_v52 = vadd.f32 %v1027_v50, %v1026_v47 }
 0x125   : > { %v689_v53 = vadd.f32 %v1028_v52, %v1006_v49  ;;  %696 = vst [vmem:[#allocation2] sm:$0xff] (!%p970_p13), %v686_v51 }
 0x127   : > { %697 = vst [vmem:[#allocation2 + $0x8] sm:$0xff] %v689_v53 }
 0x128 PF: > { %p971_p0 = scmp.le.s32.totalorder %s1161_s17, 0 }
 0x12a   : > { %701 = sbr.rel (%p971_p0) target bundleno = 306 (0x132), region = 59 }
 0x12e   : > { %v702_v54 = vld [vmem:[#allocation2] sm:$0xff] (!%p971_p0)  ;;  %v703_v55 = vld [vmem:[#allocation2 + $0x8] sm:$0xff] (!%p971_p0) }
 0x12f   : > { %v704_v56 = vadd.f32 (!%p971_p0), %v702_v54, %v686_v51  ;;  %v705_v57 = vadd.f32 (!%p971_p0), %v703_v55, %v689_v53 }
 0x131   : > { %706 = vst [vmem:[#allocation2] sm:$0xff] %v704_v56  ;;  %707 = vst [vmem:[#allocation2 + $0x8] sm:$0xff] %v705_v57 }
 0x132 PF: > { %p972_p1 = scmp.ne.s32.totalorder %s1161_s17, 1 }
 0x134   : > { %711 = sbr.rel (%p972_p1) target bundleno = 318 (0x13e), region = 63 }
 0x138   : > { %v712_v58 = vld [vmem:[#allocation2] sm:$0xff] (!%p972_p1)  ;;  %v713_v59 = vld [vmem:[#allocation2 + $0x8] sm:$0xff] (!%p972_p1) }
 0x139   : > { %v714_v60 = vadd.f32 (!%p972_p1), %v713_v59, %v712_v58  ;;  %v716_v61 = vmul.f32 (!%p972_p1), %v712_v58, %v712_v58  ;;  %v717_v62 = vmul.f32 (!%p972_p1), %v713_v59, %v713_v59  ;;  %v983_v63 = vpack.c.bf16 (!%p972_p1), %v713_v59, %v712_v58 }
 0x13b   : > { %715 = vst [vmem:[%s1287_s10] sm:$0xff] %v714_v60  ;;  %v718_v0 = vadd.f32 %v717_v62, %v716_v61  ;;  %984 = vst [vmem:[%s1277_s6] sm:$0xff] %v983_v63  }
 0x13d   : > { %719 = vst [vmem:[%s1292_s13] sm:$0xff] %v718_v0 }
 0x13e PF: > { %s15_s21 = sadd.s32 1, %s1177_s21   ;;  %s1355_s15 = smov %s1157_s16 }
 0x13f   : > { %p12_p2 = scmp.ge.s32.totalorder %s15_s21, 6   ;;  %s1356_s16 = smov %s1255_s28 }
 0x140   : > { %s1357_s17 = smov %s1169_s19  ;;  %s1358_s18 = smov %s1173_s20 }
 0x141   : > { %s1359_s19 = smov %s1362_s22  ;;  %s1360_s20 = smov %s1366_s23 }
 0x142   :  { %14 = sbr.rel (!%p12_p2) target bundleno = 4 (0x4), region = 125 }

// kernel: tile.33
= control target key start
LH: loop header
LB: loop body
LE: loop exit
PB: predicated region body
PF: predicated region fallthrough
CT: control target
= control target key end

     0   :  { %s22_s0 = inlined_call_operand.vmem [shape: f32[64], index: 0, kind: input, shape index: {}]   ;;  %s23_s1 = inlined_call_operand.vmem [shape: f32[4,64], index: 1, kind: output, shape index: {}]  }
   0x1   :  { %v4_v0 = vld [vmem:[%s22_s0] ss:$0 sm:$0xff] }
   0x2   :  { %5 = vst [vmem:[%s23_s1] sm:$0xf] %v4_v0 }

// kernel: tile.38
= control target key start
LH: loop header
LB: loop body
LE: loop exit
PB: predicated region body
PF: predicated region fallthrough
CT: control target
= control target key end

     0   :  { %s6_s8 = smov 3  ;;  %vm8_vm0 = vcmask 523264   ;;  %s30_s9 = smov 64   ;;  %vm15_vm1 = vcmask 1048064   ;;  %s50_s0 = inlined_call_operand.vmem [shape: f32[4,64], index: 0, kind: input, shape index: {}]   ;;  %s51_s1 = inlined_call_operand.vmem [shape: f32[1,256], index: 1, kind: output, shape index: {}]  }
   0x1   :  { %v4_v0 = vld [vmem:[%s50_s0] sm:$0xf]  ;;  %s11_s0 = smov 3 }
   0x2   :  { %5 = vst [vmem:[#allocation1] sm:$0xf] %v4_v0 }
   0x9   :  { %v12_v1 = vld [vmem:[#allocation1 + $0x1] ss:$2 sm:%s11_s0]   ;;  %v7_v2 = vld [vmem:[#allocation1] ss:$2 sm:%s6_s8]  }
   0xa   :  { %13 = vrot.lane.b32.xlu0 %v12_v1, %s30_s9  ;;  %9 = vst.msk [vmem:[#allocation0] ss:$8 sm:$0x3] %vm8_vm0, %v7_v2  }
  0x7c   :  { %v14_v3 = vpop.permute.xlu0 %13  }
  0x7d   :  { %16 = vst.msk [vmem:[#allocation0] ss:$8 sm:$0x3] %vm15_vm1, %v14_v3  }
  0x84   :  { %v20_v4 = vld [vmem:[#allocation0] sm:$0x1]  ;;  %v24_v5 = vld [vmem:[#allocation0 + $0x8] sm:$0x1] }
  0x85   :  { %22 = vst [vmem:[%s51_s1] sm:$0x1] %v20_v4  ;;  %28 = vst [vmem:[%s51_s1 + $0x1] sm:$0x1] %v24_v5 }

// kernel: dcgan_g_forward.23
= control target key start
LH: loop header
LB: loop body
LE: loop exit
PB: predicated region body
PF: predicated region fallthrough
CT: control target
= control target key end

     0   :  { %s1681_s15 = smov 0   ;;  %s1683_s16 = smov 0   ;;  %s1900_s0 = inlined_call_operand.vmem [shape: bf16[128,1152], index: 0, kind: input, shape index: {}]   ;;  %s1901_s1 = inlined_call_operand.vmem [shape: bf16[1152,256], index: 1, kind: input, shape index: {}]   ;;  %s1902_s2 = inlined_call_operand.vmem [shape: bf16[128,256], index: 2, kind: output, shape index: {0}]   ;;  %s1903_s3 = inlined_call_operand.vmem [shape: f32[16,256], index: 3, kind: output, shape index: {1}]   ;;  %s1904_s4 = inlined_call_operand.vmem [shape: f32[16,256], index: 4, kind: output, shape index: {2}]  }
   0x1   :  { %s1685_s17 = smov 0   ;;  %s1687_s18 = smov 0  }
   0x2   :  { %s1689_s19 = smov 0   ;;  %s1691_s20 = smov 0  }
   0x3   :  { %s1693_s21 = smov 0  }
   0x4 LB: > { %s27_s22 = sadd.s32 1, %s1645_s19  ;;  %s34_s23 = sadd.s32 1, %s1649_s20  ;;  %s1653_s21 = sphi %s1693_s21, %s15_s21   ;;  %s1649_s20 = sphi %s1691_s20, %s1910_s20   ;;  %s1645_s19 = sphi %s1689_s19, %s1909_s19   ;;  %s1641_s18 = sphi %s1687_s18, %s1908_s18   ;;  %s1637_s17 = sphi %s1685_s17, %s1907_s17   ;;  %s1633_s16 = sphi %s1683_s16, %s1906_s16   ;;  %s1629_s15 = sphi %s1681_s15, %s1905_s15  }
   0x5   : > { %p28_p0 = scmp.ge.s32.totalorder %s27_s22, 3  ;;  %p50_p1 = scmp.ne.s32.totalorder %s1633_s16, %s1629_s15 }
   0x6   : > { %p51_p2 = scmp.eq.s32.totalorder %s1653_s21, 0  ;;  %s43_s27 = sadd.s32 1, %s1633_s16 }
   0x7   : > { %s1912_s22 = smov (%p28_p0, %s27_s22), 0  ;;  %s1914_s23 = smov (!%p28_p0, %s34_s23), %s1649_s20 }
   0x8   : > { %p52_p3 = por %p51_p2, %p50_p1  ;;  %p36_p4 = scmp.ge.s32.totalorder %s1914_s23, 2 }
   0x9   : > { %s39_s24 = ssub.s32 %s1645_s19, %s1912_s22  ;;  %p1320_p6 = scmp.ge.s32.totalorder %s1653_s21, 6 }
   0xa   : > { %s1916_s23 = smov (%p36_p4, %s1914_s23), 0 }
   0xb   : > { %s38_s25 = ssub.s32 %s1649_s20, %s1916_s23  ;;  %188 = sbr.rel (%p1320_p6) target bundleno = 36 (0x24), region = 16 }
   0xc   : > { %s40_s26 = sor.u32 %s39_s24, %s38_s25 }
   0xd   : > { %p41_p5 = scmp.eq.s32.totalorder %s40_s26, 0 }
   0xf   : > { %s1732_s28 = scalar_select %p41_p5, %s1633_s16, %s43_s27  }
  0x12   : > { %191 = sbr.rel (!%p52_p3) target bundleno = 36 (0x24), region = 20  ;;  %s193_s29 = sand.u32 (%p52_p3), 1, %s1633_s16  }
  0x13   : > { %s197_s30 = smul.u32 (%p52_p3), 3, %s1645_s19 }
  0x14   : > { %s1451_s5 = smul.u32 (%p52_p3), 96, %s193_s29 }
  0x15   : > { %s1452_s6 = smul.u32 (%p52_p3), 72, %s1649_s20 }
  0x16   : > { %s195_s12 = scalar_lea.vmem (%p52_p3), [#allocation3], %s1451_s5 }
  0x17   : > { %s199_s7 = sadd.s32 (%p52_p3), %s1452_s6, %s197_s30 }
  0x18   : > { %s1323_s8 = sshll.u32 (%p52_p3), %s199_s7, 2 }
  0x19   : > { %s1741_s11 = scalar_lea.vmem %s1900_s0, %s1323_s8 }
  0x1a   : > { %v216_v0 = vld [vmem:[%s1741_s11] sm:$0xff]  ;;  %v220_v2 = vld [vmem:[%s1741_s11 + $0x48] sm:$0xff]  ;;  %v224_v4 = vld [vmem:[%s1741_s11 + $0x90] sm:$0xff] }
  0x1b   : > { %v218_v1 = vld [vmem:[%s1741_s11 + $0x24] sm:$0xff]  ;;  %217 = vst [vmem:[%s195_s12] sm:$0xff] %v216_v0  ;;  %221 = vst [vmem:[%s195_s12 + $0x18] sm:$0xff] %v220_v2  ;;  %v222_v3 = vld [vmem:[%s1741_s11 + $0x6c] sm:$0xff] }
  0x1c   : > { %219 = vst [vmem:[%s195_s12 + $0xc] sm:$0xff] %v218_v1  ;;  %v226_v5 = vld [vmem:[%s1741_s11 + $0xb4] sm:$0xff]  ;;  %223 = vst [vmem:[%s195_s12 + $0x24] sm:$0xff] %v222_v3  ;;  %v230_v7 = vld [vmem:[%s1741_s11 + $0xfc] sm:$0xff] }
  0x1d   : > { %225 = vst [vmem:[%s195_s12 + $0x30] sm:$0xff] %v224_v4  ;;  %227 = vst [vmem:[%s195_s12 + $0x3c] sm:$0xff] %v226_v5  ;;  %v228_v6 = vld [vmem:[%s1741_s11 + $0xd8] sm:$0xff]  ;;  %v1324_v8 = vld [vmem:[%s1741_s11 + $0x8] sm:$0xf] }
  0x1e   : > { %229 = vst [vmem:[%s195_s12 + $0x48] sm:$0xff] %v228_v6  ;;  %231 = vst [vmem:[%s195_s12 + $0x54] sm:$0xff] %v230_v7  ;;  %v1326_v9 = vld [vmem:[%s1741_s11 + $0x2c] sm:$0xf]  ;;  %v1328_v10 = vld [vmem:[%s1741_s11 + $0x50] sm:$0xf] }
  0x1f   : > { %1325 = vst [vmem:[%s195_s12 + $0x8] sm:$0xf] %v1324_v8  ;;  %v1330_v11 = vld [vmem:[%s1741_s11 + $0x74] sm:$0xf]  ;;  %1327 = vst [vmem:[%s195_s12 + $0x14] sm:$0xf] %v1326_v9 }
  0x20   : > { %1329 = vst [vmem:[%s195_s12 + $0x20] sm:$0xf] %v1328_v10  ;;  %1331 = vst [vmem:[%s195_s12 + $0x2c] sm:$0xf] %v1330_v11  ;;  %v1332_v12 = vld [vmem:[%s1741_s11 + $0x98] sm:$0xf] }
  0x21   : > { %v1334_v13 = vld [vmem:[%s1741_s11 + $0xbc] sm:$0xf]  ;;  %v1336_v14 = vld [vmem:[%s1741_s11 + $0xe0] sm:$0xf]  ;;  %1333 = vst [vmem:[%s195_s12 + $0x38] sm:$0xf] %v1332_v12 }
  0x22   : > { %1335 = vst [vmem:[%s195_s12 + $0x44] sm:$0xf] %v1334_v13  ;;  %1337 = vst [vmem:[%s195_s12 + $0x50] sm:$0xf] %v1336_v14  ;;  %v1338_v15 = vld [vmem:[%s1741_s11 + $0x104] sm:$0xf] }
  0x23   : > { %1339 = vst [vmem:[%s195_s12 + $0x5c] sm:$0xf] %v1338_v15 }
  0x24 PF: > { %p1340_p7 = scmp.ge.s32.totalorder %s1653_s21, 1  ;;  %p274_p8 = scmp.lt.s32.totalorder %s1653_s21, 7 }
  0x26   : > { %p275_p9 = pnand %p1340_p7, %p274_p8 }
  0x27   : > { %s341_s13 = smul.u32 (!%p275_p9), 48, %s1637_s17  ;;  %s1343_s14 = sshll.u32 (!%p275_p9), %s1641_s18, 3  ;;  %v1655_v16 = vmov (!%p275_p9), 0  }
  0x28   : > { %278 = sbr.rel (%p275_p9) target bundleno = 393 (0x189), region = 50  ;;  %p355_p10 = scmp.lt.s32.totalorder (!%p275_p9), %s1343_s14, 15  ;;  %859 = vmatprep.mubr.bf16.mxu0 (!%p275_p9), %v1655_v16 }
  0x29   : > { %p343_p11 = scmp.lt.s32.totalorder (!%p275_p9), %s341_s13, 143  ;;  %p366_p12 = scmp.lt.s32.totalorder (!%p275_p9), %s1641_s18, 1 }
  0x2a   : > { %p1410_p13 = scmp.ne.s32.totalorder (!%p275_p9), %s1637_s17, 0 }
  0x2f   : > { %s1918_s14 = smov (!%p355_p10, %s1343_s14), 15  ;;  %s1920_s13 = smov (!%p343_p11, %s341_s13), 143 }
  0x30   : > { %s1424_s24 = sshll.u32 %s1918_s14, 3  ;;  %s1423_s25 = sshll.u32 %s1920_s13, 3 }
  0x31   : > { %s1768_s29 = scalar_lea.vmem %s1902_s2, %s1424_s24  ;;  %s1773_s6 = scalar_lea.vmem %s1901_s1, %s1423_s25 }
  0x32   : > { %s1922_s18 = smov (!%p366_p12, %s1641_s18), 1  ;;  %v1511_v17 = vld [vmem:[%s1773_s6 + $0x4] ss:$8 sps:$4 sm:$0xff]   ;;  %v1513_v18 = vld [vmem:[%s1773_s6] ss:$8 sps:$4 sm:$0xff]  }
  0x33   : > { %s1425_s7 = sshll.u32 %s1922_s18, 4  ;;  %754 = vmatprep.subr.bf16.mxu1 %v1511_v17  ;;  %v1514_v19 = vld [vmem:[%s1773_s6 + $0x14] ss:$8 sps:$4 sm:$0xff]   ;;  %v1516_v20 = vld [vmem:[%s1773_s6 + $0x10] ss:$8 sps:$4 sm:$0xff]   ;;  %s281_s18 = sand.u32 1, %s1629_s15  }
  0x34   : > { %s1782_s10 = scalar_lea.vmem %s1903_s3, %s1425_s7  ;;  %s1787_s13 = scalar_lea.vmem %s1904_s4, %s1425_s7  ;;  %755 = vmatpush1.bf16.msra.mxu1 %v1513_v18  ;;  %v1517_v21 = vld [vmem:[%s1773_s6 + $0x24] ss:$8 sps:$4 sm:$0xff]   ;;  %v1519_v22 = vld [vmem:[%s1773_s6 + $0x20] ss:$8 sps:$4 sm:$0xff]   ;;  %v1520_v23 = vld [vmem:[%s1773_s6 + $0x34] ss:$8 sps:$4 sm:$0xff]  }
  0x35   : > { %756 = vmatprep.subr.bf16.mxu1 %v1514_v19  ;;  %v1522_v24 = vld [vmem:[%s1773_s6 + $0x30] ss:$8 sps:$4 sm:$0xff]   ;;  %v1535_v25 = vld [vmem:[%s1773_s6 + $0x104] ss:$8 sps:$4 sm:$0xff]   ;;  %v1537_v26 = vld [vmem:[%s1773_s6 + $0x100] ss:$8 sps:$4 sm:$0xff]  }
  0x36   : > { %v1523_v27 = vld [vmem:[%s1773_s6 + $0x44] ss:$8 sps:$4 sm:$0xff]   ;;  %827 = vmatprep.subr.bf16.mxu0 %v1535_v25  ;;  %v1541_v28 = vld [vmem:[%s1773_s6 + $0x114] ss:$8 sps:$4 sm:$0xff]   ;;  %v1543_v29 = vld [vmem:[%s1773_s6 + $0x110] ss:$8 sps:$4 sm:$0xff]  }
  0x37   : > { %828 = vmatpush1.bf16.msra.mxu0 %v1537_v26  ;;  %v1525_v30 = vld [vmem:[%s1773_s6 + $0x40] ss:$8 sps:$4 sm:$0xff]   ;;  %v1526_v31 = vld [vmem:[%s1773_s6 + $0x54] ss:$8 sps:$4 sm:$0xff]   ;;  %v1547_v32 = vld [vmem:[%s1773_s6 + $0x124] ss:$8 sps:$4 sm:$0xff]  }
  0x38   : > { %757 = vmatpush1.bf16.msra.mxu1 %v1516_v20  ;;  %829 = vmatprep.subr.bf16.mxu0 %v1541_v28  ;;  %v1549_v33 = vld [vmem:[%s1773_s6 + $0x120] ss:$8 sps:$4 sm:$0xff]   ;;  %v1528_v34 = vld [vmem:[%s1773_s6 + $0x50] ss:$8 sps:$4 sm:$0xff]   ;;  %v1553_v35 = vld [vmem:[%s1773_s6 + $0x134] ss:$8 sps:$4 sm:$0xff]  }
  0x39   : > { %758 = vmatprep.subr.bf16.mxu1 %v1517_v21  ;;  %v1529_v36 = vld [vmem:[%s1773_s6 + $0x64] ss:$8 sps:$4 sm:$0xff]   ;;  %v1555_v37 = vld [vmem:[%s1773_s6 + $0x130] ss:$8 sps:$4 sm:$0xff]   ;;  %v1531_v38 = vld [vmem:[%s1773_s6 + $0x60] ss:$8 sps:$4 sm:$0xff]  }
  0x3a   : > { %v1559_v39 = vld [vmem:[%s1773_s6 + $0x144] ss:$8 sps:$4 sm:$0xff]   ;;  %v1532_v40 = vld [vmem:[%s1773_s6 + $0x74] ss:$8 sps:$4 sm:$0xff]   ;;  %v1561_v41 = vld [vmem:[%s1773_s6 + $0x140] ss:$8 sps:$4 sm:$0xff]  }
  0x3b   : > { %830 = vmatpush1.bf16.msra.mxu0 %v1543_v29  ;;  %v1534_v42 = vld [vmem:[%s1773_s6 + $0x70] ss:$8 sps:$4 sm:$0xff]   ;;  %v1565_v43 = vld [vmem:[%s1773_s6 + $0x154] ss:$8 sps:$4 sm:$0xff]   ;;  %s1453_s14 = smul.u32 96, %s281_s18 }
  0x3c   : > { %759 = vmatpush1.bf16.msra.mxu1 %v1519_v22  ;;  %831 = vmatprep.subr.bf16.mxu0 %v1547_v32  ;;  %v1538_v44 = vld [vmem:[%s1773_s6 + $0x84] ss:$8 sps:$4 sm:$0xff]   ;;  %v1567_v45 = vld [vmem:[%s1773_s6 + $0x150] ss:$8 sps:$4 sm:$0xff]   ;;  %v1540_v46 = vld [vmem:[%s1773_s6 + $0x80] ss:$8 sps:$4 sm:$0xff]  }
  0x3d   : > { %760 = vmatprep.subr.bf16.mxu1 %v1520_v23  ;;  %v1571_v47 = vld [vmem:[%s1773_s6 + $0x164] ss:$8 sps:$4 sm:$0xff]   ;;  %v1544_v48 = vld [vmem:[%s1773_s6 + $0x94] ss:$8 sps:$4 sm:$0xff]   ;;  %s1819_s15 = scalar_lea.vmem [#allocation3], %s1453_s14 }
  0x3e   : > { %v1546_v49 = vld [vmem:[%s1773_s6 + $0x90] ss:$8 sps:$4 sm:$0xff]   ;;  %v1573_v50 = vld [vmem:[%s1773_s6 + $0x160] ss:$8 sps:$4 sm:$0xff]   ;;  %v1577_v52 = vld [vmem:[%s1773_s6 + $0x174] ss:$8 sps:$4 sm:$0xff]  }
  0x3f   : > { %832 = vmatpush1.bf16.msra.mxu0 %v1549_v33  ;;  %v1586_v51 = vld [vmem:[%s1819_s15 + $0x4] ss:$12 sps:$4 sm:$0xff]   ;;  %v1552_v55 = vld [vmem:[%s1773_s6 + $0xa0] ss:$8 sps:$4 sm:$0xff]   ;;  %v1556_v56 = vld [vmem:[%s1773_s6 + $0xb4] ss:$8 sps:$4 sm:$0xff]  }
  0x40   : > { %761 = vmatpush1.bf16.msra.mxu1 %v1522_v24  ;;  %833 = vmatprep.subr.bf16.mxu0 %v1553_v35  ;;  %v1550_v53 = vld [vmem:[%s1773_s6 + $0xa4] ss:$8 sps:$4 sm:$0xff]   ;;  %v1579_v54 = vld [vmem:[%s1773_s6 + $0x170] ss:$8 sps:$4 sm:$0xff]   ;;  %v1583_v57 = vld [vmem:[%s1819_s15 + $0x8] ss:$12 sps:$4 sm:$0xff]  }
  0x41   : > { %762 = vmatprep.subr.bf16.mxu1 %v1523_v27  ;;  %786 = vmatprep.mubr.bf16.mxu1 %v1586_v51  ;;  %v1558_v58 = vld [vmem:[%s1773_s6 + $0xb0] ss:$8 sps:$4 sm:$0xff]   ;;  %v1562_v59 = vld [vmem:[%s1773_s6 + $0xc4] ss:$8 sps:$4 sm:$0xff]   ;;  %v1564_v60 = vld [vmem:[%s1773_s6 + $0xc0] ss:$8 sps:$4 sm:$0xff]  }
  0x42   : > { %v1568_v61 = vld [vmem:[%s1773_s6 + $0xd4] ss:$8 sps:$4 sm:$0xff]   ;;  %v1587_v62 = vld [vmem:[%s1819_s15 + $0x20] ss:$12 sps:$4 sm:$0xff]   ;;  %v1570_v63 = vld [vmem:[%s1773_s6 + $0xd0] ss:$8 sps:$4 sm:$0xff]  }
  0x43   : > { %834 = vmatpush1.bf16.msra.mxu0 %v1555_v37  ;;  %v1574_v0 = vld [vmem:[%s1773_s6 + $0xe4] ss:$8 sps:$4 sm:$0xff]   ;;  %v1576_v1 = vld [vmem:[%s1773_s6 + $0xe0] ss:$8 sps:$4 sm:$0xff]   ;;  %v1580_v2 = vld [vmem:[%s1773_s6 + $0xf4] ss:$8 sps:$4 sm:$0xff]  }
  0x44   : > { %763 = vmatpush1.bf16.msra.mxu1 %v1525_v30  ;;  %835 = vmatprep.subr.bf16.mxu0 %v1559_v39  ;;  %v1591_v3 = vld [vmem:[%s1819_s15 + $0x38] ss:$12 sps:$4 sm:$0xff]   ;;  %v1584_v5 = vld [vmem:[%s1819_s15] ss:$12 sps:$4 sm:$0xff]   ;;  %v1588_v6 = vld [vmem:[%s1819_s15 + $0x1c] ss:$12 sps:$4 sm:$0xff]  }
  0x45   : > { %764 = vmatprep.subr.bf16.mxu1 %v1526_v31  ;;  %v1582_v4 = vld [vmem:[%s1773_s6 + $0xf0] ss:$8 sps:$4 sm:$0xff]   ;;  %v1592_v9 = vld [vmem:[%s1819_s15 + $0x34] ss:$12 sps:$4 sm:$0xff]  }
  0x46   : > { %v1595_v7 = vld [vmem:[%s1819_s15 + $0x50] ss:$12 sps:$4 sm:$0xff]   ;;  %v1590_v8 = vld [vmem:[%s1819_s15 + $0x18] ss:$12 sps:$4 sm:$0xff]   ;;  %v1598_v12 = vld [vmem:[%s1819_s15 + $0x48] ss:$12 sps:$4 sm:$0xff]  }
  0x47   : > { %836 = vmatpush1.bf16.msra.mxu0 %v1561_v41  ;;  %v1594_v10 = vld [vmem:[%s1819_s15 + $0x30] ss:$12 sps:$4 sm:$0xff]   ;;  %v1596_v11 = vld [vmem:[%s1819_s15 + $0x4c] ss:$12 sps:$4 sm:$0xff]  }
  0x48   : > { %765 = vmatpush1.bf16.msra.mxu1 %v1528_v34  ;;  %837 = vmatprep.subr.bf16.mxu0 %v1565_v43 }
  0x49   : > { %766 = vmatprep.subr.bf16.mxu1 %v1529_v36 }
  0x4b   : > { %838 = vmatpush1.bf16.msra.mxu0 %v1567_v45 }
  0x4c   : > { %767 = vmatpush1.bf16.msra.mxu1 %v1531_v38  ;;  %839 = vmatprep.subr.bf16.mxu0 %v1571_v47 }
  0x4d   : > { %768 = vmatprep.subr.bf16.mxu1 %v1532_v40 }
  0x4f   : > { %840 = vmatpush1.bf16.msra.mxu0 %v1573_v50 }
  0x50   : > { %769 = vmatpush1.bf16.msra.mxu1 %v1534_v42  ;;  %841 = vmatprep.subr.bf16.mxu0 %v1577_v52 }
  0x51   : > { %770 = vmatprep.subr.bf16.mxu1 %v1538_v44 }
  0x53   : > { %842 = vmatpush1.bf16.msra.mxu0 %v1579_v54 }
  0x54   : > { %771 = vmatpush1.bf16.msra.mxu1 %v1540_v46 }
  0x55   : > { %772 = vmatprep.subr.bf16.mxu1 %v1544_v48 }
  0x56   : > { %860 = vmatmul.mubr.bf16.vlgmr.msra.gmra.mrb[0].mxu0 %v1583_v57 }
  0x57   : > { %869 = vmatprep.mubr.bf16.mxu0 %v1655_v16 }
  0x58   : > { %773 = vmatpush1.bf16.msra.mxu1 %v1546_v49 }
  0x59   : > { %774 = vmatprep.subr.bf16.mxu1 %v1550_v53 }
  0x5c   : > { %775 = vmatpush1.bf16.msra.mxu1 %v1552_v55 }
  0x5d   : > { %776 = vmatprep.subr.bf16.mxu1 %v1556_v56 }
  0x5e   : > { %870 = vmatmul.mubr.bf16.gmra.mrb[4].mxu0 %v1587_v62 }
  0x5f   : > { %879 = vmatprep.mubr.bf16.mxu0 %v1655_v16 }
  0x60   : > { %777 = vmatpush1.bf16.msra.mxu1 %v1558_v58 }
  0x61   : > { %778 = vmatprep.subr.bf16.mxu1 %v1562_v59 }
  0x64   : > { %779 = vmatpush1.bf16.msra.mxu1 %v1564_v60 }
  0x65   : > { %780 = vmatprep.subr.bf16.mxu1 %v1568_v61 }
  0x66   : > { %880 = vmatmul.mubr.bf16.gmra.mrb[8].mxu0 %v1591_v3 }
  0x67   : > { %889 = vmatprep.mubr.bf16.mxu0 %v1655_v16 }
  0x68   : > { %781 = vmatpush1.bf16.msra.mxu1 %v1570_v63 }
  0x69   : > { %782 = vmatprep.subr.bf16.mxu1 %v1574_v0 }
  0x6c   : > { %783 = vmatpush1.bf16.msra.mxu1 %v1576_v1 }
  0x6d   : > { %784 = vmatprep.subr.bf16.mxu1 %v1580_v2 }
  0x6e   : > { %890 = vmatmul.mubr.bf16.gmra.mrb[12].mxu0 %v1595_v7 }
  0x70   : > { %785 = vmatpush1.bf16.msra.mxu1 %v1582_v4 }
  0x73   : > { %787 = vmatmul.mubr.bf16.vlgmr.msra.gmra.mrb[0].mxu1 %v1584_v5 }
  0x74   : > { %796 = vmatprep.mubr.bf16.mxu1 %v1588_v6 }
  0x7b   : > { %797 = vmatmul.mubr.bf16.gmra.mrb[4].mxu1 %v1590_v8 }
  0x7c   : > { %806 = vmatprep.mubr.bf16.mxu1 %v1592_v9 }
  0x83   : > { %807 = vmatmul.mubr.bf16.gmra.mrb[8].mxu1 %v1594_v10 }
  0x84   : > { %816 = vmatprep.mubr.bf16.mxu1 %v1596_v11 }
  0x8b   : > { %817 = vmatmul.mubr.bf16.gmra.mrb[12].mxu1 %v1598_v12 }
 0x129   : > { %v861_v13 = vpop.f32.mrb[0].mxu0 }
 0x12a   : > { %v863_v14 = vpop.f32.mrb[1].mxu0 }
 0x12b   : > { %v865_v15 = vpop.f32.mrb[2].mxu0 }
 0x12c   : > { %v867_v16 = vpop.f32.mrb[3].mxu0 }
 0x131   : > { %v871_v17 = vpop.f32.mrb[4].mxu0 }
 0x132   : > { %v873_v18 = vpop.f32.mrb[5].mxu0 }
 0x133   : > { %v875_v19 = vpop.f32.mrb[6].mxu0 }
 0x134   : > { %v877_v20 = vpop.f32.mrb[7].mxu0 }
 0x139   : > { %v881_v21 = vpop.f32.mrb[8].mxu0 }
 0x13a   : > { %v883_v22 = vpop.f32.mrb[9].mxu0 }
 0x13b   : > { %v885_v23 = vpop.f32.mrb[10].mxu0 }
 0x13c   : > { %v887_v24 = vpop.f32.mrb[11].mxu0 }
 0x141   : > { %v891_v32 = vpop.f32.mrb[12].mxu0 }
 0x142   : > { %v893_v34 = vpop.f32.mrb[13].mxu0 }
 0x143   : > { %v895_v35 = vpop.f32.mrb[14].mxu0 }
 0x144   : > { %v897_v36 = vpop.f32.mrb[15].mxu0 }
 0x146   : > { %v788_v25 = vpop.f32.mrb[0].mxu1 }
 0x147   : > { %v862_v26 = vadd.f32 %v861_v13, %v788_v25  ;;  %v790_v27 = vpop.f32.mrb[1].mxu1 }
 0x148   : > { %v864_v28 = vadd.f32 %v863_v14, %v790_v27  ;;  %v792_v29 = vpop.f32.mrb[2].mxu1 }
 0x149   : > { %v866_v30 = vadd.f32 %v865_v15, %v792_v29  ;;  %v794_v31 = vpop.f32.mrb[3].mxu1  ;;  %904 = vst [vmem:[#allocation2] sm:$0xff] (!%p1410_p13), %v862_v26 }
 0x14a   : > { %v868_v33 = vadd.f32 %v867_v16, %v794_v31  ;;  %905 = vst [vmem:[#allocation2 + $0x8] sm:$0xff] (!%p1410_p13), %v864_v28 }
 0x14b   : > { %906 = vst [vmem:[#allocation2 + $0x10] sm:$0xff] (!%p1410_p13), %v866_v30 }
 0x14c   : > { %907 = vst [vmem:[#allocation2 + $0x18] sm:$0xff] (!%p1410_p13), %v868_v33 }
 0x14e   : > { %v798_v37 = vpop.f32.mrb[4].mxu1 }
 0x14f   : > { %v872_v38 = vadd.f32 %v871_v17, %v798_v37  ;;  %v800_v39 = vpop.f32.mrb[5].mxu1 }
 0x150   : > { %v874_v40 = vadd.f32 %v873_v18, %v800_v39  ;;  %v802_v41 = vpop.f32.mrb[6].mxu1 }
 0x151   : > { %v876_v42 = vadd.f32 %v875_v19, %v802_v41  ;;  %v804_v43 = vpop.f32.mrb[7].mxu1  ;;  %908 = vst [vmem:[#allocation2 + $0x20] sm:$0xff] (!%p1410_p13), %v872_v38 }
 0x152   : > { %v878_v44 = vadd.f32 %v877_v20, %v804_v43  ;;  %909 = vst [vmem:[#allocation2 + $0x28] sm:$0xff] (!%p1410_p13), %v874_v40 }
 0x153   : > { %910 = vst [vmem:[#allocation2 + $0x30] sm:$0xff] (!%p1410_p13), %v876_v42 }
 0x154   : > { %911 = vst [vmem:[#allocation2 + $0x38] sm:$0xff] (!%p1410_p13), %v878_v44 }
 0x156   : > { %v808_v45 = vpop.f32.mrb[8].mxu1 }
 0x157   : > { %v882_v46 = vadd.f32 %v881_v21, %v808_v45  ;;  %v810_v47 = vpop.f32.mrb[9].mxu1 }
 0x158   : > { %v884_v48 = vadd.f32 %v883_v22, %v810_v47  ;;  %v812_v49 = vpop.f32.mrb[10].mxu1 }
 0x159   : > { %v886_v50 = vadd.f32 %v885_v23, %v812_v49  ;;  %v814_v51 = vpop.f32.mrb[11].mxu1  ;;  %912 = vst [vmem:[#allocation2 + $0x40] sm:$0xff] (!%p1410_p13), %v882_v46 }
 0x15a   : > { %v888_v52 = vadd.f32 %v887_v24, %v814_v51  ;;  %913 = vst [vmem:[#allocation2 + $0x48] sm:$0xff] (!%p1410_p13), %v884_v48 }
 0x15b   : > { %914 = vst [vmem:[#allocation2 + $0x50] sm:$0xff] (!%p1410_p13), %v886_v50 }
 0x15c   : > { %903 = sbr.rel (%p1410_p13) target bundleno = 357 (0x165), region = 58  ;;  %915 = vst [vmem:[#allocation2 + $0x58] sm:$0xff] (!%p1410_p13), %v888_v52 }
 0x15e   : > { %v818_v53 = vpop.f32.mrb[12].mxu1 }
 0x15f   : > { %v1852_v54 = vadd.f32 %v891_v32, %v818_v53  ;;  %v820_v55 = vpop.f32.mrb[13].mxu1 }
 0x160   : > { %v1854_v56 = vadd.f32 %v893_v34, %v820_v55  ;;  %v822_v57 = vpop.f32.mrb[14].mxu1 }
 0x161   : > { %v896_v58 = vadd.f32 %v895_v35, %v822_v57  ;;  %v824_v59 = vpop.f32.mrb[15].mxu1  ;;  %916 = vst [vmem:[#allocation2 + $0x60] sm:$0xff] (!%p1410_p13), %v1852_v54 }
 0x162   : > { %v1856_v60 = vadd.f32 %v897_v36, %v824_v59  ;;  %917 = vst [vmem:[#allocation2 + $0x68] sm:$0xff] (!%p1410_p13), %v1854_v56 }
 0x163   : > { %918 = vst [vmem:[#allocation2 + $0x70] sm:$0xff] %v896_v58 }
 0x164   : > { %919 = vst [vmem:[#allocation2 + $0x78] sm:$0xff] %v1856_v60 }
 0x165 PF: > { %p1411_p0 = scmp.le.s32.totalorder %s1637_s17, 0 }
 0x166   : > { %v924_v61 = vld [vmem:[#allocation2] sm:$0xff] (!%p1411_p0)  ;;  %v925_v62 = vld [vmem:[#allocation2 + $0x8] sm:$0xff] (!%p1411_p0)  ;;  %v926_v63 = vld [vmem:[#allocation2 + $0x10] sm:$0xff] (!%p1411_p0) }
 0x167   : > { %923 = sbr.rel (%p1411_p0) target bundleno = 369 (0x171), region = 62  ;;  %v940_v0 = vadd.f32 (!%p1411_p0), %v924_v61, %v862_v26  ;;  %v941_v1 = vadd.f32 (!%p1411_p0), %v925_v62, %v864_v28  ;;  %v942_v2 = vadd.f32 (!%p1411_p0), %v926_v63, %v866_v30  ;;  %v927_v3 = vld [vmem:[#allocation2 + $0x18] sm:$0xff] (!%p1411_p0)  ;;  %v928_v4 = vld [vmem:[#allocation2 + $0x20] sm:$0xff] (!%p1411_p0)  ;;  %v929_v5 = vld [vmem:[#allocation2 + $0x28] sm:$0xff] (!%p1411_p0) }
 0x168   : > { %v943_v6 = vadd.f32 (!%p1411_p0), %v927_v3, %v868_v33  ;;  %v944_v7 = vadd.f32 (!%p1411_p0), %v928_v4, %v872_v38  ;;  %v945_v8 = vadd.f32 (!%p1411_p0), %v929_v5, %v874_v40  ;;  %v930_v9 = vld [vmem:[#allocation2 + $0x30] sm:$0xff] (!%p1411_p0)  ;;  %v931_v10 = vld [vmem:[#allocation2 + $0x38] sm:$0xff] (!%p1411_p0)  ;;  %v932_v11 = vld [vmem:[#allocation2 + $0x40] sm:$0xff] (!%p1411_p0) }
 0x169   : > { %956 = vst [vmem:[#allocation2] sm:$0xff] (!%p1411_p0), %v940_v0  ;;  %957 = vst [vmem:[#allocation2 + $0x8] sm:$0xff] (!%p1411_p0), %v941_v1  ;;  %v946_v12 = vadd.f32 (!%p1411_p0), %v930_v9, %v876_v42  ;;  %v947_v13 = vadd.f32 (!%p1411_p0), %v931_v10, %v878_v44  ;;  %v948_v14 = vadd.f32 (!%p1411_p0), %v932_v11, %v882_v46  ;;  %v933_v15 = vld [vmem:[#allocation2 + $0x48] sm:$0xff] (!%p1411_p0)  ;;  %v934_v16 = vld [vmem:[#allocation2 + $0x50] sm:$0xff] (!%p1411_p0) }
 0x16a   : > { %958 = vst [vmem:[#allocation2 + $0x10] sm:$0xff] (!%p1411_p0), %v942_v2  ;;  %v935_v17 = vld [vmem:[#allocation2 + $0x58] sm:$0xff] (!%p1411_p0)  ;;  %959 = vst [vmem:[#allocation2 + $0x18] sm:$0xff] (!%p1411_p0), %v943_v6  ;;  %v949_v18 = vadd.f32 (!%p1411_p0), %v933_v15, %v884_v48  ;;  %v950_v19 = vadd.f32 (!%p1411_p0), %v934_v16, %v886_v50  ;;  %v936_v21 = vld [vmem:[#allocation2 + $0x60] sm:$0xff] (!%p1411_p0) }
 0x16b   : > { %960 = vst [vmem:[#allocation2 + $0x20] sm:$0xff] (!%p1411_p0), %v944_v7  ;;  %961 = vst [vmem:[#allocation2 + $0x28] sm:$0xff] (!%p1411_p0), %v945_v8  ;;  %v951_v20 = vadd.f32 (!%p1411_p0), %v935_v17, %v888_v52  ;;  %v937_v22 = vld [vmem:[#allocation2 + $0x68] sm:$0xff] (!%p1411_p0)  ;;  %v952_v24 = vadd.f32 (!%p1411_p0), %v936_v21, %v1852_v54  ;;  %v939_v27 = vld [vmem:[#allocation2 + $0x78] sm:$0xff] (!%p1411_p0) }
 0x16c   : > { %v938_v23 = vld [vmem:[#allocation2 + $0x70] sm:$0xff] (!%p1411_p0)  ;;  %962 = vst [vmem:[#allocation2 + $0x30] sm:$0xff] (!%p1411_p0), %v946_v12  ;;  %963 = vst [vmem:[#allocation2 + $0x38] sm:$0xff] (!%p1411_p0), %v947_v13  ;;  %v953_v25 = vadd.f32 (!%p1411_p0), %v937_v22, %v1854_v56  ;;  %v955_v28 = vadd.f32 (!%p1411_p0), %v939_v27, %v1856_v60 }
 0x16d   : > { %964 = vst [vmem:[#allocation2 + $0x40] sm:$0xff] (!%p1411_p0), %v948_v14  ;;  %v954_v26 = vadd.f32 (!%p1411_p0), %v938_v23, %v896_v58  ;;  %965 = vst [vmem:[#allocation2 + $0x48] sm:$0xff] (!%p1411_p0), %v949_v18 }
 0x16e   : > { %966 = vst [vmem:[#allocation2 + $0x50] sm:$0xff] %v950_v19  ;;  %967 = vst [vmem:[#allocation2 + $0x58] sm:$0xff] %v951_v20 }
 0x16f   : > { %968 = vst [vmem:[#allocation2 + $0x60] sm:$0xff] %v952_v24  ;;  %969 = vst [vmem:[#allocation2 + $0x68] sm:$0xff] %v953_v25 }
 0x170   : > { %970 = vst [vmem:[#allocation2 + $0x70] sm:$0xff] %v954_v26  ;;  %971 = vst [vmem:[#allocation2 + $0x78] sm:$0xff] %v955_v28 }
 0x171 PF: > { %p1412_p1 = scmp.ne.s32.totalorder %s1637_s17, 2 }
 0x173   : > { %975 = sbr.rel (%p1412_p1) target bundleno = 393 (0x189), region = 66  ;;  %v976_v29 = vld [vmem:[#allocation2] sm:$0xff] (!%p1412_p1)  ;;  %v977_v41 = vld [vmem:[#allocation2 + $0x8] sm:$0xff] (!%p1412_p1) }
 0x174   : > { %v978_v30 = vld [vmem:[#allocation2 + $0x10] sm:$0xff] (!%p1412_p1)  ;;  %v1008_v36 = vmul.f32 (!%p1412_p1), %v976_v29, %v976_v29  ;;  %v979_v43 = vld [vmem:[#allocation2 + $0x18] sm:$0xff] (!%p1412_p1)  ;;  %v1009_v52 = vmul.f32 (!%p1412_p1), %v977_v41, %v977_v41  ;;  %v1427_v1 = vpack.c.bf16 (!%p1412_p1), %v977_v41, %v976_v29 }
 0x175   : > { %v980_v31 = vld [vmem:[#allocation2 + $0x20] sm:$0xff] (!%p1412_p1)  ;;  %v992_v35 = vadd.f32 (!%p1412_p1), %v978_v30, %v976_v29  ;;  %v1010_v37 = vmul.f32 (!%p1412_p1), %v978_v30, %v978_v30  ;;  %v981_v44 = vld [vmem:[#allocation2 + $0x28] sm:$0xff] (!%p1412_p1)  ;;  %v999_v50 = vadd.f32 (!%p1412_p1), %v979_v43, %v977_v41  ;;  %v1011_v53 = vmul.f32 (!%p1412_p1), %v979_v43, %v979_v43 }
 0x176   : > { %v982_v32 = vld [vmem:[#allocation2 + $0x30] sm:$0xff] (!%p1412_p1)  ;;  %v1012_v38 = vmul.f32 (!%p1412_p1), %v980_v31, %v980_v31  ;;  %v988_v39 = vld [vmem:[#allocation2 + $0x60] sm:$0xff] (!%p1412_p1)  ;;  %v983_v45 = vld [vmem:[#allocation2 + $0x38] sm:$0xff] (!%p1412_p1)  ;;  %v1013_v57 = vmul.f32 (!%p1412_p1), %v981_v44, %v981_v44  ;;  %v1428_v4 = vpack.c.bf16 (!%p1412_p1), %v979_v43, %v978_v30  ;;  %v1429_v5 = vpack.c.bf16 (!%p1412_p1), %v981_v44, %v980_v31  ;;  %1088 = vst [vmem:[%s1768_s29] sm:$0xff] (!%p1412_p1), %v1427_v1 }
 0x177   : > { %v984_v33 = vld [vmem:[#allocation2 + $0x40] sm:$0xff] (!%p1412_p1)  ;;  %v990_v40 = vld [vmem:[#allocation2 + $0x70] sm:$0xff] (!%p1412_p1)  ;;  %v993_v42 = vadd.f32 (!%p1412_p1), %v992_v35, %v980_v31  ;;  %v1014_v46 = vmul.f32 (!%p1412_p1), %v982_v32, %v982_v32  ;;  %v1024_v48 = vadd.f32 (!%p1412_p1), %v1010_v37, %v1008_v36  ;;  %v985_v49 = vld [vmem:[#allocation2 + $0x48] sm:$0xff] (!%p1412_p1)  ;;  %v1020_v55 = vmul.f32 (!%p1412_p1), %v988_v39, %v988_v39 }
 0x178   : > { %v986_v34 = vld [vmem:[#allocation2 + $0x50] sm:$0xff] (!%p1412_p1)  ;;  %v1016_v47 = vmul.f32 (!%p1412_p1), %v984_v33, %v984_v33  ;;  %v1000_v58 = vadd.f32 (!%p1412_p1), %v999_v50, %v981_v44  ;;  %v1022_v59 = vmul.f32 (!%p1412_p1), %v990_v40, %v990_v40  ;;  %v1015_v60 = vmul.f32 (!%p1412_p1), %v983_v45, %v983_v45  ;;  %v987_v2 = vld [vmem:[#allocation2 + $0x58] sm:$0xff] (!%p1412_p1)  ;;  %v989_v8 = vld [vmem:[#allocation2 + $0x68] sm:$0xff] (!%p1412_p1)  ;;  %1089 = vst [vmem:[%s1768_s29 + $0x8] sm:$0xff] (!%p1412_p1), %v1428_v4 }
 0x179   : > { %v1018_v51 = vmul.f32 (!%p1412_p1), %v986_v34, %v986_v34  ;;  %v994_v54 = vadd.f32 (!%p1412_p1), %v993_v42, %v982_v32  ;;  %v1025_v56 = vadd.f32 (!%p1412_p1), %v1024_v48, %v1012_v38  ;;  %v1017_v61 = vmul.f32 (!%p1412_p1), %v985_v49, %v985_v49  ;;  %v991_v9 = vld [vmem:[#allocation2 + $0x78] sm:$0xff] (!%p1412_p1)  ;;  %1090 = vst [vmem:[%s1768_s29 + $0x10] sm:$0xff] (!%p1412_p1), %v1429_v5 }
 0x17a   : > { %v1031_v0 = vadd.f32 %v1011_v53, %v1009_v52  ;;  %v1001_v3 = vadd.f32 %v1000_v58, %v983_v45  ;;  %v1430_v6 = vpack.c.bf16 %v983_v45, %v982_v32  ;;  %v1431_v12 = vpack.c.bf16 %v985_v49, %v984_v33 }
 0x17b   : > { %v995_v62 = vadd.f32 %v994_v54, %v984_v33  ;;  %v1026_v63 = vadd.f32 %v1025_v56, %v1014_v46  ;;  %v1432_v14 = vpack.c.bf16 %v987_v2, %v986_v34  ;;  %v1433_v15 = vpack.c.bf16 %v989_v8, %v988_v39 }
 0x17c   : > { %v1032_v11 = vadd.f32 %v1031_v0, %v1013_v57  ;;  %v1002_v13 = vadd.f32 %v1001_v3, %v985_v49  ;;  %1091 = vst [vmem:[%s1768_s29 + $0x18] sm:$0xff] %v1430_v6  ;;  %v1434_v16 = vpack.c.bf16 %v991_v9, %v990_v40  ;;  %v1019_v19 = vmul.f32 %v987_v2, %v987_v2 }
 0x17d   : > { %v996_v7 = vadd.f32 %v995_v62, %v986_v34  ;;  %v1027_v10 = vadd.f32 %v1026_v63, %v1016_v47  ;;  %1092 = vst [vmem:[%s1768_s29 + $0x20] sm:$0xff] %v1431_v12  ;;  %1093 = vst [vmem:[%s1768_s29 + $0x28] sm:$0xff] %v1432_v14  ;;  %v1021_v24 = vmul.f32 %v989_v8, %v989_v8 }
 0x17e   : > { %v1033_v20 = vadd.f32 %v1032_v11, %v1015_v60  ;;  %v1003_v21 = vadd.f32 %v1002_v13, %v987_v2  ;;  %1094 = vst [vmem:[%s1768_s29 + $0x30] sm:$0xff] %v1433_v15  ;;  %1095 = vst [vmem:[%s1768_s29 + $0x38] sm:$0xff] %v1434_v16  ;;  %v1023_v28 = vmul.f32 %v991_v9, %v991_v9 }
 0x17f   : > { %v997_v17 = vadd.f32 %v996_v7, %v988_v39  ;;  %v1028_v18 = vadd.f32 %v1027_v10, %v1018_v51 }
 0x180   : > { %v1034_v25 = vadd.f32 %v1033_v20, %v1017_v61  ;;  %v1004_v26 = vadd.f32 %v1003_v21, %v989_v8 }
 0x181   : > { %v998_v22 = vadd.f32 %v997_v17, %v990_v40  ;;  %v1029_v23 = vadd.f32 %v1028_v18, %v1020_v55 }
 0x182   : > { %v1035_v29 = vadd.f32 %v1034_v25, %v1019_v19  ;;  %v1005_v30 = vadd.f32 %v1004_v26, %v991_v9 }
 0x183   : > { %1006 = vst [vmem:[%s1782_s10] sm:$0xff] %v998_v22  ;;  %v1030_v27 = vadd.f32 %v1029_v23, %v1022_v59 }
 0x184   : > { %v1036_v31 = vadd.f32 %v1035_v29, %v1021_v24  ;;  %1007 = vst [vmem:[%s1782_s10 + $0x8] sm:$0xff] %v1005_v30 }
 0x185   : > { %1038 = vst [vmem:[%s1787_s13] sm:$0xff] %v1030_v27 }
 0x186   : > { %v1037_v32 = vadd.f32 %v1036_v31, %v1023_v28 }
 0x188   : > { %1039 = vst [vmem:[%s1787_s13 + $0x8] sm:$0xff] %v1037_v32 }
 0x189 PF: > { %s15_s21 = sadd.s32 1, %s1653_s21   ;;  %s1905_s15 = smov %s1633_s16 }
 0x18a   : > { %p12_p2 = scmp.ge.s32.totalorder %s15_s21, 8   ;;  %s1906_s16 = smov %s1732_s28 }
 0x18b   : > { %s1907_s17 = smov %s1645_s19  ;;  %s1908_s18 = smov %s1649_s20 }
 0x18c   : > { %s1909_s19 = smov %s1912_s22  ;;  %s1910_s20 = smov %s1916_s23 }
 0x18d   :  { %14 = sbr.rel (!%p12_p2) target bundleno = 4 (0x4), region = 134 }

// kernel: dcgan_g_forward.24
= control target key start
LH: loop header
LB: loop body
LE: loop exit
PB: predicated region body
PF: predicated region fallthrough
CT: control target
= control target key end

     0   :  { %v64_v0 = vlaneseq  ;;  %s524_s0 = inlined_call_operand.vmem [shape: bf16[128,256], index: 0, kind: input, shape index: {}]   ;;  %s525_s1 = inlined_call_operand.vmem [shape: f32[1,256], index: 1, kind: input, shape index: {}]   ;;  %s526_s2 = inlined_call_operand.vmem [shape: f32[1,256], index: 2, kind: input, shape index: {}]   ;;  %s527_s3 = inlined_call_operand.vmem [shape: bf16[128,256], index: 3, kind: output, shape index: {}]  }
   0x1   :  { %v14_v1 = vld [vmem:[%s524_s0] sm:$0xff]  ;;  %v15_v6 = vld [vmem:[%s524_s0 + $0x8] sm:$0xff]  ;;  %v16_v7 = vld [vmem:[%s524_s0 + $0x10] sm:$0xff] }
   0x2   :  { %v62_v2 = vld [vmem:[%s525_s1] sm:$0x3]  ;;  %v30_v3 = vunpack.c.l.bf16 %v14_v1  ;;  %v31_v4 = vunpack.c.h.bf16 %v14_v1  ;;  %v65_v5 = vshrl.u32 %v64_v0, 7  ;;  %v17_v8 = vld [vmem:[%s524_s0 + $0x18] sm:$0xff]  ;;  %v32_v10 = vunpack.c.l.bf16 %v15_v6  ;;  %v19_v15 = vld [vmem:[%s524_s0 + $0x28] sm:$0xff] }
   0x3   :  { %v106_v9 = vld [vmem:[%s526_s2] sm:$0x3]  ;;  %v33_v11 = vunpack.c.h.bf16 %v15_v6  ;;  %v34_v12 = vunpack.c.l.bf16 %v16_v7  ;;  %v35_v13 = vunpack.c.h.bf16 %v16_v7  ;;  %v36_v18 = vunpack.c.l.bf16 %v17_v8  ;;  %v20_v20 = vld [vmem:[%s524_s0 + $0x30] sm:$0xff]  ;;  %v21_v21 = vld [vmem:[%s524_s0 + $0x38] sm:$0xff] }
   0x4   :  { %v18_v14 = vld [vmem:[%s524_s0 + $0x20] sm:$0xff]  ;;  %v66_v16 = vsub.s32 0, %v65_v5  ;;  %v70_v17 = vsub.s32 1, %v65_v5  ;;  %v37_v19 = vunpack.c.h.bf16 %v17_v8  ;;  %v40_v24 = vunpack.c.l.bf16 %v19_v15 }
   0x5   :  { %v38_v22 = vunpack.c.l.bf16 %v18_v14  ;;  %v39_v23 = vunpack.c.h.bf16 %v18_v14  ;;  %v41_v25 = vunpack.c.h.bf16 %v19_v15  ;;  %v42_v30 = vunpack.c.l.bf16 %v20_v20 }
   0x6   :  { %v380_v26 = vrot.slane %v62_v2, %v66_v16  ;;  %v382_v27 = vrot.slane %v62_v2, %v70_v17  ;;  %v384_v28 = vrot.slane %v106_v9, %v66_v16  ;;  %v386_v29 = vrot.slane %v106_v9, %v70_v17 }
   0x7   :  { %v43_v31 = vunpack.c.h.bf16 %v20_v20  ;;  %v44_v32 = vunpack.c.l.bf16 %v21_v21  ;;  %v45_v33 = vunpack.c.h.bf16 %v21_v21 }
   0x8   :  { %v74_v34 = vmul.f32 %v380_v26, %v30_v3  ;;  %v75_v35 = vmul.f32 %v382_v27, %v31_v4  ;;  %v76_v36 = vmul.f32 %v380_v26, %v32_v10  ;;  %v77_v37 = vmul.f32 %v382_v27, %v33_v11  ;;  %v22_v10 = vld [vmem:[%s524_s0 + $0x40] sm:$0xff] }
   0x9   :  { %v78_v38 = vmul.f32 %v380_v26, %v34_v12  ;;  %v79_v39 = vmul.f32 %v382_v27, %v35_v13  ;;  %v80_v40 = vmul.f32 %v380_v26, %v36_v18  ;;  %v81_v41 = vmul.f32 %v382_v27, %v37_v19  ;;  %v23_v19 = vld [vmem:[%s524_s0 + $0x48] sm:$0xff] }
   0xa   :  { %v118_v42 = vadd.f32 %v384_v28, %v74_v34  ;;  %v119_v43 = vadd.f32 %v386_v29, %v75_v35  ;;  %v120_v44 = vadd.f32 %v384_v28, %v76_v36  ;;  %v121_v45 = vadd.f32 %v386_v29, %v77_v37 }
   0xb   :  { %v122_v46 = vadd.f32 %v384_v28, %v78_v38  ;;  %v123_v47 = vadd.f32 %v386_v29, %v79_v39  ;;  %v124_v48 = vadd.f32 %v384_v28, %v80_v40  ;;  %v125_v49 = vadd.f32 %v386_v29, %v81_v41 }
   0xc   :  { %v150_v50 = vmax.f32 %v118_v42, 0.0  ;;  %v151_v51 = vmax.f32 %v119_v43, 0.0  ;;  %v152_v52 = vmax.f32 %v120_v44, 0.0  ;;  %v153_v53 = vmax.f32 %v121_v45, 0.0 }
   0xd   :  { %v154_v54 = vmax.f32 %v122_v46, 0.0  ;;  %v155_v55 = vmax.f32 %v123_v47, 0.0  ;;  %v156_v56 = vmax.f32 %v124_v48, 0.0  ;;  %v157_v57 = vmax.f32 %v125_v49, 0.0 }
   0xe   :  { %v314_v58 = vpack.c.bf16 %v151_v51, %v150_v50  ;;  %v315_v59 = vpack.c.bf16 %v153_v53, %v152_v52  ;;  %v82_v60 = vmul.f32 %v380_v26, %v38_v22  ;;  %v83_v61 = vmul.f32 %v382_v27, %v39_v23  ;;  %v26_v50 = vld [vmem:[%s524_s0 + $0x60] sm:$0xff] }
   0xf   :  { %v316_v62 = vpack.c.bf16 %v155_v55, %v154_v54  ;;  %v317_v63 = vpack.c.bf16 %v157_v57, %v156_v56  ;;  %v84_v0 = vmul.f32 %v380_v26, %v40_v24  ;;  %v85_v1 = vmul.f32 %v382_v27, %v41_v25  ;;  %v24_v24 = vld [vmem:[%s524_s0 + $0x50] sm:$0xff] }
  0x10   :  { %278 = vst [vmem:[%s527_s3] sm:$0xff] %v314_v58  ;;  %279 = vst [vmem:[%s527_s3 + $0x8] sm:$0xff] %v315_v59  ;;  %v126_v2 = vadd.f32 %v384_v28, %v82_v60  ;;  %v127_v3 = vadd.f32 %v386_v29, %v83_v61  ;;  %v86_v4 = vmul.f32 %v380_v26, %v42_v30  ;;  %v46_v23 = vunpack.c.l.bf16 %v22_v10 }
  0x11   :  { %v87_v5 = vmul.f32 %v382_v27, %v43_v31  ;;  %280 = vst [vmem:[%s527_s3 + $0x10] sm:$0xff] %v316_v62  ;;  %281 = vst [vmem:[%s527_s3 + $0x18] sm:$0xff] %v317_v63  ;;  %v128_v6 = vadd.f32 %v384_v28, %v84_v0  ;;  %v129_v7 = vadd.f32 %v386_v29, %v85_v1  ;;  %v48_v36 = vunpack.c.l.bf16 %v23_v19  ;;  %v27_v63 = vld [vmem:[%s524_s0 + $0x68] sm:$0xff] }
  0x12   :  { %v88_v8 = vmul.f32 %v380_v26, %v44_v32  ;;  %v89_v9 = vmul.f32 %v382_v27, %v45_v33  ;;  %v158_v11 = vmax.f32 %v126_v2, 0.0  ;;  %v159_v12 = vmax.f32 %v127_v3, 0.0  ;;  %v25_v33 = vld [vmem:[%s524_s0 + $0x58] sm:$0xff] }
  0x13   :  { %v130_v13 = vadd.f32 %v384_v28, %v86_v4  ;;  %v131_v14 = vadd.f32 %v386_v29, %v87_v5  ;;  %v160_v15 = vmax.f32 %v128_v6, 0.0  ;;  %v161_v16 = vmax.f32 %v129_v7, 0.0  ;;  %v28_v4 = vld [vmem:[%s524_s0 + $0x70] sm:$0xff] }
  0x14   :  { %v132_v17 = vadd.f32 %v384_v28, %v88_v8  ;;  %v133_v18 = vadd.f32 %v386_v29, %v89_v9  ;;  %v318_v20 = vpack.c.bf16 %v159_v12, %v158_v11  ;;  %v47_v32 = vunpack.c.h.bf16 %v22_v10  ;;  %v29_v9 = vld [vmem:[%s524_s0 + $0x78] sm:$0xff] }
  0x15   :  { %v162_v21 = vmax.f32 %v130_v13, 0.0  ;;  %v163_v22 = vmax.f32 %v131_v14, 0.0  ;;  %v319_v25 = vpack.c.bf16 %v161_v16, %v160_v15  ;;  %v90_v35 = vmul.f32 %v380_v26, %v46_v23 }
  0x16   :  { %v164_v30 = vmax.f32 %v132_v17, 0.0  ;;  %v165_v31 = vmax.f32 %v133_v18, 0.0  ;;  %282 = vst [vmem:[%s527_s3 + $0x20] sm:$0xff] %v318_v20  ;;  %v49_v37 = vunpack.c.h.bf16 %v23_v19  ;;  %v91_v39 = vmul.f32 %v382_v27, %v47_v32 }
  0x17   :  { %v320_v34 = vpack.c.bf16 %v163_v22, %v162_v21  ;;  %283 = vst [vmem:[%s527_s3 + $0x28] sm:$0xff] %v319_v25  ;;  %v50_v40 = vunpack.c.l.bf16 %v24_v24  ;;  %v51_v41 = vunpack.c.h.bf16 %v24_v24  ;;  %v134_v42 = vadd.f32 %v384_v28, %v90_v35 }
  0x18   :  { %v321_v38 = vpack.c.bf16 %v165_v31, %v164_v30  ;;  %v92_v43 = vmul.f32 %v380_v26, %v48_v36  ;;  %v93_v44 = vmul.f32 %v382_v27, %v49_v37  ;;  %v52_v45 = vunpack.c.l.bf16 %v25_v33 }
  0x19   :  { %284 = vst [vmem:[%s527_s3 + $0x30] sm:$0xff] %v320_v34  ;;  %v135_v46 = vadd.f32 %v386_v29, %v91_v39  ;;  %v94_v47 = vmul.f32 %v380_v26, %v50_v40  ;;  %v95_v48 = vmul.f32 %v382_v27, %v51_v41  ;;  %v53_v49 = vunpack.c.h.bf16 %v25_v33 }
  0x1a   :  { %285 = vst [vmem:[%s527_s3 + $0x38] sm:$0xff] %v321_v38  ;;  %v166_v51 = vmax.f32 %v134_v42, 0.0  ;;  %v136_v52 = vadd.f32 %v384_v28, %v92_v43  ;;  %v137_v53 = vadd.f32 %v386_v29, %v93_v44  ;;  %v96_v54 = vmul.f32 %v380_v26, %v52_v45 }
  0x1b   :  { %v167_v55 = vmax.f32 %v135_v46, 0.0  ;;  %v138_v56 = vadd.f32 %v384_v28, %v94_v47  ;;  %v139_v57 = vadd.f32 %v386_v29, %v95_v48  ;;  %v97_v58 = vmul.f32 %v382_v27, %v53_v49 }
  0x1c   :  { %v168_v59 = vmax.f32 %v136_v52, 0.0  ;;  %v169_v60 = vmax.f32 %v137_v53, 0.0  ;;  %v140_v61 = vadd.f32 %v384_v28, %v96_v54  ;;  %v54_v62 = vunpack.c.l.bf16 %v26_v50 }
  0x1d   :  { %v322_v0 = vpack.c.bf16 %v167_v55, %v166_v51  ;;  %v170_v1 = vmax.f32 %v138_v56, 0.0  ;;  %v171_v2 = vmax.f32 %v139_v57, 0.0  ;;  %v141_v3 = vadd.f32 %v386_v29, %v97_v58 }
  0x1e   :  { %v323_v5 = vpack.c.bf16 %v169_v60, %v168_v59  ;;  %v172_v6 = vmax.f32 %v140_v61, 0.0  ;;  %v55_v7 = vunpack.c.h.bf16 %v26_v50  ;;  %v98_v8 = vmul.f32 %v380_v26, %v54_v62 }
  0x1f   :  { %286 = vst [vmem:[%s527_s3 + $0x40] sm:$0xff] %v322_v0  ;;  %v324_v10 = vpack.c.bf16 %v171_v2, %v170_v1  ;;  %v173_v11 = vmax.f32 %v141_v3, 0.0  ;;  %v56_v12 = vunpack.c.l.bf16 %v27_v63  ;;  %v57_v13 = vunpack.c.h.bf16 %v27_v63 }
  0x20   :  { %287 = vst [vmem:[%s527_s3 + $0x48] sm:$0xff] %v323_v5  ;;  %v99_v14 = vmul.f32 %v382_v27, %v55_v7  ;;  %v142_v15 = vadd.f32 %v384_v28, %v98_v8  ;;  %v58_v16 = vunpack.c.l.bf16 %v28_v4  ;;  %v59_v17 = vunpack.c.h.bf16 %v28_v4 }
  0x21   :  { %288 = vst [vmem:[%s527_s3 + $0x50] sm:$0xff] %v324_v10  ;;  %v325_v18 = vpack.c.bf16 %v173_v11, %v172_v6  ;;  %v100_v19 = vmul.f32 %v380_v26, %v56_v12  ;;  %v101_v20 = vmul.f32 %v382_v27, %v57_v13  ;;  %v60_v21 = vunpack.c.l.bf16 %v29_v9 }
  0x22   :  { %v143_v22 = vadd.f32 %v386_v29, %v99_v14  ;;  %v174_v23 = vmax.f32 %v142_v15, 0.0  ;;  %v102_v24 = vmul.f32 %v380_v26, %v58_v16  ;;  %v103_v25 = vmul.f32 %v382_v27, %v59_v17 }
  0x23   :  { %289 = vst [vmem:[%s527_s3 + $0x58] sm:$0xff] %v325_v18  ;;  %v144_v30 = vadd.f32 %v384_v28, %v100_v19  ;;  %v145_v31 = vadd.f32 %v386_v29, %v101_v20  ;;  %v61_v32 = vunpack.c.h.bf16 %v29_v9  ;;  %v104_v33 = vmul.f32 %v380_v26, %v60_v21 }
  0x24   :  { %v175_v34 = vmax.f32 %v143_v22, 0.0  ;;  %v146_v35 = vadd.f32 %v384_v28, %v102_v24  ;;  %v147_v36 = vadd.f32 %v386_v29, %v103_v25 }
  0x25   :  { %v176_v37 = vmax.f32 %v144_v30, 0.0  ;;  %v177_v38 = vmax.f32 %v145_v31, 0.0  ;;  %v105_v39 = vmul.f32 %v382_v27, %v61_v32  ;;  %v148_v40 = vadd.f32 %v384_v28, %v104_v33 }
  0x26   :  { %v326_v41 = vpack.c.bf16 %v175_v34, %v174_v23  ;;  %v178_v42 = vmax.f32 %v146_v35, 0.0  ;;  %v179_v43 = vmax.f32 %v147_v36, 0.0 }
  0x27   :  { %v327_v44 = vpack.c.bf16 %v177_v38, %v176_v37  ;;  %v149_v45 = vadd.f32 %v386_v29, %v105_v39  ;;  %v180_v46 = vmax.f32 %v148_v40, 0.0 }
  0x28   :  { %290 = vst [vmem:[%s527_s3 + $0x60] sm:$0xff] %v326_v41  ;;  %v328_v26 = vpack.c.bf16 %v179_v43, %v178_v42 }
  0x29   :  { %291 = vst [vmem:[%s527_s3 + $0x68] sm:$0xff] %v327_v44  ;;  %v181_v47 = vmax.f32 %v149_v45, 0.0 }
  0x2a   :  { %292 = vst [vmem:[%s527_s3 + $0x70] sm:$0xff] %v328_v26 }
  0x2b   :  { %v329_v27 = vpack.c.bf16 %v181_v47, %v180_v46 }
  0x2d   :  { %293 = vst [vmem:[%s527_s3 + $0x78] sm:$0xff] %v329_v27 }

// kernel: dcgan_g_forward.25
= control target key start
LH: loop header
LB: loop body
LE: loop exit
PB: predicated region body
PF: predicated region fallthrough
CT: control target
= control target key end

     0   :  { %s2181_s9 = smov 0   ;;  %s2183_s10 = smov 0   ;;  %s2670_s0 = inlined_call_operand.vmem [shape: bf16[512,768], index: 0, kind: input, shape index: {}]   ;;  %s2671_s1 = inlined_call_operand.vmem [shape: bf16[768,128], index: 1, kind: input, shape index: {}]   ;;  %s2672_s2 = inlined_call_operand.vmem [shape: f32[512,128], index: 2, kind: output, shape index: {}]  }
   0x1   :  { %s2185_s11 = smov 0   ;;  %s2187_s12 = smov 0  }
   0x2   :  { %s2189_s13 = smov 0   ;;  %s2191_s14 = smov 0  }
   0x3   :  { %s2193_s15 = smov 0  }
   0x4 LB: > { %s24_s16 = sadd.s32 1, %s2156_s13  ;;  %s31_s17 = sadd.s32 1, %s2160_s14  ;;  %s2164_s15 = sphi %s2193_s15, %s12_s15   ;;  %s2160_s14 = sphi %s2191_s14, %s2678_s14   ;;  %s2156_s13 = sphi %s2189_s13, %s2677_s13   ;;  %s2152_s12 = sphi %s2187_s12, %s2676_s12   ;;  %s2148_s11 = sphi %s2185_s11, %s2675_s11   ;;  %s2144_s10 = sphi %s2183_s10, %s2674_s10   ;;  %s2140_s9 = sphi %s2181_s9, %s2673_s9  }
   0x5   : > { %p25_p0 = scmp.ge.s32.totalorder %s24_s16, 2  ;;  %p47_p1 = scmp.ne.s32.totalorder %s2144_s10, %s2140_s9 }
   0x6   : > { %p48_p2 = scmp.eq.s32.totalorder %s2164_s15, 0  ;;  %s40_s21 = sadd.s32 1, %s2144_s10 }
   0x7   : > { %s2680_s16 = smov (%p25_p0, %s24_s16), 0  ;;  %s2682_s17 = smov (!%p25_p0, %s31_s17), %s2160_s14 }
   0x8   : > { %p49_p3 = por %p48_p2, %p47_p1  ;;  %p33_p4 = scmp.ge.s32.totalorder %s2682_s17, 2 }
   0x9   : > { %s36_s18 = ssub.s32 %s2156_s13, %s2680_s16  ;;  %p1550_p6 = scmp.ge.s32.totalorder %s2164_s15, 4 }
   0xa   : > { %s2684_s17 = smov (%p33_p4, %s2682_s17), 0 }
   0xb   : > { %s35_s19 = ssub.s32 %s2160_s14, %s2684_s17  ;;  %129 = sbr.rel (%p1550_p6) target bundleno = 64 (0x40), region = 16 }
   0xc   : > { %s37_s20 = sor.u32 %s36_s18, %s35_s19 }
   0xd   : > { %p38_p5 = scmp.eq.s32.totalorder %s37_s20, 0 }
   0xf   : > { %s2232_s22 = scalar_select %p38_p5, %s2144_s10, %s40_s21  }
  0x12   : > { %132 = sbr.rel (!%p49_p3) target bundleno = 64 (0x40), region = 20  ;;  %s134_s23 = sand.u32 (%p49_p3), 1, %s2144_s10  }
  0x13   : > { %s138_s24 = smul.u32 (%p49_p3), 3, %s2156_s13 }
  0x14   : > { %s1899_s25 = smul.u32 (%p49_p3), 384, %s134_s23 }
  0x15   : > { %s1900_s26 = smul.u32 (%p49_p3), 192, %s2160_s14 }
  0x16   : > { %s2246_s4 = scalar_lea.vmem (%p49_p3), [#allocation3], %s1899_s25 }
  0x17   : > { %s140_s27 = sadd.s32 (%p49_p3), %s1900_s26, %s138_s24 }
  0x18   : > { %s1553_s28 = sshll.u32 (%p49_p3), %s140_s27, 2 }
  0x19   : > { %s2241_s3 = scalar_lea.vmem %s2670_s0, %s1553_s28 }
  0x1a   : > { %v157_v0 = vld [vmem:[%s2241_s3] sm:$0xff]  ;;  %v159_v1 = vld [vmem:[%s2241_s3 + $0x18] sm:$0xff]  ;;  %v161_v2 = vld [vmem:[%s2241_s3 + $0x30] sm:$0xff] }
  0x1b   : > { %158 = vst [vmem:[%s2246_s4] sm:$0xff] %v157_v0  ;;  %160 = vst [vmem:[%s2246_s4 + $0xc] sm:$0xff] %v159_v1  ;;  %v163_v3 = vld [vmem:[%s2241_s3 + $0x48] sm:$0xff]  ;;  %v165_v4 = vld [vmem:[%s2241_s3 + $0x60] sm:$0xff] }
  0x1c   : > { %162 = vst [vmem:[%s2246_s4 + $0x18] sm:$0xff] %v161_v2  ;;  %v167_v5 = vld [vmem:[%s2241_s3 + $0x78] sm:$0xff]  ;;  %164 = vst [vmem:[%s2246_s4 + $0x24] sm:$0xff] %v163_v3  ;;  %v169_v6 = vld [vmem:[%s2241_s3 + $0x90] sm:$0xff] }
  0x1d   : > { %166 = vst [vmem:[%s2246_s4 + $0x30] sm:$0xff] %v165_v4  ;;  %168 = vst [vmem:[%s2246_s4 + $0x3c] sm:$0xff] %v167_v5  ;;  %v171_v7 = vld [vmem:[%s2241_s3 + $0xa8] sm:$0xff]  ;;  %v173_v8 = vld [vmem:[%s2241_s3 + $0xc0] sm:$0xff] }
  0x1e   : > { %170 = vst [vmem:[%s2246_s4 + $0x48] sm:$0xff] %v169_v6  ;;  %172 = vst [vmem:[%s2246_s4 + $0x54] sm:$0xff] %v171_v7  ;;  %v175_v9 = vld [vmem:[%s2241_s3 + $0xd8] sm:$0xff]  ;;  %v177_v10 = vld [vmem:[%s2241_s3 + $0xf0] sm:$0xff] }
  0x1f   : > { %174 = vst [vmem:[%s2246_s4 + $0x60] sm:$0xff] %v173_v8  ;;  %v179_v11 = vld [vmem:[%s2241_s3 + $0x108] sm:$0xff]  ;;  %176 = vst [vmem:[%s2246_s4 + $0x6c] sm:$0xff] %v175_v9  ;;  %v181_v12 = vld [vmem:[%s2241_s3 + $0x120] sm:$0xff] }
  0x20   : > { %178 = vst [vmem:[%s2246_s4 + $0x78] sm:$0xff] %v177_v10  ;;  %180 = vst [vmem:[%s2246_s4 + $0x84] sm:$0xff] %v179_v11  ;;  %v183_v13 = vld [vmem:[%s2241_s3 + $0x138] sm:$0xff]  ;;  %v185_v14 = vld [vmem:[%s2241_s3 + $0x150] sm:$0xff] }
  0x21   : > { %182 = vst [vmem:[%s2246_s4 + $0x90] sm:$0xff] %v181_v12  ;;  %184 = vst [vmem:[%s2246_s4 + $0x9c] sm:$0xff] %v183_v13  ;;  %v187_v15 = vld [vmem:[%s2241_s3 + $0x168] sm:$0xff]  ;;  %v189_v16 = vld [vmem:[%s2241_s3 + $0x180] sm:$0xff] }
  0x22   : > { %186 = vst [vmem:[%s2246_s4 + $0xa8] sm:$0xff] %v185_v14  ;;  %v191_v17 = vld [vmem:[%s2241_s3 + $0x198] sm:$0xff]  ;;  %188 = vst [vmem:[%s2246_s4 + $0xb4] sm:$0xff] %v187_v15  ;;  %v193_v18 = vld [vmem:[%s2241_s3 + $0x1b0] sm:$0xff] }
  0x23   : > { %190 = vst [vmem:[%s2246_s4 + $0xc0] sm:$0xff] %v189_v16  ;;  %192 = vst [vmem:[%s2246_s4 + $0xcc] sm:$0xff] %v191_v17  ;;  %v195_v19 = vld [vmem:[%s2241_s3 + $0x1c8] sm:$0xff]  ;;  %v197_v20 = vld [vmem:[%s2241_s3 + $0x1e0] sm:$0xff] }
  0x24   : > { %194 = vst [vmem:[%s2246_s4 + $0xd8] sm:$0xff] %v193_v18  ;;  %196 = vst [vmem:[%s2246_s4 + $0xe4] sm:$0xff] %v195_v19  ;;  %v199_v21 = vld [vmem:[%s2241_s3 + $0x1f8] sm:$0xff]  ;;  %v201_v22 = vld [vmem:[%s2241_s3 + $0x210] sm:$0xff] }
  0x25   : > { %198 = vst [vmem:[%s2246_s4 + $0xf0] sm:$0xff] %v197_v20  ;;  %v203_v23 = vld [vmem:[%s2241_s3 + $0x228] sm:$0xff]  ;;  %200 = vst [vmem:[%s2246_s4 + $0xfc] sm:$0xff] %v199_v21  ;;  %v205_v24 = vld [vmem:[%s2241_s3 + $0x240] sm:$0xff] }
  0x26   : > { %202 = vst [vmem:[%s2246_s4 + $0x108] sm:$0xff] %v201_v22  ;;  %204 = vst [vmem:[%s2246_s4 + $0x114] sm:$0xff] %v203_v23  ;;  %v207_v25 = vld [vmem:[%s2241_s3 + $0x258] sm:$0xff]  ;;  %v209_v26 = vld [vmem:[%s2241_s3 + $0x270] sm:$0xff] }
  0x27   : > { %206 = vst [vmem:[%s2246_s4 + $0x120] sm:$0xff] %v205_v24  ;;  %208 = vst [vmem:[%s2246_s4 + $0x12c] sm:$0xff] %v207_v25  ;;  %v211_v27 = vld [vmem:[%s2241_s3 + $0x288] sm:$0xff]  ;;  %v213_v28 = vld [vmem:[%s2241_s3 + $0x2a0] sm:$0xff] }
  0x28   : > { %210 = vst [vmem:[%s2246_s4 + $0x138] sm:$0xff] %v209_v26  ;;  %v215_v29 = vld [vmem:[%s2241_s3 + $0x2b8] sm:$0xff]  ;;  %212 = vst [vmem:[%s2246_s4 + $0x144] sm:$0xff] %v211_v27  ;;  %v217_v30 = vld [vmem:[%s2241_s3 + $0x2d0] sm:$0xff] }
  0x29   : > { %214 = vst [vmem:[%s2246_s4 + $0x150] sm:$0xff] %v213_v28  ;;  %216 = vst [vmem:[%s2246_s4 + $0x15c] sm:$0xff] %v215_v29  ;;  %v219_v31 = vld [vmem:[%s2241_s3 + $0x2e8] sm:$0xff]  ;;  %v1556_v33 = vld [vmem:[%s2241_s3 + $0x20] sm:$0xf] }
  0x2a   : > { %v1554_v32 = vld [vmem:[%s2241_s3 + $0x8] sm:$0xf]  ;;  %218 = vst [vmem:[%s2246_s4 + $0x168] sm:$0xff] %v217_v30  ;;  %220 = vst [vmem:[%s2246_s4 + $0x174] sm:$0xff] %v219_v31  ;;  %v1558_v34 = vld [vmem:[%s2241_s3 + $0x38] sm:$0xf] }
  0x2b   : > { %1555 = vst [vmem:[%s2246_s4 + $0x8] sm:$0xf] %v1554_v32  ;;  %v1560_v35 = vld [vmem:[%s2241_s3 + $0x50] sm:$0xf]  ;;  %1557 = vst [vmem:[%s2246_s4 + $0x14] sm:$0xf] %v1556_v33 }
  0x2c   : > { %1559 = vst [vmem:[%s2246_s4 + $0x20] sm:$0xf] %v1558_v34  ;;  %1561 = vst [vmem:[%s2246_s4 + $0x2c] sm:$0xf] %v1560_v35  ;;  %v1562_v36 = vld [vmem:[%s2241_s3 + $0x68] sm:$0xf] }
  0x2d   : > { %v1564_v37 = vld [vmem:[%s2241_s3 + $0x80] sm:$0xf]  ;;  %v1566_v38 = vld [vmem:[%s2241_s3 + $0x98] sm:$0xf]  ;;  %1563 = vst [vmem:[%s2246_s4 + $0x38] sm:$0xf] %v1562_v36 }
  0x2e   : > { %1565 = vst [vmem:[%s2246_s4 + $0x44] sm:$0xf] %v1564_v37  ;;  %1567 = vst [vmem:[%s2246_s4 + $0x50] sm:$0xf] %v1566_v38  ;;  %v1568_v39 = vld [vmem:[%s2241_s3 + $0xb0] sm:$0xf] }
  0x2f   : > { %v1570_v40 = vld [vmem:[%s2241_s3 + $0xc8] sm:$0xf]  ;;  %v1572_v41 = vld [vmem:[%s2241_s3 + $0xe0] sm:$0xf]  ;;  %1569 = vst [vmem:[%s2246_s4 + $0x5c] sm:$0xf] %v1568_v39 }
  0x30   : > { %1571 = vst [vmem:[%s2246_s4 + $0x68] sm:$0xf] %v1570_v40  ;;  %1573 = vst [vmem:[%s2246_s4 + $0x74] sm:$0xf] %v1572_v41  ;;  %v1574_v42 = vld [vmem:[%s2241_s3 + $0xf8] sm:$0xf] }
  0x31   : > { %v1576_v43 = vld [vmem:[%s2241_s3 + $0x110] sm:$0xf]  ;;  %v1578_v44 = vld [vmem:[%s2241_s3 + $0x128] sm:$0xf]  ;;  %1575 = vst [vmem:[%s2246_s4 + $0x80] sm:$0xf] %v1574_v42 }
  0x32   : > { %1577 = vst [vmem:[%s2246_s4 + $0x8c] sm:$0xf] %v1576_v43  ;;  %1579 = vst [vmem:[%s2246_s4 + $0x98] sm:$0xf] %v1578_v44  ;;  %v1580_v45 = vld [vmem:[%s2241_s3 + $0x140] sm:$0xf] }
  0x33   : > { %v1582_v46 = vld [vmem:[%s2241_s3 + $0x158] sm:$0xf]  ;;  %v1584_v47 = vld [vmem:[%s2241_s3 + $0x170] sm:$0xf]  ;;  %1581 = vst [vmem:[%s2246_s4 + $0xa4] sm:$0xf] %v1580_v45 }
  0x34   : > { %1583 = vst [vmem:[%s2246_s4 + $0xb0] sm:$0xf] %v1582_v46  ;;  %1585 = vst [vmem:[%s2246_s4 + $0xbc] sm:$0xf] %v1584_v47  ;;  %v1586_v48 = vld [vmem:[%s2241_s3 + $0x188] sm:$0xf] }
  0x35   : > { %v1588_v49 = vld [vmem:[%s2241_s3 + $0x1a0] sm:$0xf]  ;;  %v1590_v50 = vld [vmem:[%s2241_s3 + $0x1b8] sm:$0xf]  ;;  %1587 = vst [vmem:[%s2246_s4 + $0xc8] sm:$0xf] %v1586_v48 }
  0x36   : > { %1589 = vst [vmem:[%s2246_s4 + $0xd4] sm:$0xf] %v1588_v49  ;;  %1591 = vst [vmem:[%s2246_s4 + $0xe0] sm:$0xf] %v1590_v50  ;;  %v1592_v51 = vld [vmem:[%s2241_s3 + $0x1d0] sm:$0xf] }
  0x37   : > { %v1594_v52 = vld [vmem:[%s2241_s3 + $0x1e8] sm:$0xf]  ;;  %v1596_v53 = vld [vmem:[%s2241_s3 + $0x200] sm:$0xf]  ;;  %1593 = vst [vmem:[%s2246_s4 + $0xec] sm:$0xf] %v1592_v51 }
  0x38   : > { %1595 = vst [vmem:[%s2246_s4 + $0xf8] sm:$0xf] %v1594_v52  ;;  %1597 = vst [vmem:[%s2246_s4 + $0x104] sm:$0xf] %v1596_v53  ;;  %v1598_v54 = vld [vmem:[%s2241_s3 + $0x218] sm:$0xf] }
  0x39   : > { %v1600_v55 = vld [vmem:[%s2241_s3 + $0x230] sm:$0xf]  ;;  %v1602_v56 = vld [vmem:[%s2241_s3 + $0x248] sm:$0xf]  ;;  %1599 = vst [vmem:[%s2246_s4 + $0x110] sm:$0xf] %v1598_v54 }
  0x3a   : > { %1601 = vst [vmem:[%s2246_s4 + $0x11c] sm:$0xf] %v1600_v55  ;;  %1603 = vst [vmem:[%s2246_s4 + $0x128] sm:$0xf] %v1602_v56  ;;  %v1604_v57 = vld [vmem:[%s2241_s3 + $0x260] sm:$0xf] }
  0x3b   : > { %v1606_v58 = vld [vmem:[%s2241_s3 + $0x278] sm:$0xf]  ;;  %v1608_v59 = vld [vmem:[%s2241_s3 + $0x290] sm:$0xf]  ;;  %1605 = vst [vmem:[%s2246_s4 + $0x134] sm:$0xf] %v1604_v57 }
  0x3c   : > { %1607 = vst [vmem:[%s2246_s4 + $0x140] sm:$0xf] %v1606_v58  ;;  %1609 = vst [vmem:[%s2246_s4 + $0x14c] sm:$0xf] %v1608_v59  ;;  %v1610_v60 = vld [vmem:[%s2241_s3 + $0x2a8] sm:$0xf] }
  0x3d   : > { %v1612_v61 = vld [vmem:[%s2241_s3 + $0x2c0] sm:$0xf]  ;;  %v1614_v62 = vld [vmem:[%s2241_s3 + $0x2d8] sm:$0xf]  ;;  %1611 = vst [vmem:[%s2246_s4 + $0x158] sm:$0xf] %v1610_v60 }
  0x3e   : > { %1613 = vst [vmem:[%s2246_s4 + $0x164] sm:$0xf] %v1612_v61  ;;  %1615 = vst [vmem:[%s2246_s4 + $0x170] sm:$0xf] %v1614_v62  ;;  %v1616_v63 = vld [vmem:[%s2241_s3 + $0x2f0] sm:$0xf] }
  0x3f   : > { %1617 = vst [vmem:[%s2246_s4 + $0x17c] sm:$0xf] %v1616_v63 }
  0x40 PF: > { %p1618_p7 = scmp.ge.s32.totalorder %s2164_s15, 1  ;;  %p308_p8 = scmp.lt.s32.totalorder %s2164_s15, 5 }
  0x42   : > { %p309_p9 = pnand %p1618_p7, %p308_p8 }
  0x43   : > { %s349_s5 = smul.u32 (!%p309_p9), 48, %s2148_s11  ;;  %s1620_s6 = sshll.u32 (!%p309_p9), %s2152_s12, 5 }
  0x44   : > { %312 = sbr.rel (%p309_p9) target bundleno = 485 (0x1e5), region = 50  ;;  %p359_p10 = scmp.lt.s32.totalorder (!%p309_p9), %s1620_s6, 63 }
  0x45   : > { %s315_s7 = sand.u32 (!%p309_p9), 1, %s2140_s9   ;;  %p350_p11 = scmp.lt.s32.totalorder (!%p309_p9), %s349_s5, 95 }
  0x46   : > { %s1901_s8 = smul.u32 (!%p309_p9), 384, %s315_s7  ;;  %p1694_p12 = scmp.ne.s32.totalorder (!%p309_p9), %s2148_s11, 0 }
  0x48   : > { %s2383_s24 = scalar_lea.vmem (!%p309_p9), [#allocation3], %s1901_s8 }
  0x49   : > { %v1976_v0 = vld [vmem:[%s2383_s24 + $0x4] ss:$12 sps:$4 sm:$0xff] (!%p309_p9)   ;;  %v1974_v19 = vld [vmem:[%s2383_s24] ss:$12 sps:$4 sm:$0xff] (!%p309_p9)   ;;  %v1982_v22 = vld [vmem:[%s2383_s24 + $0x1c] ss:$12 sps:$4 sm:$0xff] (!%p309_p9)  }
  0x4a   : > { %912 = vmatprep.mubr.bf16.mxu0 (!%p309_p9), %v1976_v0  ;;  %v1979_v12 = vld [vmem:[%s2383_s24 + $0x124] ss:$12 sps:$4 sm:$0xff] (!%p309_p9)   ;;  %v1977_v20 = vld [vmem:[%s2383_s24 + $0x120] ss:$12 sps:$4 sm:$0xff] (!%p309_p9)   ;;  %v1984_v23 = vld [vmem:[%s2383_s24 + $0x13c] ss:$12 sps:$4 sm:$0xff] (!%p309_p9)  }
  0x4b   : > { %s2686_s6 = smov (!%p359_p10, %s1620_s6), 63  ;;  %s2688_s5 = smov (!%p350_p11, %s349_s5), 95  ;;  %1008 = vmatprep.mubr.bf16.mxu1 %v1979_v12  ;;  %v1986_v24 = vld [vmem:[%s2383_s24 + $0x18] ss:$12 sps:$4 sm:$0xff]   ;;  %v1990_v28 = vld [vmem:[%s2383_s24 + $0x34] ss:$12 sps:$4 sm:$0xff]  }
  0x4c   : > { %s1621_s18 = sshll.u32 %s2686_s6, 3  ;;  %s1619_s19 = sshll.u32 %s2688_s5, 2  ;;  %v1987_v26 = vld [vmem:[%s2383_s24 + $0x138] ss:$12 sps:$4 sm:$0xff]   ;;  %v1992_v29 = vld [vmem:[%s2383_s24 + $0x154] ss:$12 sps:$4 sm:$0xff]  }
  0x4d   : > { %s2381_s23 = scalar_lea.vmem %s2672_s2, %s1621_s18  ;;  %s2388_s12 = scalar_lea.vmem %s2671_s1, %s1619_s19  ;;  %v1994_v30 = vld [vmem:[%s2383_s24 + $0x30] ss:$12 sps:$4 sm:$0xff]   ;;  %v1998_v34 = vld [vmem:[%s2383_s24 + $0x4c] ss:$12 sps:$4 sm:$0xff]   ;;  %v2002_v37 = vld [vmem:[%s2383_s24 + $0x48] ss:$12 sps:$4 sm:$0xff]  }
  0x4e   : > { %v1958_v1 = vld [vmem:[%s2388_s12 + $0x40] sm:$0xff]   ;;  %v1960_v3 = vld [vmem:[%s2388_s12 + $0x48] sm:$0xff]   ;;  %v1962_v5 = vld [vmem:[%s2388_s12 + $0x50] sm:$0xff]  }
  0x4f   : > { %v1959_v2 = vld [vmem:[%s2388_s12] sm:$0xff]   ;;  %1699 = vmatprep.subr.bf16.mxu0 %v1958_v1  ;;  %1883 = vmatprep.subr.bf16.mxu1 %v1958_v1  ;;  %v1961_v4 = vld [vmem:[%s2388_s12 + $0x8] sm:$0xff]   ;;  %v1963_v6 = vld [vmem:[%s2388_s12 + $0x10] sm:$0xff]  }
  0x50   : > { %1700 = vmatpush3.bf16.msra.mxu0 %v1959_v2  ;;  %1891 = vmatpush3.bf16.msra.mxu1 %v1959_v2  ;;  %v1964_v7 = vld [vmem:[%s2388_s12 + $0x58] sm:$0xff]   ;;  %v1966_v9 = vld [vmem:[%s2388_s12 + $0x60] sm:$0xff]   ;;  %v1968_v11 = vld [vmem:[%s2388_s12 + $0x68] sm:$0xff]  }
  0x51   : > { %1701 = vmatprep.subr.bf16.mxu0 %v1960_v3  ;;  %1884 = vmatprep.subr.bf16.mxu1 %v1960_v3  ;;  %v1965_v8 = vld [vmem:[%s2388_s12 + $0x18] sm:$0xff]   ;;  %v1967_v10 = vld [vmem:[%s2388_s12 + $0x20] sm:$0xff]   ;;  %v1969_v13 = vld [vmem:[%s2388_s12 + $0x28] sm:$0xff]  }
  0x52   : > { %v1970_v14 = vld [vmem:[%s2388_s12 + $0x70] sm:$0xff]   ;;  %v1972_v16 = vld [vmem:[%s2388_s12 + $0x78] sm:$0xff]   ;;  %v1980_v18 = vld [vmem:[%s2388_s12 + $0x80] sm:$0xff]  }
  0x53   : > { %v1971_v15 = vld [vmem:[%s2388_s12 + $0x30] sm:$0xff]   ;;  %v1973_v17 = vld [vmem:[%s2388_s12 + $0x38] sm:$0xff]   ;;  %v1981_v21 = vld [vmem:[%s2388_s12 + $0x88] sm:$0xff]  }
  0x54   : > { %1702 = vmatpush3.bf16.msra.mxu0 %v1961_v4  ;;  %1892 = vmatpush3.bf16.msra.mxu1 %v1961_v4  ;;  %v1988_v25 = vld [vmem:[%s2388_s12 + $0x90] sm:$0xff]   ;;  %v1989_v27 = vld [vmem:[%s2388_s12 + $0x98] sm:$0xff]   ;;  %v1996_v31 = vld [vmem:[%s2388_s12 + $0xa0] sm:$0xff]  }
  0x55   : > { %1703 = vmatprep.subr.bf16.mxu0 %v1962_v5  ;;  %1885 = vmatprep.subr.bf16.mxu1 %v1962_v5  ;;  %v1995_v32 = vld [vmem:[%s2383_s24 + $0x150] ss:$12 sps:$4 sm:$0xff]   ;;  %v1997_v33 = vld [vmem:[%s2388_s12 + $0xa8] sm:$0xff]   ;;  %v2013_v45 = vld [vmem:[%s2383_s24 + $0x38] ss:$12 sps:$4 sm:$0xff]  }
  0x56   : > { %v2000_v35 = vld [vmem:[%s2383_s24 + $0x16c] ss:$12 sps:$4 sm:$0xff]   ;;  %v2004_v36 = vld [vmem:[%s2388_s12 + $0xb0] sm:$0xff]   ;;  %v2011_v44 = vld [vmem:[%s2383_s24 + $0x7c] ss:$12 sps:$4 sm:$0xff]  }
  0x57   : > { %v2003_v38 = vld [vmem:[%s2383_s24 + $0x168] ss:$12 sps:$4 sm:$0xff]   ;;  %v2005_v39 = vld [vmem:[%s2388_s12 + $0xb8] sm:$0xff]   ;;  %v2006_v40 = vld [vmem:[%s2383_s24 + $0x64] ss:$12 sps:$4 sm:$0xff]  }
  0x58   : > { %1704 = vmatpush3.bf16.msra.mxu0 %v1963_v6  ;;  %1893 = vmatpush3.bf16.msra.mxu1 %v1963_v6  ;;  %v2008_v41 = vld [vmem:[%s2383_s24 + $0x8] ss:$12 sps:$4 sm:$0xff]   ;;  %v2009_v42 = vld [vmem:[%s2383_s24 + $0x60] ss:$12 sps:$4 sm:$0xff]   ;;  %v2014_v46 = vld [vmem:[%s2383_s24 + $0x78] ss:$12 sps:$4 sm:$0xff]  }
  0x59   : > { %1705 = vmatprep.subr.bf16.mxu0 %v1964_v7  ;;  %1886 = vmatprep.subr.bf16.mxu1 %v1964_v7  ;;  %v2010_v43 = vld [vmem:[%s2383_s24 + $0x20] ss:$12 sps:$4 sm:$0xff]   ;;  %v2015_v47 = vld [vmem:[%s2383_s24 + $0x50] ss:$12 sps:$4 sm:$0xff]   ;;  %v2018_v49 = vld [vmem:[%s2383_s24 + $0x68] ss:$12 sps:$4 sm:$0xff]  }
  0x5a   : > { %v2016_v48 = vld [vmem:[%s2383_s24 + $0x94] ss:$12 sps:$4 sm:$0xff]   ;;  %v2019_v50 = vld [vmem:[%s2383_s24 + $0x90] ss:$12 sps:$4 sm:$0xff]   ;;  %v2021_v52 = vld [vmem:[%s2383_s24 + $0xac] ss:$12 sps:$4 sm:$0xff]  }
  0x5b   : > { %v2020_v51 = vld [vmem:[%s2383_s24 + $0x80] ss:$12 sps:$4 sm:$0xff]   ;;  %v2023_v53 = vld [vmem:[%s2383_s24 + $0x98] ss:$12 sps:$4 sm:$0xff]   ;;  %v2024_v54 = vld [vmem:[%s2383_s24 + $0xa8] ss:$12 sps:$4 sm:$0xff]  }
  0x5c   : > { %1706 = vmatpush3.bf16.msra.mxu0 %v1965_v8  ;;  %1894 = vmatpush3.bf16.msra.mxu1 %v1965_v8  ;;  %v2025_v55 = vld [vmem:[%s2383_s24 + $0xb0] ss:$12 sps:$4 sm:$0xff]   ;;  %v2028_v57 = vld [vmem:[%s2383_s24 + $0xc8] ss:$12 sps:$4 sm:$0xff]   ;;  %v2029_v58 = vld [vmem:[%s2383_s24 + $0xc0] ss:$12 sps:$4 sm:$0xff]  }
  0x5d   : > { %1707 = vmatprep.subr.bf16.mxu0 %v1966_v9  ;;  %1887 = vmatprep.subr.bf16.mxu1 %v1966_v9  ;;  %v2026_v56 = vld [vmem:[%s2383_s24 + $0xc4] ss:$12 sps:$4 sm:$0xff]   ;;  %v2030_v59 = vld [vmem:[%s2383_s24 + $0xe0] ss:$12 sps:$4 sm:$0xff]   ;;  %v2031_v60 = vld [vmem:[%s2383_s24 + $0xdc] ss:$12 sps:$4 sm:$0xff]  }
  0x5e   : > { %v2033_v61 = vld [vmem:[%s2383_s24 + $0xf8] ss:$12 sps:$4 sm:$0xff]   ;;  %v2035_v63 = vld [vmem:[%s2383_s24 + $0x110] ss:$12 sps:$4 sm:$0xff]   ;;  %v2036_v0 = vld [vmem:[%s2383_s24 + $0xf4] ss:$12 sps:$4 sm:$0xff]  }
  0x5f   : > { %v2034_v62 = vld [vmem:[%s2383_s24 + $0xd8] ss:$12 sps:$4 sm:$0xff]   ;;  %v2038_v1 = vld [vmem:[%s2383_s24 + $0x128] ss:$12 sps:$4 sm:$0xff]   ;;  %v2039_v2 = vld [vmem:[%s2383_s24 + $0xf0] ss:$12 sps:$4 sm:$0xff]  }
  0x60   : > { %1708 = vmatpush3.bf16.msra.mxu0 %v1967_v10  ;;  %1895 = vmatpush3.bf16.msra.mxu1 %v1967_v10  ;;  %v2040_v3 = vld [vmem:[%s2383_s24 + $0x140] ss:$12 sps:$4 sm:$0xff]   ;;  %v2043_v5 = vld [vmem:[%s2383_s24 + $0x158] ss:$12 sps:$4 sm:$0xff]   ;;  %v2044_v6 = vld [vmem:[%s2383_s24 + $0x108] ss:$12 sps:$4 sm:$0xff]  }
  0x61   : > { %1709 = vmatprep.subr.bf16.mxu0 %v1968_v11  ;;  %1888 = vmatprep.subr.bf16.mxu1 %v1968_v11  ;;  %v2041_v4 = vld [vmem:[%s2383_s24 + $0x10c] ss:$12 sps:$4 sm:$0xff]   ;;  %v2045_v7 = vld [vmem:[%s2383_s24 + $0x170] ss:$12 sps:$4 sm:$0xff]  }
  0x64   : > { %1710 = vmatpush3.bf16.msra.mxu0 %v1969_v13  ;;  %1896 = vmatpush3.bf16.msra.mxu1 %v1969_v13 }
  0x65   : > { %1711 = vmatprep.subr.bf16.mxu0 %v1970_v14  ;;  %1889 = vmatprep.subr.bf16.mxu1 %v1970_v14 }
  0x68   : > { %1712 = vmatpush3.bf16.msra.mxu0 %v1971_v15  ;;  %1897 = vmatpush3.bf16.msra.mxu1 %v1971_v15 }
  0x69   : > { %1713 = vmatprep.subr.bf16.mxu0 %v1972_v16  ;;  %1890 = vmatprep.subr.bf16.mxu1 %v1972_v16 }
  0x6c   : > { %1714 = vmatpush3.bf16.msra.mxu0 %v1973_v17  ;;  %1898 = vmatpush3.bf16.msra.mxu1 %v1973_v17 }
  0x6d   : > { %1835 = vmatprep.subr.bf16.mxu1 %v1980_v18 }
  0x6f   : > { %913 = vmatmul.mubr.bf16.vlgmr.msra.gmra.mrb[0].mxu0 %v1974_v19  ;;  %1009 = vmatmul.mubr.bf16.vlgmr.msra.gmra.mrb[0].mxu1 %v1977_v20 }
  0x70   : > { %1836 = vmatpush3.bf16.msra.mxu1 %v1980_v18  ;;  %920 = vmatprep.mubr.bf16.mxu0 %v1982_v22 }
  0x71   : > { %1837 = vmatprep.subr.bf16.mxu1 %v1981_v21  ;;  %1016 = vmatprep.mubr.bf16.mxu1 %v1984_v23 }
  0x74   : > { %1838 = vmatpush3.bf16.msra.mxu1 %v1981_v21 }
  0x75   : > { %1839 = vmatprep.subr.bf16.mxu1 %v1988_v25 }
  0x77   : > { %921 = vmatmul.mubr.bf16.gmra.mrb[4].mxu0 %v1986_v24  ;;  %1017 = vmatmul.mubr.bf16.gmra.mrb[4].mxu1 %v1987_v26 }
  0x78   : > { %1840 = vmatpush3.bf16.msra.mxu1 %v1988_v25  ;;  %928 = vmatprep.mubr.bf16.mxu0 %v1990_v28 }
  0x79   : > { %1841 = vmatprep.subr.bf16.mxu1 %v1989_v27  ;;  %1024 = vmatprep.mubr.bf16.mxu1 %v1992_v29 }
  0x7c   : > { %1842 = vmatpush3.bf16.msra.mxu1 %v1989_v27 }
  0x7d   : > { %1843 = vmatprep.subr.bf16.mxu1 %v1996_v31 }
  0x7f   : > { %929 = vmatmul.mubr.bf16.gmra.mrb[8].mxu0 %v1994_v30  ;;  %1025 = vmatmul.mubr.bf16.gmra.mrb[8].mxu1 %v1995_v32 }
  0x80   : > { %1844 = vmatpush3.bf16.msra.mxu1 %v1996_v31  ;;  %936 = vmatprep.mubr.bf16.mxu0 %v1998_v34 }
  0x81   : > { %1845 = vmatprep.subr.bf16.mxu1 %v1997_v33  ;;  %1032 = vmatprep.mubr.bf16.mxu1 %v2000_v35 }
  0x84   : > { %1846 = vmatpush3.bf16.msra.mxu1 %v1997_v33 }
  0x85   : > { %1847 = vmatprep.subr.bf16.mxu1 %v2004_v36 }
  0x87   : > { %937 = vmatmul.mubr.bf16.gmra.mrb[12].mxu0 %v2002_v37  ;;  %1033 = vmatmul.mubr.bf16.gmra.mrb[12].mxu1 %v2003_v38 }
  0x88   : > { %1848 = vmatpush3.bf16.msra.mxu1 %v2004_v36  ;;  %944 = vmatprep.mubr.bf16.mxu0 %v2006_v40 }
  0x89   : > { %1849 = vmatprep.subr.bf16.mxu1 %v2005_v39  ;;  %1851 = vmatprep.mubr.bf16.mxu1 %v2008_v41 }
  0x8c   : > { %1850 = vmatpush3.bf16.msra.mxu1 %v2005_v39 }
  0x8f   : > { %945 = vmatmul.mubr.bf16.gmra.mrb[16].mxu0 %v2009_v42  ;;  %1852 = vmatmul.mubr.bf16.vlgmr.msra.gmra.mrb[16].mxu1 %v2010_v43 }
  0x90   : > { %952 = vmatprep.mubr.bf16.mxu0 %v2011_v44  ;;  %1855 = vmatprep.mubr.bf16.mxu1 %v2013_v45 }
  0x97   : > { %953 = vmatmul.mubr.bf16.gmra.mrb[20].mxu0 %v2014_v46  ;;  %1856 = vmatmul.mubr.bf16.gmra.mrb[20].mxu1 %v2015_v47 }
  0x98   : > { %960 = vmatprep.mubr.bf16.mxu0 %v2016_v48  ;;  %1859 = vmatprep.mubr.bf16.mxu1 %v2018_v49 }
  0x9f   : > { %961 = vmatmul.mubr.bf16.gmra.mrb[24].mxu0 %v2019_v50  ;;  %1860 = vmatmul.mubr.bf16.gmra.mrb[24].mxu1 %v2020_v51 }
  0xa0   : > { %968 = vmatprep.mubr.bf16.mxu0 %v2021_v52  ;;  %1863 = vmatprep.mubr.bf16.mxu1 %v2023_v53 }
  0xa7   : > { %969 = vmatmul.mubr.bf16.gmra.mrb[28].mxu0 %v2024_v54  ;;  %1864 = vmatmul.mubr.bf16.gmra.mrb[28].mxu1 %v2025_v55 }
  0xa8   : > { %976 = vmatprep.mubr.bf16.mxu0 %v2026_v56  ;;  %1867 = vmatprep.mubr.bf16.mxu1 %v2028_v57 }
  0xaf   : > { %977 = vmatmul.mubr.bf16.gmra.mrb[32].mxu0 %v2029_v58  ;;  %1868 = vmatmul.mubr.bf16.gmra.mrb[32].mxu1 %v2030_v59 }
  0xb0   : > { %984 = vmatprep.mubr.bf16.mxu0 %v2031_v60  ;;  %1871 = vmatprep.mubr.bf16.mxu1 %v2033_v61 }
  0xb7   : > { %985 = vmatmul.mubr.bf16.gmra.mrb[36].mxu0 %v2034_v62  ;;  %1872 = vmatmul.mubr.bf16.gmra.mrb[36].mxu1 %v2035_v63 }
  0xb8   : > { %992 = vmatprep.mubr.bf16.mxu0 %v2036_v0  ;;  %1875 = vmatprep.mubr.bf16.mxu1 %v2038_v1 }
  0xbf   : > { %993 = vmatmul.mubr.bf16.gmra.mrb[40].mxu0 %v2039_v2  ;;  %1876 = vmatmul.mubr.bf16.gmra.mrb[40].mxu1 %v2040_v3 }
  0xc0   : > { %1000 = vmatprep.mubr.bf16.mxu0 %v2041_v4  ;;  %1879 = vmatprep.mubr.bf16.mxu1 %v2043_v5 }
  0xc7   : > { %1001 = vmatmul.mubr.bf16.gmra.mrb[44].mxu0 %v2044_v6  ;;  %1880 = vmatmul.mubr.bf16.gmra.mrb[44].mxu1 %v2045_v7 }
 0x142   : > { %v1715_v8 = vpop.f32.mrb[0].mxu0  ;;  %v1787_v9 = vpop.f32.mrb[0].mxu1 }
 0x143   : > { %v1716_v10 = vpop.f32.mrb[1].mxu0  ;;  %v1788_v11 = vpop.f32.mrb[1].mxu1 }
 0x144   : > { %v1717_v12 = vadd.f32 %v1716_v10, %v1715_v8  ;;  %v2462_v13 = vadd.f32 %v1788_v11, %v1787_v9  ;;  %v1718_v14 = vpop.f32.mrb[2].mxu0  ;;  %v1790_v15 = vpop.f32.mrb[2].mxu1 }
 0x145   : > { %v1719_v16 = vpop.f32.mrb[3].mxu0  ;;  %v1791_v17 = vpop.f32.mrb[3].mxu1 }
 0x146   : > { %v1720_v18 = vadd.f32 %v1719_v16, %v1718_v14  ;;  %v2464_v19 = vadd.f32 %v1791_v17, %v1790_v15 }
 0x14a   : > { %v1721_v20 = vpop.f32.mrb[4].mxu0  ;;  %v1793_v21 = vpop.f32.mrb[4].mxu1 }
 0x14b   : > { %v1722_v22 = vpop.f32.mrb[5].mxu0  ;;  %v1794_v23 = vpop.f32.mrb[5].mxu1 }
 0x14c   : > { %v1723_v24 = vadd.f32 %v1722_v22, %v1721_v20  ;;  %v2466_v25 = vadd.f32 %v1794_v23, %v1793_v21  ;;  %v1724_v26 = vpop.f32.mrb[6].mxu0  ;;  %v1796_v27 = vpop.f32.mrb[6].mxu1 }
 0x14d   : > { %v1725_v28 = vpop.f32.mrb[7].mxu0  ;;  %v1797_v29 = vpop.f32.mrb[7].mxu1 }
 0x14e   : > { %v1726_v30 = vadd.f32 %v1725_v28, %v1724_v26  ;;  %v2468_v31 = vadd.f32 %v1797_v29, %v1796_v27 }
 0x152   : > { %v1727_v32 = vpop.f32.mrb[8].mxu0  ;;  %v1799_v33 = vpop.f32.mrb[8].mxu1 }
 0x153   : > { %v1728_v34 = vpop.f32.mrb[9].mxu0  ;;  %v1800_v35 = vpop.f32.mrb[9].mxu1 }
 0x154   : > { %v1729_v36 = vadd.f32 %v1728_v34, %v1727_v32  ;;  %v2470_v37 = vadd.f32 %v1800_v35, %v1799_v33  ;;  %v1730_v38 = vpop.f32.mrb[10].mxu0  ;;  %v1802_v39 = vpop.f32.mrb[10].mxu1 }
 0x155   : > { %v1731_v40 = vpop.f32.mrb[11].mxu0  ;;  %v1803_v41 = vpop.f32.mrb[11].mxu1 }
 0x156   : > { %v1732_v42 = vadd.f32 %v1731_v40, %v1730_v38  ;;  %v2472_v43 = vadd.f32 %v1803_v41, %v1802_v39 }
 0x15a   : > { %v1733_v44 = vpop.f32.mrb[12].mxu0  ;;  %v1805_v45 = vpop.f32.mrb[12].mxu1 }
 0x15b   : > { %v1734_v46 = vpop.f32.mrb[13].mxu0  ;;  %v1806_v47 = vpop.f32.mrb[13].mxu1 }
 0x15c   : > { %v1735_v48 = vadd.f32 %v1734_v46, %v1733_v44  ;;  %v2474_v49 = vadd.f32 %v1806_v47, %v1805_v45  ;;  %v1736_v50 = vpop.f32.mrb[14].mxu0  ;;  %v1808_v51 = vpop.f32.mrb[14].mxu1 }
 0x15d   : > { %v1737_v52 = vpop.f32.mrb[15].mxu0  ;;  %v1809_v53 = vpop.f32.mrb[15].mxu1 }
 0x15e   : > { %v1738_v54 = vadd.f32 %v1737_v52, %v1736_v50  ;;  %v2476_v55 = vadd.f32 %v1809_v53, %v1808_v51 }
 0x162   : > { %v1739_v56 = vpop.f32.mrb[16].mxu0  ;;  %v1853_v57 = vpop.f32.mrb[16].mxu1 }
 0x163   : > { %v2478_v58 = vadd.f32 %v1853_v57, %v1723_v24  ;;  %v1740_v59 = vpop.f32.mrb[17].mxu0  ;;  %v1075_v60 = vpop.f32.mrb[17].mxu1 }
 0x164   : > { %v1741_v61 = vadd.f32 %v1740_v59, %v1739_v56  ;;  %v2480_v62 = vadd.f32 %v1717_v12, %v1075_v60  ;;  %v1742_v63 = vpop.f32.mrb[18].mxu0  ;;  %v1854_v0 = vpop.f32.mrb[18].mxu1 }
 0x165   : > { %v2482_v1 = vadd.f32 %v1854_v0, %v1726_v30  ;;  %v1743_v2 = vpop.f32.mrb[19].mxu0  ;;  %v1078_v3 = vpop.f32.mrb[19].mxu1  ;;  %1208 = vst [vmem:[#allocation2 + $0x10] sm:$0xff] (!%p1694_p12), %v2478_v58 }
 0x166   : > { %v1744_v4 = vadd.f32 %v1743_v2, %v1742_v63  ;;  %v2484_v5 = vadd.f32 %v1720_v18, %v1078_v3  ;;  %1206 = vst [vmem:[#allocation2] sm:$0xff] (!%p1694_p12), %v2480_v62 }
 0x167   : > { %1209 = vst [vmem:[#allocation2 + $0x18] sm:$0xff] (!%p1694_p12), %v2482_v1 }
 0x168   : > { %1207 = vst [vmem:[#allocation2 + $0x8] sm:$0xff] (!%p1694_p12), %v2484_v5 }
 0x16a   : > { %v1745_v6 = vpop.f32.mrb[20].mxu0  ;;  %v1857_v7 = vpop.f32.mrb[20].mxu1 }
 0x16b   : > { %v2486_v8 = vadd.f32 %v1857_v7, %v1735_v48  ;;  %v1746_v9 = vpop.f32.mrb[21].mxu0  ;;  %v1091_v10 = vpop.f32.mrb[21].mxu1 }
 0x16c   : > { %v1747_v11 = vadd.f32 %v1746_v9, %v1745_v6  ;;  %v2488_v14 = vadd.f32 %v1729_v36, %v1091_v10  ;;  %v1748_v12 = vpop.f32.mrb[22].mxu0  ;;  %v1858_v15 = vpop.f32.mrb[22].mxu1 }
 0x16d   : > { %v2490_v16 = vadd.f32 %v1858_v15, %v1738_v54  ;;  %v1749_v17 = vpop.f32.mrb[23].mxu0  ;;  %v1094_v20 = vpop.f32.mrb[23].mxu1  ;;  %1212 = vst [vmem:[#allocation2 + $0x30] sm:$0xff] (!%p1694_p12), %v2486_v8 }
 0x16e   : > { %v1750_v21 = vadd.f32 %v1749_v17, %v1748_v12  ;;  %v2492_v22 = vadd.f32 %v1732_v42, %v1094_v20  ;;  %1210 = vst [vmem:[#allocation2 + $0x20] sm:$0xff] (!%p1694_p12), %v2488_v14 }
 0x16f   : > { %1213 = vst [vmem:[#allocation2 + $0x38] sm:$0xff] (!%p1694_p12), %v2490_v16 }
 0x170   : > { %1211 = vst [vmem:[#allocation2 + $0x28] sm:$0xff] (!%p1694_p12), %v2492_v22 }
 0x172   : > { %v1751_v18 = vpop.f32.mrb[24].mxu0  ;;  %v1861_v23 = vpop.f32.mrb[24].mxu1 }
 0x173   : > { %v2494_v24 = vadd.f32 %v1861_v23, %v1747_v11  ;;  %v1752_v26 = vpop.f32.mrb[25].mxu0  ;;  %v1107_v27 = vpop.f32.mrb[25].mxu1 }
 0x174   : > { %v1753_v28 = vadd.f32 %v1752_v26, %v1751_v18  ;;  %v2496_v29 = vadd.f32 %v1741_v61, %v1107_v27  ;;  %v1754_v30 = vpop.f32.mrb[26].mxu0  ;;  %v1862_v32 = vpop.f32.mrb[26].mxu1 }
 0x175   : > { %v2498_v33 = vadd.f32 %v1862_v32, %v1750_v21  ;;  %v1755_v34 = vpop.f32.mrb[27].mxu0  ;;  %v1110_v35 = vpop.f32.mrb[27].mxu1  ;;  %1216 = vst [vmem:[#allocation2 + $0x50] sm:$0xff] (!%p1694_p12), %v2494_v24 }
 0x176   : > { %v1756_v36 = vadd.f32 %v1755_v34, %v1754_v30  ;;  %v2500_v38 = vadd.f32 %v1744_v4, %v1110_v35  ;;  %1214 = vst [vmem:[#allocation2 + $0x40] sm:$0xff] (!%p1694_p12), %v2496_v29 }
 0x177   : > { %1217 = vst [vmem:[#allocation2 + $0x58] sm:$0xff] (!%p1694_p12), %v2498_v33 }
 0x178   : > { %1215 = vst [vmem:[#allocation2 + $0x48] sm:$0xff] (!%p1694_p12), %v2500_v38 }
 0x17a   : > { %v1757_v39 = vpop.f32.mrb[28].mxu0  ;;  %v1865_v40 = vpop.f32.mrb[28].mxu1 }
 0x17b   : > { %v1758_v41 = vpop.f32.mrb[29].mxu0  ;;  %v1123_v42 = vpop.f32.mrb[29].mxu1 }
 0x17c   : > { %v1759_v44 = vadd.f32 %v1758_v41, %v1757_v39  ;;  %v2502_v45 = vadd.f32 %v1753_v28, %v1123_v42  ;;  %v1760_v46 = vpop.f32.mrb[30].mxu0  ;;  %v1866_v47 = vpop.f32.mrb[30].mxu1 }
 0x17d   : > { %v1761_v48 = vpop.f32.mrb[31].mxu0  ;;  %v1126_v50 = vpop.f32.mrb[31].mxu1 }
 0x17e   : > { %v2504_v51 = vadd.f32 %v1865_v40, %v1759_v44  ;;  %v1762_v52 = vadd.f32 %v1761_v48, %v1760_v46  ;;  %v2506_v53 = vadd.f32 %v1756_v36, %v1126_v50  ;;  %1218 = vst [vmem:[#allocation2 + $0x60] sm:$0xff] (!%p1694_p12), %v2502_v45 }
 0x180   : > { %v2508_v54 = vadd.f32 %v1866_v47, %v1762_v52  ;;  %1219 = vst [vmem:[#allocation2 + $0x68] sm:$0xff] (!%p1694_p12), %v2506_v53  ;;  %1220 = vst [vmem:[#allocation2 + $0x70] sm:$0xff] (!%p1694_p12), %v2504_v51 }
 0x182   : > { %v1763_v56 = vpop.f32.mrb[32].mxu0  ;;  %v1869_v57 = vpop.f32.mrb[32].mxu1  ;;  %1221 = vst [vmem:[#allocation2 + $0x78] sm:$0xff] (!%p1694_p12), %v2508_v54 }
 0x183   : > { %v1764_v59 = vpop.f32.mrb[33].mxu0  ;;  %v1139_v60 = vpop.f32.mrb[33].mxu1 }
 0x184   : > { %v1765_v61 = vadd.f32 %v1764_v59, %v1763_v56  ;;  %v1766_v63 = vpop.f32.mrb[34].mxu0  ;;  %v1870_v0 = vpop.f32.mrb[34].mxu1 }
 0x185   : > { %v1767_v2 = vpop.f32.mrb[35].mxu0  ;;  %v1142_v3 = vpop.f32.mrb[35].mxu1 }
 0x186   : > { %v2510_v4 = vadd.f32 %v1765_v61, %v1139_v60  ;;  %v1768_v6 = vadd.f32 %v1767_v2, %v1766_v63 }
 0x188   : > { %v2512_v7 = vadd.f32 %v1768_v6, %v1142_v3  ;;  %1222 = vst [vmem:[#allocation2 + $0x80] sm:$0xff] (!%p1694_p12), %v2510_v4 }
 0x18a   : > { %v1769_v9 = vpop.f32.mrb[36].mxu0  ;;  %v1873_v10 = vpop.f32.mrb[36].mxu1  ;;  %1223 = vst [vmem:[#allocation2 + $0x88] sm:$0xff] (!%p1694_p12), %v2512_v7 }
 0x18b   : > { %v1770_v11 = vpop.f32.mrb[37].mxu0  ;;  %v1155_v12 = vpop.f32.mrb[37].mxu1 }
 0x18c   : > { %v1771_v15 = vadd.f32 %v1770_v11, %v1769_v9  ;;  %v1772_v17 = vpop.f32.mrb[38].mxu0  ;;  %v1874_v20 = vpop.f32.mrb[38].mxu1 }
 0x18d   : > { %v1773_v21 = vpop.f32.mrb[39].mxu0  ;;  %v1158_v18 = vpop.f32.mrb[39].mxu1 }
 0x18e   : > { %v2514_v23 = vadd.f32 %v1869_v57, %v1771_v15  ;;  %v1774_v26 = vadd.f32 %v1773_v21, %v1772_v17 }
 0x190   : > { %v2516_v27 = vadd.f32 %v1870_v0, %v1774_v26  ;;  %1224 = vst [vmem:[#allocation2 + $0x90] sm:$0xff] (!%p1694_p12), %v2514_v23 }
 0x192   : > { %v1775_v28 = vpop.f32.mrb[40].mxu0  ;;  %v1877_v30 = vpop.f32.mrb[40].mxu1  ;;  %1225 = vst [vmem:[#allocation2 + $0x98] sm:$0xff] (!%p1694_p12), %v2516_v27 }
 0x193   : > { %v2519_v32 = vadd.f32 %v1877_v30, %v2466_v25  ;;  %v1776_v34 = vpop.f32.mrb[41].mxu0  ;;  %v1171_v35 = vpop.f32.mrb[41].mxu1 }
 0x194   : > { %v1777_v36 = vadd.f32 %v1776_v34, %v1775_v28  ;;  %v2522_v39 = vadd.f32 %v2462_v13, %v1171_v35  ;;  %v1778_v40 = vpop.f32.mrb[42].mxu0  ;;  %v1878_v41 = vpop.f32.mrb[42].mxu1 }
 0x195   : > { %v2525_v42 = vadd.f32 %v1878_v41, %v2468_v31  ;;  %v1779_v44 = vpop.f32.mrb[43].mxu0  ;;  %v1174_v46 = vpop.f32.mrb[43].mxu1  ;;  %1232 = vst [vmem:[#allocation2 + $0xd0] sm:$0xff] (!%p1694_p12), %v2519_v32 }
 0x196   : > { %v2527_v47 = vadd.f32 %v1777_v36, %v1155_v12  ;;  %v1780_v48 = vadd.f32 %v1779_v44, %v1778_v40  ;;  %v2530_v50 = vadd.f32 %v2464_v19, %v1174_v46  ;;  %1230 = vst [vmem:[#allocation2 + $0xc0] sm:$0xff] (!%p1694_p12), %v2522_v39 }
 0x197   : > { %1233 = vst [vmem:[#allocation2 + $0xd8] sm:$0xff] (!%p1694_p12), %v2525_v42 }
 0x198   : > { %v2532_v25 = vadd.f32 %v1780_v48, %v1158_v18  ;;  %1226 = vst [vmem:[#allocation2 + $0xa0] sm:$0xff] (!%p1694_p12), %v2527_v47  ;;  %1231 = vst [vmem:[#allocation2 + $0xc8] sm:$0xff] (!%p1694_p12), %v2530_v50 }
 0x19a   : > { %v1781_v52 = vpop.f32.mrb[44].mxu0  ;;  %v1881_v56 = vpop.f32.mrb[44].mxu1  ;;  %1205 = sbr.rel (%p1694_p12) target bundleno = 419 (0x1a3), region = 58  ;;  %1227 = vst [vmem:[#allocation2 + $0xa8] sm:$0xff] (!%p1694_p12), %v2532_v25 }
 0x19b   : > { %v2535_v13 = vadd.f32 %v1881_v56, %v2474_v49  ;;  %v1782_v57 = vpop.f32.mrb[45].mxu0  ;;  %v1187_v59 = vpop.f32.mrb[45].mxu1 }
 0x19c   : > { %v1783_v60 = vadd.f32 %v1782_v57, %v1781_v52  ;;  %v2538_v31 = vadd.f32 %v2470_v37, %v1187_v59  ;;  %v1784_v61 = vpop.f32.mrb[46].mxu0  ;;  %v1882_v63 = vpop.f32.mrb[46].mxu1 }
 0x19d   : > { %v2541_v0 = vadd.f32 %v1882_v63, %v2476_v55  ;;  %v1785_v19 = vpop.f32.mrb[47].mxu0  ;;  %v1190_v2 = vpop.f32.mrb[47].mxu1  ;;  %1236 = vst [vmem:[#allocation2 + $0xf0] sm:$0xff] (!%p1694_p12), %v2535_v13 }
 0x19e   : > { %v2543_v3 = vadd.f32 %v1873_v10, %v1783_v60  ;;  %v1786_v6 = vadd.f32 %v1785_v19, %v1784_v61  ;;  %v2546_v9 = vadd.f32 %v2472_v43, %v1190_v2  ;;  %1234 = vst [vmem:[#allocation2 + $0xe0] sm:$0xff] (!%p1694_p12), %v2538_v31 }
 0x19f   : > { %1237 = vst [vmem:[#allocation2 + $0xf8] sm:$0xff] (!%p1694_p12), %v2541_v0 }
 0x1a0   : > { %v2548_v49 = vadd.f32 %v1874_v20, %v1786_v6  ;;  %1228 = vst [vmem:[#allocation2 + $0xb0] sm:$0xff] (!%p1694_p12), %v2543_v3  ;;  %1235 = vst [vmem:[#allocation2 + $0xe8] sm:$0xff] (!%p1694_p12), %v2546_v9 }
 0x1a2   : > { %1229 = vst [vmem:[#allocation2 + $0xb8] sm:$0xff] %v2548_v49 }
 0x1a3 PF: > { %p1695_p13 = scmp.le.s32.totalorder %s2148_s11, 0 }
 0x1a4   : > { %v1242_v37 = vld [vmem:[#allocation2] sm:$0xff] (!%p1695_p13)  ;;  %v1243_v43 = vld [vmem:[#allocation2 + $0x8] sm:$0xff] (!%p1695_p13)  ;;  %v1244_v55 = vld [vmem:[#allocation2 + $0x10] sm:$0xff] (!%p1695_p13) }
 0x1a5   : > { %1241 = sbr.rel (%p1695_p13) target bundleno = 439 (0x1b7), region = 62  ;;  %v1274_v10 = vadd.f32 (!%p1695_p13), %v1242_v37, %v2480_v62  ;;  %v1275_v11 = vadd.f32 (!%p1695_p13), %v1243_v43, %v2484_v5  ;;  %v1276_v12 = vadd.f32 (!%p1695_p13), %v1244_v55, %v2478_v58  ;;  %v1245_v15 = vld [vmem:[#allocation2 + $0x18] sm:$0xff] (!%p1695_p13)  ;;  %v1246_v17 = vld [vmem:[#allocation2 + $0x20] sm:$0xff] (!%p1695_p13)  ;;  %v1247_v20 = vld [vmem:[#allocation2 + $0x28] sm:$0xff] (!%p1695_p13) }
 0x1a6   : > { %v1277_v21 = vadd.f32 (!%p1695_p13), %v1245_v15, %v2482_v1  ;;  %v1278_v18 = vadd.f32 (!%p1695_p13), %v1246_v17, %v2488_v14  ;;  %v1279_v26 = vadd.f32 (!%p1695_p13), %v1247_v20, %v2492_v22  ;;  %v1248_v28 = vld [vmem:[#allocation2 + $0x30] sm:$0xff] (!%p1695_p13)  ;;  %v1249_v30 = vld [vmem:[#allocation2 + $0x38] sm:$0xff] (!%p1695_p13)  ;;  %v1250_v34 = vld [vmem:[#allocation2 + $0x40] sm:$0xff] (!%p1695_p13) }
 0x1a7   : > { %1306 = vst [vmem:[#allocation2] sm:$0xff] (!%p1695_p13), %v1274_v10  ;;  %1307 = vst [vmem:[#allocation2 + $0x8] sm:$0xff] (!%p1695_p13), %v1275_v11  ;;  %v1280_v62 = vadd.f32 (!%p1695_p13), %v1248_v28, %v2486_v8  ;;  %v1281_v5 = vadd.f32 (!%p1695_p13), %v1249_v30, %v2490_v16  ;;  %v1282_v58 = vadd.f32 (!%p1695_p13), %v1250_v34, %v2496_v29  ;;  %v1251_v35 = vld [vmem:[#allocation2 + $0x48] sm:$0xff] (!%p1695_p13)  ;;  %v1252_v36 = vld [vmem:[#allocation2 + $0x50] sm:$0xff] (!%p1695_p13) }
 0x1a8   : > { %1308 = vst [vmem:[#allocation2 + $0x10] sm:$0xff] (!%p1695_p13), %v1276_v12  ;;  %v1253_v40 = vld [vmem:[#allocation2 + $0x58] sm:$0xff] (!%p1695_p13)  ;;  %1309 = vst [vmem:[#allocation2 + $0x18] sm:$0xff] (!%p1695_p13), %v1277_v21  ;;  %v1283_v1 = vadd.f32 (!%p1695_p13), %v1251_v35, %v2500_v38  ;;  %v1284_v14 = vadd.f32 (!%p1695_p13), %v1252_v36, %v2494_v24  ;;  %v1254_v41 = vld [vmem:[#allocation2 + $0x60] sm:$0xff] (!%p1695_p13) }
 0x1a9   : > { %1310 = vst [vmem:[#allocation2 + $0x20] sm:$0xff] (!%p1695_p13), %v1278_v18  ;;  %1311 = vst [vmem:[#allocation2 + $0x28] sm:$0xff] (!%p1695_p13), %v1279_v26  ;;  %v1285_v22 = vadd.f32 (!%p1695_p13), %v1253_v40, %v2498_v33  ;;  %v1255_v44 = vld [vmem:[#allocation2 + $0x68] sm:$0xff] (!%p1695_p13)  ;;  %v1256_v46 = vld [vmem:[#allocation2 + $0x70] sm:$0xff] (!%p1695_p13)  ;;  %v1286_v8 = vadd.f32 (!%p1695_p13), %v1254_v41, %v2502_v45 }
 0x1aa   : > { %1312 = vst [vmem:[#allocation2 + $0x30] sm:$0xff] (!%p1695_p13), %v1280_v62  ;;  %1313 = vst [vmem:[#allocation2 + $0x38] sm:$0xff] (!%p1695_p13), %v1281_v5  ;;  %v1287_v16 = vadd.f32 (!%p1695_p13), %v1255_v44, %v2506_v53  ;;  %v1288_v29 = vadd.f32 (!%p1695_p13), %v1256_v46, %v2504_v51  ;;  %v1257_v48 = vld [vmem:[#allocation2 + $0x78] sm:$0xff] (!%p1695_p13)  ;;  %v1258_v52 = vld [vmem:[#allocation2 + $0x80] sm:$0xff] (!%p1695_p13) }
 0x1ab   : > { %1314 = vst [vmem:[#allocation2 + $0x40] sm:$0xff] (!%p1695_p13), %v1282_v58  ;;  %v1259_v56 = vld [vmem:[#allocation2 + $0x88] sm:$0xff] (!%p1695_p13)  ;;  %1315 = vst [vmem:[#allocation2 + $0x48] sm:$0xff] (!%p1695_p13), %v1283_v1  ;;  %v1289_v24 = vadd.f32 (!%p1695_p13), %v1257_v48, %v2508_v54  ;;  %v1290_v33 = vadd.f32 (!%p1695_p13), %v1258_v52, %v2510_v4  ;;  %v1260_v57 = vld [vmem:[#allocation2 + $0x90] sm:$0xff] (!%p1695_p13) }
 0x1ac   : > { %1316 = vst [vmem:[#allocation2 + $0x50] sm:$0xff] %v1284_v14  ;;  %1317 = vst [vmem:[#allocation2 + $0x58] sm:$0xff] %v1285_v22  ;;  %v1291_v38 = vadd.f32 %v1259_v56, %v2512_v7  ;;  %v1261_v59 = vld [vmem:[#allocation2 + $0x98] sm:$0xff]  ;;  %v1262_v60 = vld [vmem:[#allocation2 + $0xa0] sm:$0xff]  ;;  %v1292_v45 = vadd.f32 %v1260_v57, %v2514_v23 }
 0x1ad   : > { %1318 = vst [vmem:[#allocation2 + $0x60] sm:$0xff] %v1286_v8  ;;  %1319 = vst [vmem:[#allocation2 + $0x68] sm:$0xff] %v1287_v16  ;;  %v1293_v51 = vadd.f32 %v1261_v59, %v2516_v27  ;;  %v1294_v53 = vadd.f32 %v1262_v60, %v2527_v47  ;;  %v1263_v61 = vld [vmem:[#allocation2 + $0xa8] sm:$0xff]  ;;  %v1264_v63 = vld [vmem:[#allocation2 + $0xb0] sm:$0xff] }
 0x1ae   : > { %1320 = vst [vmem:[#allocation2 + $0x70] sm:$0xff] %v1288_v29  ;;  %v1265_v19 = vld [vmem:[#allocation2 + $0xb8] sm:$0xff]  ;;  %1321 = vst [vmem:[#allocation2 + $0x78] sm:$0xff] %v1289_v24  ;;  %v1295_v54 = vadd.f32 %v1263_v61, %v2532_v25  ;;  %v1296_v4 = vadd.f32 %v1264_v63, %v2543_v3  ;;  %v1266_v2 = vld [vmem:[#allocation2 + $0xc0] sm:$0xff] }
 0x1af   : > { %1322 = vst [vmem:[#allocation2 + $0x80] sm:$0xff] %v1290_v33  ;;  %1323 = vst [vmem:[#allocation2 + $0x88] sm:$0xff] %v1291_v38  ;;  %v1297_v7 = vadd.f32 %v1265_v19, %v2548_v49  ;;  %v1267_v6 = vld [vmem:[#allocation2 + $0xc8] sm:$0xff]  ;;  %v1268_v37 = vld [vmem:[#allocation2 + $0xd0] sm:$0xff]  ;;  %v1298_v23 = vadd.f32 %v1266_v2, %v2522_v39 }
 0x1b0   : > { %1324 = vst [vmem:[#allocation2 + $0x90] sm:$0xff] %v1292_v45  ;;  %1325 = vst [vmem:[#allocation2 + $0x98] sm:$0xff] %v1293_v51  ;;  %v1299_v27 = vadd.f32 %v1267_v6, %v2530_v50  ;;  %v1300_v47 = vadd.f32 %v1268_v37, %v2519_v32  ;;  %v1269_v43 = vld [vmem:[#allocation2 + $0xd8] sm:$0xff]  ;;  %v1270_v55 = vld [vmem:[#allocation2 + $0xe0] sm:$0xff] }
 0x1b1   : > { %1326 = vst [vmem:[#allocation2 + $0xa0] sm:$0xff] %v1294_v53  ;;  %v1271_v10 = vld [vmem:[#allocation2 + $0xe8] sm:$0xff]  ;;  %1327 = vst [vmem:[#allocation2 + $0xa8] sm:$0xff] %v1295_v54  ;;  %v1301_v25 = vadd.f32 %v1269_v43, %v2525_v42  ;;  %v1302_v3 = vadd.f32 %v1270_v55, %v2538_v31  ;;  %v1272_v11 = vld [vmem:[#allocation2 + $0xf0] sm:$0xff] }
 0x1b2   : > { %1328 = vst [vmem:[#allocation2 + $0xb0] sm:$0xff] %v1296_v4  ;;  %1329 = vst [vmem:[#allocation2 + $0xb8] sm:$0xff] %v1297_v7  ;;  %v1303_v49 = vadd.f32 %v1271_v10, %v2546_v9  ;;  %v1273_v12 = vld [vmem:[#allocation2 + $0xf8] sm:$0xff]  ;;  %v1304_v39 = vadd.f32 %v1272_v11, %v2535_v13 }
 0x1b3   : > { %1330 = vst [vmem:[#allocation2 + $0xc0] sm:$0xff] %v1298_v23  ;;  %1331 = vst [vmem:[#allocation2 + $0xc8] sm:$0xff] %v1299_v27  ;;  %v1305_v32 = vadd.f32 %v1273_v12, %v2541_v0 }
 0x1b4   : > { %1332 = vst [vmem:[#allocation2 + $0xd0] sm:$0xff] %v1300_v47  ;;  %1333 = vst [vmem:[#allocation2 + $0xd8] sm:$0xff] %v1301_v25 }
 0x1b5   : > { %1334 = vst [vmem:[#allocation2 + $0xe0] sm:$0xff] %v1302_v3  ;;  %1335 = vst [vmem:[#allocation2 + $0xe8] sm:$0xff] %v1303_v49 }
 0x1b6   : > { %1336 = vst [vmem:[#allocation2 + $0xf0] sm:$0xff] %v1304_v39  ;;  %1337 = vst [vmem:[#allocation2 + $0xf8] sm:$0xff] %v1305_v32 }
 0x1b7 PF: > { %p1696_p0 = scmp.ne.s32.totalorder %s2148_s11, 1 }
 0x1b8   : > { %v1354_v28 = vld [vmem:[#allocation2 + $0x60] sm:$0xff] (!%p1696_p0)  ;;  %v1355_v34 = vld [vmem:[#allocation2 + $0x68] sm:$0xff] (!%p1696_p0)  ;;  %v1356_v5 = vld [vmem:[#allocation2 + $0x70] sm:$0xff] (!%p1696_p0) }
 0x1b9   : > { %1341 = sbr.rel (%p1696_p0) target bundleno = 485 (0x1e5), region = 66  ;;  %v1342_v42 = vld [vmem:[#allocation2] sm:$0xff] (!%p1696_p0)  ;;  %v1343_v50 = vld [vmem:[#allocation2 + $0x8] sm:$0xff] (!%p1696_p0)  ;;  %v1357_v35 = vld [vmem:[#allocation2 + $0x78] sm:$0xff] (!%p1696_p0) }
 0x1ba   : > { %v1344_v31 = vld [vmem:[#allocation2 + $0x10] sm:$0xff] (!%p1696_p0)  ;;  %2046 = vtanh.f32 (!%p1696_p0), %v1342_v42  ;;  %v1345_v9 = vld [vmem:[#allocation2 + $0x18] sm:$0xff] (!%p1696_p0)  ;;  %v1358_v40 = vld [vmem:[#allocation2 + $0x80] sm:$0xff] (!%p1696_p0) }
 0x1bb   : > { %2048 = vtanh.f32 (!%p1696_p0), %v1343_v50  ;;  %v1346_v15 = vld [vmem:[#allocation2 + $0x20] sm:$0xff] (!%p1696_p0)  ;;  %v1347_v13 = vld [vmem:[#allocation2 + $0x28] sm:$0xff] (!%p1696_p0)  ;;  %v1360_v41 = vld [vmem:[#allocation2 + $0x90] sm:$0xff] (!%p1696_p0) }
 0x1bc   : > { %2050 = vtanh.f32 (!%p1696_p0), %v1344_v31  ;;  %v1348_v0 = vld [vmem:[#allocation2 + $0x30] sm:$0xff] (!%p1696_p0)  ;;  %v1349_v17 = vld [vmem:[#allocation2 + $0x38] sm:$0xff] (!%p1696_p0)  ;;  %v1359_v14 = vld [vmem:[#allocation2 + $0x88] sm:$0xff] (!%p1696_p0) }
 0x1bd   : > { %2052 = vtanh.f32 (!%p1696_p0), %v1345_v9  ;;  %v1350_v20 = vld [vmem:[#allocation2 + $0x40] sm:$0xff] (!%p1696_p0)  ;;  %v1351_v21 = vld [vmem:[#allocation2 + $0x48] sm:$0xff] (!%p1696_p0)  ;;  %v1361_v46 = vld [vmem:[#allocation2 + $0x98] sm:$0xff] (!%p1696_p0) }
 0x1be   : > { %2054 = vtanh.f32 (!%p1696_p0), %v1346_v15  ;;  %v1352_v18 = vld [vmem:[#allocation2 + $0x50] sm:$0xff] (!%p1696_p0)  ;;  %v1353_v26 = vld [vmem:[#allocation2 + $0x58] sm:$0xff] (!%p1696_p0)  ;;  %v1362_v16 = vld [vmem:[#allocation2 + $0xa0] sm:$0xff] (!%p1696_p0) }
 0x1bf   : > { %2056 = vtanh.f32 (!%p1696_p0), %v1347_v13  ;;  %v1363_v48 = vld [vmem:[#allocation2 + $0xa8] sm:$0xff] (!%p1696_p0)  ;;  %v1364_v56 = vld [vmem:[#allocation2 + $0xb0] sm:$0xff] (!%p1696_p0)  ;;  %v1365_v33 = vld [vmem:[#allocation2 + $0xb8] sm:$0xff] (!%p1696_p0) }
 0x1c0   : > { %2058 = vtanh.f32 %v1348_v0  ;;  %v1366_v57 = vld [vmem:[#allocation2 + $0xc0] sm:$0xff]  ;;  %v1367_v60 = vld [vmem:[#allocation2 + $0xc8] sm:$0xff]  ;;  %v1368_v51 = vld [vmem:[#allocation2 + $0xd0] sm:$0xff] }
 0x1c1   : > { %2060 = vtanh.f32 %v1349_v17  ;;  %v1369_v61 = vld [vmem:[#allocation2 + $0xd8] sm:$0xff]  ;;  %v1370_v19 = vld [vmem:[#allocation2 + $0xe0] sm:$0xff]  ;;  %v1371_v4 = vld [vmem:[#allocation2 + $0xe8] sm:$0xff] }
 0x1c2   : > { %2062 = vtanh.f32 %v1350_v20  ;;  %v1372_v2 = vld [vmem:[#allocation2 + $0xf0] sm:$0xff]  ;;  %v1373_v37 = vld [vmem:[#allocation2 + $0xf8] sm:$0xff] }
 0x1c3   : > { %2064 = vtanh.f32 %v1351_v21 }
 0x1c4   : > { %v2047_v30 = vpop.eup %2046  ;;  %2066 = vtanh.f32 %v1352_v18 }
 0x1c5   : > { %v2049_v62 = vpop.eup %2048  ;;  %1406 = vst [vmem:[%s2381_s23] sm:$0xff] %v2047_v30  ;;  %2068 = vtanh.f32 %v1353_v26 }
 0x1c6   : > { %v2051_v58 = vpop.eup %2050  ;;  %1407 = vst [vmem:[%s2381_s23 + $0x8] sm:$0xff] %v2049_v62  ;;  %2070 = vtanh.f32 %v1354_v28 }
 0x1c7   : > { %v2053_v36 = vpop.eup %2052  ;;  %1408 = vst [vmem:[%s2381_s23 + $0x10] sm:$0xff] %v2051_v58  ;;  %2072 = vtanh.f32 %v1355_v34 }
 0x1c8   : > { %v2055_v1 = vpop.eup %2054  ;;  %1409 = vst [vmem:[%s2381_s23 + $0x18] sm:$0xff] %v2053_v36  ;;  %2074 = vtanh.f32 %v1356_v5 }
 0x1c9   : > { %v2057_v22 = vpop.eup %2056  ;;  %1410 = vst [vmem:[%s2381_s23 + $0x20] sm:$0xff] %v2055_v1  ;;  %2076 = vtanh.f32 %v1357_v35 }
 0x1ca   : > { %v2059_v44 = vpop.eup %2058  ;;  %1411 = vst [vmem:[%s2381_s23 + $0x28] sm:$0xff] %v2057_v22  ;;  %2078 = vtanh.f32 %v1358_v40 }
 0x1cb   : > { %v2061_v8 = vpop.eup %2060  ;;  %1412 = vst [vmem:[%s2381_s23 + $0x30] sm:$0xff] %v2059_v44  ;;  %2080 = vtanh.f32 %v1359_v14 }
 0x1cc   : > { %v2063_v29 = vpop.eup %2062  ;;  %1413 = vst [vmem:[%s2381_s23 + $0x38] sm:$0xff] %v2061_v8  ;;  %2082 = vtanh.f32 %v1360_v41 }
 0x1cd   : > { %v2065_v52 = vpop.eup %2064  ;;  %1414 = vst [vmem:[%s2381_s23 + $0x40] sm:$0xff] %v2063_v29  ;;  %2084 = vtanh.f32 %v1361_v46 }
 0x1ce   : > { %v2067_v24 = vpop.eup %2066  ;;  %1415 = vst [vmem:[%s2381_s23 + $0x48] sm:$0xff] %v2065_v52  ;;  %2086 = vtanh.f32 %v1362_v16 }
 0x1cf   : > { %v2069_v38 = vpop.eup %2068  ;;  %1416 = vst [vmem:[%s2381_s23 + $0x50] sm:$0xff] %v2067_v24  ;;  %2088 = vtanh.f32 %v1363_v48 }
 0x1d0   : > { %v2071_v59 = vpop.eup %2070  ;;  %1417 = vst [vmem:[%s2381_s23 + $0x58] sm:$0xff] %v2069_v38  ;;  %2090 = vtanh.f32 %v1364_v56 }
 0x1d1   : > { %v2073_v45 = vpop.eup %2072  ;;  %1418 = vst [vmem:[%s2381_s23 + $0x60] sm:$0xff] %v2071_v59  ;;  %2092 = vtanh.f32 %v1365_v33 }
 0x1d2   : > { %v2075_v53 = vpop.eup %2074  ;;  %1419 = vst [vmem:[%s2381_s23 + $0x68] sm:$0xff] %v2073_v45  ;;  %2094 = vtanh.f32 %v1366_v57 }
 0x1d3   : > { %v2077_v63 = vpop.eup %2076  ;;  %1420 = vst [vmem:[%s2381_s23 + $0x70] sm:$0xff] %v2075_v53  ;;  %2096 = vtanh.f32 %v1367_v60 }
 0x1d4   : > { %v2079_v54 = vpop.eup %2078  ;;  %1421 = vst [vmem:[%s2381_s23 + $0x78] sm:$0xff] %v2077_v63  ;;  %2098 = vtanh.f32 %v1368_v51 }
 0x1d5   : > { %v2081_v7 = vpop.eup %2080  ;;  %1422 = vst [vmem:[%s2381_s23 + $0x80] sm:$0xff] %v2079_v54  ;;  %2100 = vtanh.f32 %v1369_v61 }
 0x1d6   : > { %v2083_v6 = vpop.eup %2082  ;;  %1423 = vst [vmem:[%s2381_s23 + $0x88] sm:$0xff] %v2081_v7  ;;  %2102 = vtanh.f32 %v1370_v19 }
 0x1d7   : > { %v2085_v23 = vpop.eup %2084  ;;  %1424 = vst [vmem:[%s2381_s23 + $0x90] sm:$0xff] %v2083_v6  ;;  %2104 = vtanh.f32 %v1371_v4 }
 0x1d8   : > { %v2087_v27 = vpop.eup %2086  ;;  %1425 = vst [vmem:[%s2381_s23 + $0x98] sm:$0xff] %v2085_v23  ;;  %2106 = vtanh.f32 %v1372_v2 }
 0x1d9   : > { %v2089_v47 = vpop.eup %2088  ;;  %1426 = vst [vmem:[%s2381_s23 + $0xa0] sm:$0xff] %v2087_v27  ;;  %2108 = vtanh.f32 %v1373_v37 }
 0x1da   : > { %v2091_v43 = vpop.eup %2090  ;;  %1427 = vst [vmem:[%s2381_s23 + $0xa8] sm:$0xff] %v2089_v47 }
 0x1db   : > { %v2093_v55 = vpop.eup %2092  ;;  %1428 = vst [vmem:[%s2381_s23 + $0xb0] sm:$0xff] %v2091_v43 }
 0x1dc   : > { %v2095_v10 = vpop.eup %2094  ;;  %1429 = vst [vmem:[%s2381_s23 + $0xb8] sm:$0xff] %v2093_v55 }
 0x1dd   : > { %v2097_v25 = vpop.eup %2096  ;;  %1430 = vst [vmem:[%s2381_s23 + $0xc0] sm:$0xff] %v2095_v10 }
 0x1de   : > { %v2099_v3 = vpop.eup %2098  ;;  %1431 = vst [vmem:[%s2381_s23 + $0xc8] sm:$0xff] %v2097_v25 }
 0x1df   : > { %v2101_v49 = vpop.eup %2100  ;;  %1432 = vst [vmem:[%s2381_s23 + $0xd0] sm:$0xff] %v2099_v3 }
 0x1e0   : > { %v2103_v11 = vpop.eup %2102  ;;  %1433 = vst [vmem:[%s2381_s23 + $0xd8] sm:$0xff] %v2101_v49 }
 0x1e1   : > { %v2105_v12 = vpop.eup %2104  ;;  %1434 = vst [vmem:[%s2381_s23 + $0xe0] sm:$0xff] %v2103_v11 }
 0x1e2   : > { %v2107_v39 = vpop.eup %2106  ;;  %1435 = vst [vmem:[%s2381_s23 + $0xe8] sm:$0xff] %v2105_v12 }
 0x1e3   : > { %v2109_v32 = vpop.eup %2108  ;;  %1436 = vst [vmem:[%s2381_s23 + $0xf0] sm:$0xff] %v2107_v39 }
 0x1e4   : > { %1437 = vst [vmem:[%s2381_s23 + $0xf8] sm:$0xff] %v2109_v32 }
 0x1e5 PF: > { %s12_s15 = sadd.s32 1, %s2164_s15   ;;  %s2673_s9 = smov %s2144_s10 }
 0x1e6   : > { %p9_p1 = scmp.ge.s32.totalorder %s12_s15, 6   ;;  %s2674_s10 = smov %s2232_s22 }
 0x1e7   : > { %s2675_s11 = smov %s2156_s13  ;;  %s2676_s12 = smov %s2160_s14 }
 0x1e8   : > { %s2677_s13 = smov %s2680_s16  ;;  %s2678_s14 = smov %s2684_s17 }
 0x1e9   :  { %11 = sbr.rel (!%p9_p1) target bundleno = 4 (0x4), region = 110 }

</bundles_post_ra>
